<compile_context>
chip_gen: v7x
topology: tpu7x:2x2x1
jax: 0.10.0
libtpu: 0.0.40
codegen_flags: <defaults>
</compile_context>

<pallas_src>
import functools
import math

import jax
import jax.numpy as jnp
from jax.experimental import pallas as pl
from jax.experimental.pallas import tpu as pltpu


# ----------------------------- Pallas kernel -------------------------------
def _group_fused_kernel(x_ref, wa1_ref, wa2_ref, ba1_ref, ba2_ref,
                        wc1_ref, wc2_ref, bc1_ref, bc2_ref,
                        o_ref, apad_ref, *, kh, kw, stride, padding):
    """Fused  (1x1 conv + MFM)  ->  zero-pad in VMEM  ->  (kxk conv + MFM).

    One full image per grid step.  Shapes (per step):
      x_ref   : (1, H, W, Cin)        NHWC input tile
      wa1/wa2 : (Cin, Ca)             1x1 conv weight halves (Ca == Cin)
      ba1/ba2 : (1, Ca)
      wc1/wc2 : (kh*kw, Ca, Cout)     kxk conv weight halves, tap-major
      bc1/bc2 : (1, Cout)
      o_ref   : (1, Hout, Wout, Cout)
      apad_ref: (H+2p, W+2p, Ca)      VMEM scratch, zero-padded activation
    """
    H, W, Cin = x_ref.shape[1], x_ref.shape[2], x_ref.shape[3]
    Hout, Wout, Cout = o_ref.shape[1], o_ref.shape[2], o_ref.shape[3]
    Ca = wa1_ref.shape[1]

    # ---------------- stage A: 1x1 conv + MFM (one matmul per half) --------
    x2 = x_ref[0].reshape(H * W, Cin)                 # leading-dim collapse only
    a1 = jnp.dot(x2, wa1_ref[...], preferred_element_type=jnp.float32) + ba1_ref[...]
    a2 = jnp.dot(x2, wa2_ref[...], preferred_element_type=jnp.float32) + ba2_ref[...]
    a = jnp.maximum(a1, a2)                           # (H*W, Ca), pure VPU max

    # ------- zero-padded stage-A activation stays resident in VMEM ---------
    apad_ref[...] = jnp.zeros_like(apad_ref)
    apad_ref[padding:padding + H, padding:padding + W, :] = a.reshape(H, W, Ca)

    # ---------------- stage C: kxk conv + MFM (in-VMEM im2col) -------------
    M = Hout * Wout
    acc1 = jnp.zeros((M, Cout), jnp.float32)
    acc2 = jnp.zeros((M, Cout), jnp.float32)
    for di in range(kh):                              # static, fully unrolled (kh*kw taps)
        for dj in range(kw):
            if stride == 1:
                win = apad_ref[di:di + Hout, dj:dj + Wout, :]
            else:
                win = apad_ref[pl.ds(di, Hout, stride), pl.ds(dj, Wout, stride), :]
            win2 = win.reshape(M, Ca)                 # leading-dim collapse only
            t = di * kw + dj
            acc1 = acc1 + jnp.dot(win2, wc1_ref[t], preferred_element_type=jnp.float32)
            acc2 = acc2 + jnp.dot(win2, wc2_ref[t], preferred_element_type=jnp.float32)

    out = jnp.maximum(acc1 + bc1_ref[...], acc2 + bc2_ref[...])
    o_ref[0] = out.reshape(Hout, Wout, Cout).astype(o_ref.dtype)


# ------------------------------- wrapper -------------------------------------
def _split_mfm_conv_params(w_hwio, b):
    """(kh,kw,Cin,2*Co) HWIO weights + (2*Co,) bias -> tap-major split halves."""
    kh, kw, cin, n2 = w_hwio.shape
    n = n2 // 2
    w = w_hwio.reshape(kh * kw, cin, n2).astype(jnp.float32)
    b = b.astype(jnp.float32)
    # torch.split(x, out_channels, dim=1): first half = channels [:n], second = [n:]
    return w[..., :n], w[..., n:], b[:n].reshape(1, n), b[n:].reshape(1, n)


def group_forward_pallas(x_nchw, params):
    """`group.forward`: conv_a (1x1 mfm) -> conv (kxk mfm). NCHW in/out."""
    stride, padding = params["stride"], params["padding"]

    wa1f, wa2f, ba1, ba2 = _split_mfm_conv_params(params["wa"], params["ba"])
    wa1, wa2 = wa1f[0], wa2f[0]                      # (Cin, Ca), 1x1 kernel
    wc1, wc2, bc1, bc2 = _split_mfm_conv_params(params["wc"], params["bc"])

    kh, kw = params["wc"].shape[0], params["wc"].shape[1]
    Ca, Cout = wa1.shape[1], wc1.shape[2]

    x = jnp.transpose(x_nchw, (0, 2, 3, 1)).astype(jnp.float32)   # -> NHWC
    B, H, W, Cin = x.shape
    Hout = (H + 2 * padding - kh) // stride + 1
    Wout = (W + 2 * padding - kw) // stride + 1

    # One image per grid step: whole pipeline stays in VMEM (no HBM round trip
    # between the two MFM convs, no HBM im2col patch matrix).
    # TODO(synk): for very large spectrograms, tile Hout with a (kh-1) halo
    # instead of whole images so the padded activation fits VMEM.
    out = pl.pallas_call(
        functools.partial(_group_fused_kernel,
                          kh=kh, kw=kw, stride=stride, padding=padding),
        out_shape=jax.ShapeDtypeStruct((B, Hout, Wout, Cout), jnp.float32),
        grid=(B,),
        in_specs=[
            pl.BlockSpec((1, H, W, Cin), lambda b: (b, 0, 0, 0)),      # image
            pl.BlockSpec((Cin, Ca), lambda b: (0, 0)),                 # wa half 1
            pl.BlockSpec((Cin, Ca), lambda b: (0, 0)),                 # wa half 2
            pl.BlockSpec((1, Ca), lambda b: (0, 0)),                   # ba half 1
            pl.BlockSpec((1, Ca), lambda b: (0, 0)),                   # ba half 2
            pl.BlockSpec((kh * kw, Ca, Cout), lambda b: (0, 0, 0)),    # wc half 1
            pl.BlockSpec((kh * kw, Ca, Cout), lambda b: (0, 0, 0)),    # wc half 2
            pl.BlockSpec((1, Cout), lambda b: (0, 0)),                 # bc half 1
            pl.BlockSpec((1, Cout), lambda b: (0, 0)),                 # bc half 2
        ],
        out_specs=pl.BlockSpec((1, Hout, Wout, Cout), lambda b: (b, 0, 0, 0)),
        scratch_shapes=[
            pltpu.VMEM((H + 2 * padding, W + 2 * padding, Ca), jnp.float32),
        ],
        compiler_params=pltpu.CompilerParams(
            dimension_semantics=("parallel",)),      # batch axis -> 2 TCs on v7x
    )(x, wa1, wa2, ba1, ba2, wc1, wc2, bc1, bc2)

    return jnp.transpose(out, (0, 3, 1, 2))          # -> NCHW


# ------------------------- pure-JAX reference --------------------------------
def _conv_mfm_ref(x_nhwc, w_hwio, b, stride, padding):
    y = jax.lax.conv_general_dilated(
        x_nhwc, w_hwio, window_strides=(stride, stride),
        padding=[(padding, padding), (padding, padding)],
        dimension_numbers=("NHWC", "HWIO", "NHWC"))
    y = y + b.reshape(1, 1, 1, -1)
    n = y.shape[-1] // 2
    return jnp.maximum(y[..., :n], y[..., n:])


def group_forward_ref(x_nchw, params):
    x = jnp.transpose(x_nchw, (0, 2, 3, 1))
    x = _conv_mfm_ref(x, params["wa"], params["ba"], 1, 0)
    x = _conv_mfm_ref(x, params["wc"], params["bc"], params["stride"], params["padding"])
    return jnp.transpose(x, (0, 3, 1, 2))


# --------------------------------- main --------------------------------------
if __name__ == "__main__":
    # group(in_channels=4, out_channels=8, kernel_size=3, stride=1, padding=1)
    B, Cin, H, W = 2, 4, 16, 16
    Cout, K, S, P = 8, 3, 1, 1

    key = jax.random.PRNGKey(0)
    k1, k2, k3, k4, k5 = jax.random.split(key, 5)

    x = jax.random.normal(k1, (B, Cin, H, W), jnp.float32)

    # Parameters in HWIO layout (kh, kw, Cin, 2*Co), matching the PyTorch module:
    #   conv_a.filter: Conv2d(Cin, 2*Cin, 1, 1, 0)
    #   conv.filter  : Conv2d(Cin, 2*Cout, K, S, P)
    params = {
        "wa": jax.random.normal(k2, (1, 1, Cin, 2 * Cin), jnp.float32) / math.sqrt(Cin),
        "ba": 0.1 * jax.random.normal(k3, (2 * Cin,), jnp.float32),
        "wc": jax.random.normal(k4, (K, K, Cin, 2 * Cout), jnp.float32) / math.sqrt(K * K * Cin),
        "bc": 0.1 * jax.random.normal(k5, (2 * Cout,), jnp.float32),
        "stride": S,
        "padding": P,
    }
    # TODO(synk): group.__init__ also builds nn.BatchNorm2d, but forward never uses it.

    out = group_forward_pallas(x, params)
    out = jax.block_until_ready(out)

    ref = group_forward_ref(x, params)
    assert out.shape == (B, Cout, H, W), out.shape
    assert jnp.allclose(out, ref, atol=1e-3, rtol=1e-3), "mismatch vs reference"

    print("KERNEL_OK")
</pallas_src>

<mosaic_0001>
module attributes {stable_mosaic.version = 11 : i64} {
  func.func @_group_fused_kernel(%arg0: i32, %arg1: memref<1x16x16x4xf32, #tpu.memory_space<vmem>>, %arg2: memref<4x4xf32, #tpu.memory_space<vmem>>, %arg3: memref<4x4xf32, #tpu.memory_space<vmem>>, %arg4: memref<1x4xf32, #tpu.memory_space<vmem>>, %arg5: memref<1x4xf32, #tpu.memory_space<vmem>>, %arg6: memref<9x4x8xf32, #tpu.memory_space<vmem>>, %arg7: memref<9x4x8xf32, #tpu.memory_space<vmem>>, %arg8: memref<1x8xf32, #tpu.memory_space<vmem>>, %arg9: memref<1x8xf32, #tpu.memory_space<vmem>>, %arg10: memref<1x16x16x8xf32, #tpu.memory_space<vmem>>, %arg11: memref<18x18x4xf32, #tpu.memory_space<vmem>>) attributes {dimension_semantics = [#tpu.dimension_semantics<parallel>], iteration_bounds = array<i64: 2>, scalar_prefetch = 0 : i64, scratch_operands = 1 : i64, tpu.core_type = #tpu.core_type<tc>, window_params = [{transform_indices = @transform_0, window_bounds = array<i64: 1, 16, 16, 4>}, {pipeline_mode = #tpu.pipeline_mode<synchronous>, transform_indices = @transform_1, window_bounds = array<i64: 4, 4>}, {pipeline_mode = #tpu.pipeline_mode<synchronous>, transform_indices = @transform_2, window_bounds = array<i64: 4, 4>}, {pipeline_mode = #tpu.pipeline_mode<synchronous>, transform_indices = @transform_3, window_bounds = array<i64: 1, 4>}, {pipeline_mode = #tpu.pipeline_mode<synchronous>, transform_indices = @transform_4, window_bounds = array<i64: 1, 4>}, {pipeline_mode = #tpu.pipeline_mode<synchronous>, transform_indices = @transform_5, window_bounds = array<i64: 9, 4, 8>}, {pipeline_mode = #tpu.pipeline_mode<synchronous>, transform_indices = @transform_6, window_bounds = array<i64: 9, 4, 8>}, {pipeline_mode = #tpu.pipeline_mode<synchronous>, transform_indices = @transform_7, window_bounds = array<i64: 1, 8>}, {pipeline_mode = #tpu.pipeline_mode<synchronous>, transform_indices = @transform_8, window_bounds = array<i64: 1, 8>}, {transform_indices = @transform_9, window_bounds = array<i64: 1, 16, 16, 8>}]} {
    %c0 = arith.constant 0 : index
    %c0_0 = arith.constant 0 : index
    %c0_1 = arith.constant 0 : index
    %c0_2 = arith.constant 0 : index
    %0 = vector.load %arg1[%c0, %c0_0, %c0_1, %c0_2] : memref<1x16x16x4xf32, #tpu.memory_space<vmem>>, vector<1x16x16x4xf32>
    %1 = vector.shape_cast %0 : vector<1x16x16x4xf32> to vector<16x16x4xf32>
    %2 = vector.shape_cast %1 : vector<16x16x4xf32> to vector<256x4xf32>
    %c0_3 = arith.constant 0 : index
    %c0_4 = arith.constant 0 : index
    %3 = vector.load %arg2[%c0_3, %c0_4] : memref<4x4xf32, #tpu.memory_space<vmem>>, vector<4x4xf32>
    %cst = arith.constant dense<0.000000e+00> : vector<256x4xf32>
    %4 = tpu.matmul %2, %3, %cst {dimension_numbers = #tpu.dot_dimension_numbers<[1], [0], [0], [1], [0, 0, 1, 1], [], []>} : vector<256x4xf32>, vector<4x4xf32>, vector<256x4xf32> -> vector<256x4xf32>
    %c0_5 = arith.constant 0 : index
    %c0_6 = arith.constant 0 : index
    %5 = vector.load %arg4[%c0_5, %c0_6] : memref<1x4xf32, #tpu.memory_space<vmem>>, vector<1x4xf32>
    %6 = vector.broadcast %5 : vector<1x4xf32> to vector<256x4xf32>
    %7 = arith.addf %4, %6 : vector<256x4xf32>
    %c0_7 = arith.constant 0 : index
    %c0_8 = arith.constant 0 : index
    %8 = vector.load %arg3[%c0_7, %c0_8] : memref<4x4xf32, #tpu.memory_space<vmem>>, vector<4x4xf32>
    %cst_9 = arith.constant dense<0.000000e+00> : vector<256x4xf32>
    %9 = tpu.matmul %2, %8, %cst_9 {dimension_numbers = #tpu.dot_dimension_numbers<[1], [0], [0], [1], [0, 0, 1, 1], [], []>} : vector<256x4xf32>, vector<4x4xf32>, vector<256x4xf32> -> vector<256x4xf32>
    %c0_10 = arith.constant 0 : index
    %c0_11 = arith.constant 0 : index
    %10 = vector.load %arg5[%c0_10, %c0_11] : memref<1x4xf32, #tpu.memory_space<vmem>>, vector<1x4xf32>
    %11 = vector.broadcast %10 : vector<1x4xf32> to vector<256x4xf32>
    %12 = arith.addf %9, %11 : vector<256x4xf32>
    %13 = arith.maximumf %7, %12 : vector<256x4xf32>
    %cst_12 = arith.constant 0.000000e+00 : f32
    %14 = vector.broadcast %cst_12 : f32 to vector<18x18x4xf32>
    %c0_13 = arith.constant 0 : index
    %c0_14 = arith.constant 0 : index
    %c0_15 = arith.constant 0 : index
    %15 = vector.load %arg11[%c0_13, %c0_14, %c0_15] : memref<18x18x4xf32, #tpu.memory_space<vmem>>, vector<18x18x4xf32>
    tpu.vector_store %arg11[%c0_13, %c0_14, %c0_15], %14 {strides = array<i32>} : memref<18x18x4xf32, #tpu.memory_space<vmem>>, vector<18x18x4xf32>,
    %16 = vector.shape_cast %13 : vector<256x4xf32> to vector<16x16x4xf32>
    %c1 = arith.constant 1 : index
    %c1_16 = arith.constant 1 : index
    %c0_17 = arith.constant 0 : index
    %17 = vector.load %arg11[%c1, %c1_16, %c0_17] : memref<18x18x4xf32, #tpu.memory_space<vmem>>, vector<16x16x4xf32>
    tpu.vector_store %arg11[%c1, %c1_16, %c0_17], %16 {strides = array<i32>} : memref<18x18x4xf32, #tpu.memory_space<vmem>>, vector<16x16x4xf32>,
    %cst_18 = arith.constant 0.000000e+00 : f32
    %18 = vector.broadcast %cst_18 : f32 to vector<256x8xf32>
    %cst_19 = arith.constant 0.000000e+00 : f32
    %19 = vector.broadcast %cst_19 : f32 to vector<256x8xf32>
    %c0_20 = arith.constant 0 : index
    %c0_21 = arith.constant 0 : index
    %c0_22 = arith.constant 0 : index
    %20 = vector.load %arg11[%c0_20, %c0_21, %c0_22] : memref<18x18x4xf32, #tpu.memory_space<vmem>>, vector<16x16x4xf32>
    %21 = vector.shape_cast %20 : vector<16x16x4xf32> to vector<256x4xf32>
    %c0_23 = arith.constant 0 : index
    %c0_24 = arith.constant 0 : index
    %c0_25 = arith.constant 0 : index
    %22 = vector.load %arg6[%c0_23, %c0_24, %c0_25] : memref<9x4x8xf32, #tpu.memory_space<vmem>>, vector<1x4x8xf32>
    %23 = vector.shape_cast %22 : vector<1x4x8xf32> to vector<4x8xf32>
    %cst_26 = arith.constant dense<0.000000e+00> : vector<256x8xf32>
    %24 = tpu.matmul %21, %23, %cst_26 {dimension_numbers = #tpu.dot_dimension_numbers<[1], [0], [0], [1], [0, 0, 1, 1], [], []>} : vector<256x4xf32>, vector<4x8xf32>, vector<256x8xf32> -> vector<256x8xf32>
    %25 = arith.addf %18, %24 : vector<256x8xf32>
    %c0_27 = arith.constant 0 : index
    %c0_28 = arith.constant 0 : index
    %c0_29 = arith.constant 0 : index
    %26 = vector.load %arg7[%c0_27, %c0_28, %c0_29] : memref<9x4x8xf32, #tpu.memory_space<vmem>>, vector<1x4x8xf32>
    %27 = vector.shape_cast %26 : vector<1x4x8xf32> to vector<4x8xf32>
    %cst_30 = arith.constant dense<0.000000e+00> : vector<256x8xf32>
    %28 = tpu.matmul %21, %27, %cst_30 {dimension_numbers = #tpu.dot_dimension_numbers<[1], [0], [0], [1], [0, 0, 1, 1], [], []>} : vector<256x4xf32>, vector<4x8xf32>, vector<256x8xf32> -> vector<256x8xf32>
    %29 = arith.addf %19, %28 : vector<256x8xf32>
    %c0_31 = arith.constant 0 : index
    %c1_32 = arith.constant 1 : index
    %c0_33 = arith.constant 0 : index
    %30 = vector.load %arg11[%c0_31, %c1_32, %c0_33] : memref<18x18x4xf32, #tpu.memory_space<vmem>>, vector<16x16x4xf32>
    %31 = vector.shape_cast %30 : vector<16x16x4xf32> to vector<256x4xf32>
    %c1_34 = arith.constant 1 : index
    %c0_35 = arith.constant 0 : index
    %c0_36 = arith.constant 0 : index
    %32 = vector.load %arg6[%c1_34, %c0_35, %c0_36] : memref<9x4x8xf32, #tpu.memory_space<vmem>>, vector<1x4x8xf32>
    %33 = vector.shape_cast %32 : vector<1x4x8xf32> to vector<4x8xf32>
    %cst_37 = arith.constant dense<0.000000e+00> : vector<256x8xf32>
    %34 = tpu.matmul %31, %33, %cst_37 {dimension_numbers = #tpu.dot_dimension_numbers<[1], [0], [0], [1], [0, 0, 1, 1], [], []>} : vector<256x4xf32>, vector<4x8xf32>, vector<256x8xf32> -> vector<256x8xf32>
    %35 = arith.addf %25, %34 : vector<256x8xf32>
    %c1_38 = arith.constant 1 : index
    %c0_39 = arith.constant 0 : index
    %c0_40 = arith.constant 0 : index
    %36 = vector.load %arg7[%c1_38, %c0_39, %c0_40] : memref<9x4x8xf32, #tpu.memory_space<vmem>>, vector<1x4x8xf32>
    %37 = vector.shape_cast %36 : vector<1x4x8xf32> to vector<4x8xf32>
    %cst_41 = arith.constant dense<0.000000e+00> : vector<256x8xf32>
    %38 = tpu.matmul %31, %37, %cst_41 {dimension_numbers = #tpu.dot_dimension_numbers<[1], [0], [0], [1], [0, 0, 1, 1], [], []>} : vector<256x4xf32>, vector<4x8xf32>, vector<256x8xf32> -> vector<256x8xf32>
    %39 = arith.addf %29, %38 : vector<256x8xf32>
    %c0_42 = arith.constant 0 : index
    %c2 = arith.constant 2 : index
    %c0_43 = arith.constant 0 : index
    %40 = vector.load %arg11[%c0_42, %c2, %c0_43] : memref<18x18x4xf32, #tpu.memory_space<vmem>>, vector<16x16x4xf32>
    %41 = vector.shape_cast %40 : vector<16x16x4xf32> to vector<256x4xf32>
    %c2_44 = arith.constant 2 : index
    %c0_45 = arith.constant 0 : index
    %c0_46 = arith.constant 0 : index
    %42 = vector.load %arg6[%c2_44, %c0_45, %c0_46] : memref<9x4x8xf32, #tpu.memory_space<vmem>>, vector<1x4x8xf32>
    %43 = vector.shape_cast %42 : vector<1x4x8xf32> to vector<4x8xf32>
    %cst_47 = arith.constant dense<0.000000e+00> : vector<256x8xf32>
    %44 = tpu.matmul %41, %43, %cst_47 {dimension_numbers = #tpu.dot_dimension_numbers<[1], [0], [0], [1], [0, 0, 1, 1], [], []>} : vector<256x4xf32>, vector<4x8xf32>, vector<256x8xf32> -> vector<256x8xf32>
    %45 = arith.addf %35, %44 : vector<256x8xf32>
    %c2_48 = arith.constant 2 : index
    %c0_49 = arith.constant 0 : index
    %c0_50 = arith.constant 0 : index
    %46 = vector.load %arg7[%c2_48, %c0_49, %c0_50] : memref<9x4x8xf32, #tpu.memory_space<vmem>>, vector<1x4x8xf32>
    %47 = vector.shape_cast %46 : vector<1x4x8xf32> to vector<4x8xf32>
    %cst_51 = arith.constant dense<0.000000e+00> : vector<256x8xf32>
    %48 = tpu.matmul %41, %47, %cst_51 {dimension_numbers = #tpu.dot_dimension_numbers<[1], [0], [0], [1], [0, 0, 1, 1], [], []>} : vector<256x4xf32>, vector<4x8xf32>, vector<256x8xf32> -> vector<256x8xf32>
    %49 = arith.addf %39, %48 : vector<256x8xf32>
    %c1_52 = arith.constant 1 : index
    %c0_53 = arith.constant 0 : index
    %c0_54 = arith.constant 0 : index
    %50 = vector.load %arg11[%c1_52, %c0_53, %c0_54] : memref<18x18x4xf32, #tpu.memory_space<vmem>>, vector<16x16x4xf32>
    %51 = vector.shape_cast %50 : vector<16x16x4xf32> to vector<256x4xf32>
    %c3 = arith.constant 3 : index
    %c0_55 = arith.constant 0 : index
    %c0_56 = arith.constant 0 : index
    %52 = vector.load %arg6[%c3, %c0_55, %c0_56] : memref<9x4x8xf32, #tpu.memory_space<vmem>>, vector<1x4x8xf32>
    %53 = vector.shape_cast %52 : vector<1x4x8xf32> to vector<4x8xf32>
    %cst_57 = arith.constant dense<0.000000e+00> : vector<256x8xf32>
    %54 = tpu.matmul %51, %53, %cst_57 {dimension_numbers = #tpu.dot_dimension_numbers<[1], [0], [0], [1], [0, 0, 1, 1], [], []>} : vector<256x4xf32>, vector<4x8xf32>, vector<256x8xf32> -> vector<256x8xf32>
    %55 = arith.addf %45, %54 : vector<256x8xf32>
    %c3_58 = arith.constant 3 : index
    %c0_59 = arith.constant 0 : index
    %c0_60 = arith.constant 0 : index
    %56 = vector.load %arg7[%c3_58, %c0_59, %c0_60] : memref<9x4x8xf32, #tpu.memory_space<vmem>>, vector<1x4x8xf32>
    %57 = vector.shape_cast %56 : vector<1x4x8xf32> to vector<4x8xf32>
    %cst_61 = arith.constant dense<0.000000e+00> : vector<256x8xf32>
    %58 = tpu.matmul %51, %57, %cst_61 {dimension_numbers = #tpu.dot_dimension_numbers<[1], [0], [0], [1], [0, 0, 1, 1], [], []>} : vector<256x4xf32>, vector<4x8xf32>, vector<256x8xf32> -> vector<256x8xf32>
    %59 = arith.addf %49, %58 : vector<256x8xf32>
    %c1_62 = arith.constant 1 : index
    %c1_63 = arith.constant 1 : index
    %c0_64 = arith.constant 0 : index
    %60 = vector.load %arg11[%c1_62, %c1_63, %c0_64] : memref<18x18x4xf32, #tpu.memory_space<vmem>>, vector<16x16x4xf32>
    %61 = vector.shape_cast %60 : vector<16x16x4xf32> to vector<256x4xf32>
    %c4 = arith.constant 4 : index
    %c0_65 = arith.constant 0 : index
    %c0_66 = arith.constant 0 : index
    %62 = vector.load %arg6[%c4, %c0_65, %c0_66] : memref<9x4x8xf32, #tpu.memory_space<vmem>>, vector<1x4x8xf32>
    %63 = vector.shape_cast %62 : vector<1x4x8xf32> to vector<4x8xf32>
    %cst_67 = arith.constant dense<0.000000e+00> : vector<256x8xf32>
    %64 = tpu.matmul %61, %63, %cst_67 {dimension_numbers = #tpu.dot_dimension_numbers<[1], [0], [0], [1], [0, 0, 1, 1], [], []>} : vector<256x4xf32>, vector<4x8xf32>, vector<256x8xf32> -> vector<256x8xf32>
    %65 = arith.addf %55, %64 : vector<256x8xf32>
    %c4_68 = arith.constant 4 : index
    %c0_69 = arith.constant 0 : index
    %c0_70 = arith.constant 0 : index
    %66 = vector.load %arg7[%c4_68, %c0_69, %c0_70] : memref<9x4x8xf32, #tpu.memory_space<vmem>>, vector<1x4x8xf32>
    %67 = vector.shape_cast %66 : vector<1x4x8xf32> to vector<4x8xf32>
    %cst_71 = arith.constant dense<0.000000e+00> : vector<256x8xf32>
    %68 = tpu.matmul %61, %67, %cst_71 {dimension_numbers = #tpu.dot_dimension_numbers<[1], [0], [0], [1], [0, 0, 1, 1], [], []>} : vector<256x4xf32>, vector<4x8xf32>, vector<256x8xf32> -> vector<256x8xf32>
    %69 = arith.addf %59, %68 : vector<256x8xf32>
    %c1_72 = arith.constant 1 : index
    %c2_73 = arith.constant 2 : index
    %c0_74 = arith.constant 0 : index
    %70 = vector.load %arg11[%c1_72, %c2_73, %c0_74] : memref<18x18x4xf32, #tpu.memory_space<vmem>>, vector<16x16x4xf32>
    %71 = vector.shape_cast %70 : vector<16x16x4xf32> to vector<256x4xf32>
    %c5 = arith.constant 5 : index
    %c0_75 = arith.constant 0 : index
    %c0_76 = arith.constant 0 : index
    %72 = vector.load %arg6[%c5, %c0_75, %c0_76] : memref<9x4x8xf32, #tpu.memory_space<vmem>>, vector<1x4x8xf32>
    %73 = vector.shape_cast %72 : vector<1x4x8xf32> to vector<4x8xf32>
    %cst_77 = arith.constant dense<0.000000e+00> : vector<256x8xf32>
    %74 = tpu.matmul %71, %73, %cst_77 {dimension_numbers = #tpu.dot_dimension_numbers<[1], [0], [0], [1], [0, 0, 1, 1], [], []>} : vector<256x4xf32>, vector<4x8xf32>, vector<256x8xf32> -> vector<256x8xf32>
    %75 = arith.addf %65, %74 : vector<256x8xf32>
    %c5_78 = arith.constant 5 : index
    %c0_79 = arith.constant 0 : index
    %c0_80 = arith.constant 0 : index
    %76 = vector.load %arg7[%c5_78, %c0_79, %c0_80] : memref<9x4x8xf32, #tpu.memory_space<vmem>>, vector<1x4x8xf32>
    %77 = vector.shape_cast %76 : vector<1x4x8xf32> to vector<4x8xf32>
    %cst_81 = arith.constant dense<0.000000e+00> : vector<256x8xf32>
    %78 = tpu.matmul %71, %77, %cst_81 {dimension_numbers = #tpu.dot_dimension_numbers<[1], [0], [0], [1], [0, 0, 1, 1], [], []>} : vector<256x4xf32>, vector<4x8xf32>, vector<256x8xf32> -> vector<256x8xf32>
    %79 = arith.addf %69, %78 : vector<256x8xf32>
    %c2_82 = arith.constant 2 : index
    %c0_83 = arith.constant 0 : index
    %c0_84 = arith.constant 0 : index
    %80 = vector.load %arg11[%c2_82, %c0_83, %c0_84] : memref<18x18x4xf32, #tpu.memory_space<vmem>>, vector<16x16x4xf32>
    %81 = vector.shape_cast %80 : vector<16x16x4xf32> to vector<256x4xf32>
    %c6 = arith.constant 6 : index
    %c0_85 = arith.constant 0 : index
    %c0_86 = arith.constant 0 : index
    %82 = vector.load %arg6[%c6, %c0_85, %c0_86] : memref<9x4x8xf32, #tpu.memory_space<vmem>>, vector<1x4x8xf32>
    %83 = vector.shape_cast %82 : vector<1x4x8xf32> to vector<4x8xf32>
    %cst_87 = arith.constant dense<0.000000e+00> : vector<256x8xf32>
    %84 = tpu.matmul %81, %83, %cst_87 {dimension_numbers = #tpu.dot_dimension_numbers<[1], [0], [0], [1], [0, 0, 1, 1], [], []>} : vector<256x4xf32>, vector<4x8xf32>, vector<256x8xf32> -> vector<256x8xf32>
    %85 = arith.addf %75, %84 : vector<256x8xf32>
    %c6_88 = arith.constant 6 : index
    %c0_89 = arith.constant 0 : index
    %c0_90 = arith.constant 0 : index
    %86 = vector.load %arg7[%c6_88, %c0_89, %c0_90] : memref<9x4x8xf32, #tpu.memory_space<vmem>>, vector<1x4x8xf32>
    %87 = vector.shape_cast %86 : vector<1x4x8xf32> to vector<4x8xf32>
    %cst_91 = arith.constant dense<0.000000e+00> : vector<256x8xf32>
    %88 = tpu.matmul %81, %87, %cst_91 {dimension_numbers = #tpu.dot_dimension_numbers<[1], [0], [0], [1], [0, 0, 1, 1], [], []>} : vector<256x4xf32>, vector<4x8xf32>, vector<256x8xf32> -> vector<256x8xf32>
    %89 = arith.addf %79, %88 : vector<256x8xf32>
    %c2_92 = arith.constant 2 : index
    %c1_93 = arith.constant 1 : index
    %c0_94 = arith.constant 0 : index
    %90 = vector.load %arg11[%c2_92, %c1_93, %c0_94] : memref<18x18x4xf32, #tpu.memory_space<vmem>>, vector<16x16x4xf32>
    %91 = vector.shape_cast %90 : vector<16x16x4xf32> to vector<256x4xf32>
    %c7 = arith.constant 7 : index
    %c0_95 = arith.constant 0 : index
    %c0_96 = arith.constant 0 : index
    %92 = vector.load %arg6[%c7, %c0_95, %c0_96] : memref<9x4x8xf32, #tpu.memory_space<vmem>>, vector<1x4x8xf32>
    %93 = vector.shape_cast %92 : vector<1x4x8xf32> to vector<4x8xf32>
    %cst_97 = arith.constant dense<0.000000e+00> : vector<256x8xf32>
    %94 = tpu.matmul %91, %93, %cst_97 {dimension_numbers = #tpu.dot_dimension_numbers<[1], [0], [0], [1], [0, 0, 1, 1], [], []>} : vector<256x4xf32>, vector<4x8xf32>, vector<256x8xf32> -> vector<256x8xf32>
    %95 = arith.addf %85, %94 : vector<256x8xf32>
    %c7_98 = arith.constant 7 : index
    %c0_99 = arith.constant 0 : index
    %c0_100 = arith.constant 0 : index
    %96 = vector.load %arg7[%c7_98, %c0_99, %c0_100] : memref<9x4x8xf32, #tpu.memory_space<vmem>>, vector<1x4x8xf32>
    %97 = vector.shape_cast %96 : vector<1x4x8xf32> to vector<4x8xf32>
    %cst_101 = arith.constant dense<0.000000e+00> : vector<256x8xf32>
    %98 = tpu.matmul %91, %97, %cst_101 {dimension_numbers = #tpu.dot_dimension_numbers<[1], [0], [0], [1], [0, 0, 1, 1], [], []>} : vector<256x4xf32>, vector<4x8xf32>, vector<256x8xf32> -> vector<256x8xf32>
    %99 = arith.addf %89, %98 : vector<256x8xf32>
    %c2_102 = arith.constant 2 : index
    %c2_103 = arith.constant 2 : index
    %c0_104 = arith.constant 0 : index
    %100 = vector.load %arg11[%c2_102, %c2_103, %c0_104] : memref<18x18x4xf32, #tpu.memory_space<vmem>>, vector<16x16x4xf32>
    %101 = vector.shape_cast %100 : vector<16x16x4xf32> to vector<256x4xf32>
    %c8 = arith.constant 8 : index
    %c0_105 = arith.constant 0 : index
    %c0_106 = arith.constant 0 : index
    %102 = vector.load %arg6[%c8, %c0_105, %c0_106] : memref<9x4x8xf32, #tpu.memory_space<vmem>>, vector<1x4x8xf32>
    %103 = vector.shape_cast %102 : vector<1x4x8xf32> to vector<4x8xf32>
    %cst_107 = arith.constant dense<0.000000e+00> : vector<256x8xf32>
    %104 = tpu.matmul %101, %103, %cst_107 {dimension_numbers = #tpu.dot_dimension_numbers<[1], [0], [0], [1], [0, 0, 1, 1], [], []>} : vector<256x4xf32>, vector<4x8xf32>, vector<256x8xf32> -> vector<256x8xf32>
    %105 = arith.addf %95, %104 : vector<256x8xf32>
    %c8_108 = arith.constant 8 : index
    %c0_109 = arith.constant 0 : index
    %c0_110 = arith.constant 0 : index
    %106 = vector.load %arg7[%c8_108, %c0_109, %c0_110] : memref<9x4x8xf32, #tpu.memory_space<vmem>>, vector<1x4x8xf32>
    %107 = vector.shape_cast %106 : vector<1x4x8xf32> to vector<4x8xf32>
    %cst_111 = arith.constant dense<0.000000e+00> : vector<256x8xf32>
    %108 = tpu.matmul %101, %107, %cst_111 {dimension_numbers = #tpu.dot_dimension_numbers<[1], [0], [0], [1], [0, 0, 1, 1], [], []>} : vector<256x4xf32>, vector<4x8xf32>, vector<256x8xf32> -> vector<256x8xf32>
    %109 = arith.addf %99, %108 : vector<256x8xf32>
    %c0_112 = arith.constant 0 : index
    %c0_113 = arith.constant 0 : index
    %110 = vector.load %arg8[%c0_112, %c0_113] : memref<1x8xf32, #tpu.memory_space<vmem>>, vector<1x8xf32>
    %111 = vector.broadcast %110 : vector<1x8xf32> to vector<256x8xf32>
    %112 = arith.addf %105, %111 : vector<256x8xf32>
    %c0_114 = arith.constant 0 : index
    %c0_115 = arith.constant 0 : index
    %113 = vector.load %arg9[%c0_114, %c0_115] : memref<1x8xf32, #tpu.memory_space<vmem>>, vector<1x8xf32>
    %114 = vector.broadcast %113 : vector<1x8xf32> to vector<256x8xf32>
    %115 = arith.addf %109, %114 : vector<256x8xf32>
    %116 = arith.maximumf %112, %115 : vector<256x8xf32>
    %117 = vector.shape_cast %116 : vector<256x8xf32> to vector<16x16x8xf32>
    %c0_116 = arith.constant 0 : index
    %c0_117 = arith.constant 0 : index
    %c0_118 = arith.constant 0 : index
    %c0_119 = arith.constant 0 : index
    %118 = vector.load %arg10[%c0_116, %c0_117, %c0_118, %c0_119] : memref<1x16x16x8xf32, #tpu.memory_space<vmem>>, vector<1x16x16x8xf32>
    %119 = vector.shape_cast %118 : vector<1x16x16x8xf32> to vector<16x16x8xf32>
    %120 = vector.shape_cast %117 : vector<16x16x8xf32> to vector<1x16x16x8xf32>
    tpu.vector_store %arg10[%c0_116, %c0_117, %c0_118, %c0_119], %120 {strides = array<i32>} : memref<1x16x16x8xf32, #tpu.memory_space<vmem>>, vector<1x16x16x8xf32>,
    return
  }
  func.func @transform_0(%arg0: i32) -> (i32, i32, i32, i32) {
    %c0_i32 = arith.constant 0 : i32
    %c0_i32_0 = arith.constant 0 : i32
    %c0_i32_1 = arith.constant 0 : i32
    %c0_i32_2 = arith.constant 0 : i32
    return %arg0, %c0_i32, %c0_i32_0, %c0_i32_1 : i32, i32, i32, i32
  }
  func.func @transform_1(%arg0: i32) -> (i32, i32) {
    %c0_i32 = arith.constant 0 : i32
    %c0_i32_0 = arith.constant 0 : i32
    %c0_i32_1 = arith.constant 0 : i32
    return %c0_i32, %c0_i32_0 : i32, i32
  }
  func.func @transform_2(%arg0: i32) -> (i32, i32) {
    %c0_i32 = arith.constant 0 : i32
    %c0_i32_0 = arith.constant 0 : i32
    %c0_i32_1 = arith.constant 0 : i32
    return %c0_i32, %c0_i32_0 : i32, i32
  }
  func.func @transform_3(%arg0: i32) -> (i32, i32) {
    %c0_i32 = arith.constant 0 : i32
    %c0_i32_0 = arith.constant 0 : i32
    %c0_i32_1 = arith.constant 0 : i32
    return %c0_i32, %c0_i32_0 : i32, i32
  }
  func.func @transform_4(%arg0: i32) -> (i32, i32) {
    %c0_i32 = arith.constant 0 : i32
    %c0_i32_0 = arith.constant 0 : i32
    %c0_i32_1 = arith.constant 0 : i32
    return %c0_i32, %c0_i32_0 : i32, i32
  }
  func.func @transform_5(%arg0: i32) -> (i32, i32, i32) {
    %c0_i32 = arith.constant 0 : i32
    %c0_i32_0 = arith.constant 0 : i32
    %c0_i32_1 = arith.constant 0 : i32
    %c0_i32_2 = arith.constant 0 : i32
    return %c0_i32, %c0_i32_0, %c0_i32_1 : i32, i32, i32
  }
  func.func @transform_6(%arg0: i32) -> (i32, i32, i32) {
    %c0_i32 = arith.constant 0 : i32
    %c0_i32_0 = arith.constant 0 : i32
    %c0_i32_1 = arith.constant 0 : i32
    %c0_i32_2 = arith.constant 0 : i32
    return %c0_i32, %c0_i32_0, %c0_i32_1 : i32, i32, i32
  }
  func.func @transform_7(%arg0: i32) -> (i32, i32) {
    %c0_i32 = arith.constant 0 : i32
    %c0_i32_0 = arith.constant 0 : i32
    %c0_i32_1 = arith.constant 0 : i32
    return %c0_i32, %c0_i32_0 : i32, i32
  }
  func.func @transform_8(%arg0: i32) -> (i32, i32) {
    %c0_i32 = arith.constant 0 : i32
    %c0_i32_0 = arith.constant 0 : i32
    %c0_i32_1 = arith.constant 0 : i32
    return %c0_i32, %c0_i32_0 : i32, i32
  }
  func.func @transform_9(%arg0: i32) -> (i32, i32, i32, i32) {
    %c0_i32 = arith.constant 0 : i32
    %c0_i32_0 = arith.constant 0 : i32
    %c0_i32_1 = arith.constant 0 : i32
    %c0_i32_2 = arith.constant 0 : i32
    return %arg0, %c0_i32, %c0_i32_0, %c0_i32_1 : i32, i32, i32, i32
  }
}

</mosaic_0001>

<bundles_post_ra>
// kernel: tpu_custom_call.1
= control target key start
LH: loop header
LB: loop body
LE: loop exit
PB: predicated region body
PF: predicated region fallthrough
CT: control target
= control target key end

     0   :  { %s9925_s30 = smov 0   ;;  %s11699_s0 = inlined_call_operand.vmem [shape: f32[2,16,16,4], index: 0, kind: input, shape index: {}]   ;;  %s11700_s1 = inlined_call_operand.vmem [shape: f32[4,4], index: 1, kind: input, shape index: {}]   ;;  %s11701_s2 = inlined_call_operand.vmem [shape: f32[4,4], index: 2, kind: input, shape index: {}]   ;;  %s11702_s3 = inlined_call_operand.vmem [shape: f32[1,4], index: 3, kind: input, shape index: {}]   ;;  %s11703_s4 = inlined_call_operand.vmem [shape: f32[1,4], index: 4, kind: input, shape index: {}]   ;;  %s11704_s5 = inlined_call_operand.vmem [shape: f32[9,4,8], index: 5, kind: input, shape index: {}]   ;;  %s11705_s6 = inlined_call_operand.vmem [shape: f32[9,4,8], index: 6, kind: input, shape index: {}]   ;;  %s11706_s7 = inlined_call_operand.vmem [shape: f32[1,8], index: 7, kind: input, shape index: {}]   ;;  %s11707_s8 = inlined_call_operand.vmem [shape: f32[1,8], index: 8, kind: input, shape index: {}]   ;;  %s11708_s9 = inlined_call_operand.vmem [shape: f32[2,16,16,8], index: 9, kind: output, shape index: {}]  }
   0x1 LB: > { %s6992_s10 = sadd.s32 4294967295, %s9872_s30   ;;  %p6996_p0 = scmp.ge.s32.totalorder %s9872_s30, 1  ;;  %s9872_s30 = sphi %s9925_s30, %s19_s30  }
   0x2   : > { %p287_p1 = scmp.lt.s32.totalorder %s9872_s30, 3 }
   0x4   : > { %p288_p2 = pnand %p6996_p0, %p287_p1 }
   0x6   : > { %291 = sbr.rel (%p288_p2) target bundleno = 1032 (0x408), region = 56 }
   0xd   : > { %v365_v0 = vld [vmem:[%s11700_s1] sm:$0xf]  ;;  %vm470_vm0 = vcmask 1043456   ;;  %p323_p3 = scmp.lt.s32.totalorder %s6992_s10, 1  ;;  %v7069_v2 = vld [vmem:[%s11704_s5 + $0x4] sm:$0xf] }
   0xe   : > { %v699_v1 = vld [vmem:[%s11701_s2] sm:$0xf]  ;;  %8345 = vmatprep.subr.msk.mxu0 %vm470_vm0, %v365_v0  ;;  %v7136_v3 = vld [vmem:[%s11705_s6 + $0x4] sm:$0xf]  ;;  %vm373_vm1 = vcmask 31744   ;;  %vm969_vm2 = vcmask 25600  }
   0xf   : > { %8395 = vmatprep.subr.msk.mxu1 %vm470_vm0, %v699_v1  ;;  %8346 = vmatpush3.msk.msra.mxu0 %vm470_vm0, %v365_v0  ;;  %s11814_s10 = smov (!%p323_p3, %s6992_s10), 1  ;;  %v9874_v34 = vmov 0.0   ;;  %v1087_v39 = vld [vmem:[%s11704_s5] sm:$0xf]  ;;  %v10130_v41 = vld [vmem:[%s11704_s5 + $0x8] sm:$0xf] }
  0x10   : > { %8396 = vmatpush3.msk.msra.mxu1 %vm470_vm0, %v699_v1  ;;  %8445 = vmatprep.subr.msk.mxu0 %vm470_vm0, %v7069_v2  ;;  %s7683_s19 = sshll.u32 %s11814_s10, 8  ;;  %972 = vst.msk [vmem:[#allocation2 + $0x20] sm:$0xff] %vm373_vm1, %v9874_v34  ;;  %967 = vst.msk [vmem:[#allocation2] sm:$0xff] %vm373_vm1, %v9874_v34  ;;  %v1088_v40 = vld [vmem:[%s11705_s6] sm:$0xf]  ;;  %vm6904_vm3 = vcmask 64512  }
  0x11   : > { %8545 = vmatprep.subr.msk.mxu1 %vm470_vm0, %v7136_v3  ;;  %s9959_s22 = scalar_lea.vmem %s11699_s0, %s7683_s19  ;;  %968 = vst.msk [vmem:[#allocation2 + $0x8] sm:$0xff] %vm373_vm1, %v9874_v34  ;;  %971 = vst.msk [vmem:[#allocation2 + $0x18] sm:$0xff] %vm373_vm1, %v9874_v34  ;;  %v10135_v42 = vld [vmem:[%s11705_s6 + $0x8] sm:$0xf]  ;;  %v10144_v43 = vld [vmem:[%s11702_s3] ss:$0 sm:$0xff]  ;;  %s11568_s29 = scalar_lea.vmem %s11708_s9, %s7683_s19 }
  0x12   : > { %v333_v4 = vld [vmem:[%s9959_s22] sm:$0xff]  ;;  %v334_v5 = vld [vmem:[%s9959_s22 + $0x8] sm:$0xff]  ;;  %v335_v6 = vld [vmem:[%s9959_s22 + $0x10] sm:$0xff]  ;;  %974 = vst.msk [vmem:[#allocation2 + $0x30] sm:$0xff] %vm373_vm1, %v9874_v34 }
  0x13   : > { %8347 = vmatprep.mubr.msk.f32.mxu0 %vm373_vm1, %v333_v4  ;;  %8397 = vmatprep.mubr.msk.f32.mxu1 %vm373_vm1, %v333_v4  ;;  %v336_v7 = vld [vmem:[%s9959_s22 + $0x18] sm:$0xff]  ;;  %v337_v8 = vld [vmem:[%s9959_s22 + $0x20] sm:$0xff]  ;;  %v338_v9 = vld [vmem:[%s9959_s22 + $0x28] sm:$0xff]  ;;  %975 = vst.msk [vmem:[#allocation2 + $0x38] sm:$0xff] %vm373_vm1, %v9874_v34 }
  0x14   : > { %8348 = vmatmul.mubr.msk.f32.vlgmr.msra.gmra.mrb[0].mxu0 %vm373_vm1, %v334_v5  ;;  %8398 = vmatmul.mubr.msk.f32.vlgmr.msra.gmra.mrb[0].mxu1 %vm373_vm1, %v334_v5  ;;  %v339_v10 = vld [vmem:[%s9959_s22 + $0x30] sm:$0xff]  ;;  %v340_v11 = vld [vmem:[%s9959_s22 + $0x38] sm:$0xff]  ;;  %v341_v12 = vld [vmem:[%s9959_s22 + $0x40] sm:$0xff]  ;;  %977 = vst.msk [vmem:[#allocation2 + $0x48] sm:$0xff] %vm373_vm1, %v9874_v34 }
  0x15   : > { %8350 = vmatprep.mubr.msk.f32.mxu0 %vm373_vm1, %v335_v6  ;;  %8400 = vmatprep.mubr.msk.f32.mxu1 %vm373_vm1, %v335_v6  ;;  %v342_v13 = vld [vmem:[%s9959_s22 + $0x48] sm:$0xff]  ;;  %v343_v14 = vld [vmem:[%s9959_s22 + $0x50] sm:$0xff]  ;;  %v344_v15 = vld [vmem:[%s9959_s22 + $0x58] sm:$0xff]  ;;  %978 = vst.msk [vmem:[#allocation2 + $0x50] sm:$0xff] %vm373_vm1, %v9874_v34 }
  0x16   : > { %8446 = vmatpush3.msk.msra.mxu0 %vm470_vm0, %v7069_v2  ;;  %8546 = vmatpush3.msk.msra.mxu1 %vm470_vm0, %v7136_v3  ;;  %v345_v16 = vld [vmem:[%s9959_s22 + $0x60] sm:$0xff]  ;;  %v346_v17 = vld [vmem:[%s9959_s22 + $0x68] sm:$0xff]  ;;  %v347_v18 = vld [vmem:[%s9959_s22 + $0x70] sm:$0xff]  ;;  %980 = vst.msk [vmem:[#allocation2 + $0x60] sm:$0xff] %vm373_vm1, %v9874_v34 }
  0x17   : > { %v348_v19 = vld [vmem:[%s9959_s22 + $0x78] sm:$0xff]  ;;  %v349_v20 = vld [vmem:[%s9959_s22 + $0x80] sm:$0xff]  ;;  %v350_v21 = vld [vmem:[%s9959_s22 + $0x88] sm:$0xff]  ;;  %981 = vst.msk [vmem:[#allocation2 + $0x68] sm:$0xff] %vm373_vm1, %v9874_v34  ;;  %8495 = vmatprep.subr.msk.mxu0 %vm470_vm0, %v1087_v39  ;;  %8595 = vmatprep.subr.msk.mxu1 %vm470_vm0, %v1088_v40 }
  0x18   : > { %8351 = vmatmul.mubr.msk.f32.gmra.mrb[2].mxu0 %vm373_vm1, %v336_v7  ;;  %8401 = vmatmul.mubr.msk.f32.gmra.mrb[2].mxu1 %vm373_vm1, %v336_v7  ;;  %v351_v22 = vld [vmem:[%s9959_s22 + $0x90] sm:$0xff]  ;;  %v352_v23 = vld [vmem:[%s9959_s22 + $0x98] sm:$0xff]  ;;  %v353_v24 = vld [vmem:[%s9959_s22 + $0xa0] sm:$0xff]  ;;  %983 = vst.msk [vmem:[#allocation2 + $0x78] sm:$0xff] %vm373_vm1, %v9874_v34 }
  0x19   : > { %8353 = vmatprep.mubr.msk.f32.mxu0 %vm373_vm1, %v337_v8  ;;  %8403 = vmatprep.mubr.msk.f32.mxu1 %vm373_vm1, %v337_v8  ;;  %v354_v25 = vld [vmem:[%s9959_s22 + $0xa8] sm:$0xff]  ;;  %v355_v26 = vld [vmem:[%s9959_s22 + $0xb0] sm:$0xff]  ;;  %v356_v27 = vld [vmem:[%s9959_s22 + $0xb8] sm:$0xff]  ;;  %984 = vst.msk [vmem:[#allocation2 + $0x80] sm:$0xff] %vm373_vm1, %v9874_v34 }
  0x1a   : > { %v357_v28 = vld [vmem:[%s9959_s22 + $0xc0] sm:$0xff]  ;;  %v358_v29 = vld [vmem:[%s9959_s22 + $0xc8] sm:$0xff]  ;;  %v359_v30 = vld [vmem:[%s9959_s22 + $0xd0] sm:$0xff]  ;;  %986 = vst.msk [vmem:[#allocation2 + $0x90] sm:$0xff] %vm373_vm1, %v9874_v34 }
  0x1b   : > { %v360_v31 = vld [vmem:[%s9959_s22 + $0xd8] sm:$0xff]  ;;  %v361_v32 = vld [vmem:[%s9959_s22 + $0xe0] sm:$0xff]  ;;  %v362_v33 = vld [vmem:[%s9959_s22 + $0xe8] sm:$0xff]  ;;  %987 = vst.msk [vmem:[#allocation2 + $0x98] sm:$0xff] %vm373_vm1, %v9874_v34 }
  0x1c   : > { %8354 = vmatmul.mubr.msk.f32.gmra.mrb[4].mxu0 %vm373_vm1, %v338_v9  ;;  %8404 = vmatmul.mubr.msk.f32.gmra.mrb[4].mxu1 %vm373_vm1, %v338_v9  ;;  %989 = vst.msk [vmem:[#allocation2 + $0xa8] sm:$0xff] %vm373_vm1, %v9874_v34  ;;  %990 = vst.msk [vmem:[#allocation2 + $0xb0] sm:$0xff] %vm373_vm1, %v9874_v34  ;;  %v363_v35 = vld [vmem:[%s9959_s22 + $0xf0] sm:$0xff]  ;;  %v364_v36 = vld [vmem:[%s9959_s22 + $0xf8] sm:$0xff] }
  0x1d   : > { %8356 = vmatprep.mubr.msk.f32.mxu0 %vm373_vm1, %v339_v10  ;;  %8406 = vmatprep.mubr.msk.f32.mxu1 %vm373_vm1, %v339_v10  ;;  %992 = vst.msk [vmem:[#allocation2 + $0xc0] sm:$0xff] %vm373_vm1, %v9874_v34  ;;  %993 = vst.msk [vmem:[#allocation2 + $0xc8] sm:$0xff] %vm373_vm1, %v9874_v34  ;;  %v1089_v37 = vld [vmem:[#allocation2 + $0x1] sm:$0xff]  ;;  %v10149_v44 = vld [vmem:[%s11703_s4] ss:$0 sm:$0xff] }
  0x1e   : > { %995 = vst.msk [vmem:[#allocation2 + $0xd8] sm:$0xff] %vm373_vm1, %v9874_v34  ;;  %996 = vst.msk [vmem:[#allocation2 + $0xe0] sm:$0xff] %vm373_vm1, %v9874_v34 }
  0x1f   : > { %998 = vst.msk [vmem:[#allocation2 + $0xf0] sm:$0xff] %vm373_vm1, %v9874_v34  ;;  %999 = vst.msk [vmem:[#allocation2 + $0xf8] sm:$0xff] %vm373_vm1, %v9874_v34 }
  0x20   : > { %8357 = vmatmul.mubr.msk.f32.gmra.mrb[6].mxu0 %vm373_vm1, %v340_v11  ;;  %8407 = vmatmul.mubr.msk.f32.gmra.mrb[6].mxu1 %vm373_vm1, %v340_v11  ;;  %1001 = vst.msk [vmem:[#allocation2 + $0x108] sm:$0xff] %vm373_vm1, %v9874_v34  ;;  %1002 = vst.msk [vmem:[#allocation2 + $0x110] sm:$0xff] %vm373_vm1, %v9874_v34 }
  0x21   : > { %8359 = vmatprep.mubr.msk.f32.mxu0 %vm373_vm1, %v341_v12  ;;  %8409 = vmatprep.mubr.msk.f32.mxu1 %vm373_vm1, %v341_v12  ;;  %1004 = vst.msk [vmem:[#allocation2 + $0x120] sm:$0xff] %vm373_vm1, %v9874_v34  ;;  %1005 = vst.msk [vmem:[#allocation2 + $0x128] sm:$0xff] %vm373_vm1, %v9874_v34 }
  0x22   : > { %1007 = vst.msk [vmem:[#allocation2 + $0x138] sm:$0xff] %vm373_vm1, %v9874_v34  ;;  %1008 = vst.msk [vmem:[#allocation2 + $0x140] sm:$0xff] %vm373_vm1, %v9874_v34 }
  0x23   : > { %1010 = vst.msk [vmem:[#allocation2 + $0x150] sm:$0xff] %vm373_vm1, %v9874_v34  ;;  %1011 = vst.msk [vmem:[#allocation2 + $0x158] sm:$0xff] %vm373_vm1, %v9874_v34 }
  0x24   : > { %8360 = vmatmul.mubr.msk.f32.gmra.mrb[8].mxu0 %vm373_vm1, %v342_v13  ;;  %8410 = vmatmul.mubr.msk.f32.gmra.mrb[8].mxu1 %vm373_vm1, %v342_v13  ;;  %1013 = vst.msk [vmem:[#allocation2 + $0x168] sm:$0xff] %vm373_vm1, %v9874_v34  ;;  %1014 = vst.msk [vmem:[#allocation2 + $0x170] sm:$0xff] %vm373_vm1, %v9874_v34 }
  0x25   : > { %8362 = vmatprep.mubr.msk.f32.mxu0 %vm373_vm1, %v343_v14  ;;  %8412 = vmatprep.mubr.msk.f32.mxu1 %vm373_vm1, %v343_v14  ;;  %1016 = vst.msk [vmem:[#allocation2 + $0x180] sm:$0xff] %vm373_vm1, %v9874_v34  ;;  %1017 = vst.msk [vmem:[#allocation2 + $0x188] sm:$0xff] %vm373_vm1, %v9874_v34 }
  0x26   : > { %1019 = vst.msk [vmem:[#allocation2 + $0x198] sm:$0xff] %vm373_vm1, %v9874_v34  ;;  %1020 = vst.msk [vmem:[#allocation2 + $0x1a0] sm:$0xff] %vm373_vm1, %v9874_v34 }
  0x27   : > { %973 = vst.msk [vmem:[#allocation2 + $0x28] sm:$0x3] %vm969_vm2, %v9874_v34  ;;  %970 = vst.msk [vmem:[#allocation2 + $0x10] sm:$0x3] %vm969_vm2, %v9874_v34 }
  0x28   : > { %8363 = vmatmul.mubr.msk.f32.gmra.mrb[10].mxu0 %vm373_vm1, %v344_v15  ;;  %8413 = vmatmul.mubr.msk.f32.gmra.mrb[10].mxu1 %vm373_vm1, %v344_v15  ;;  %976 = vst.msk [vmem:[#allocation2 + $0x40] sm:$0x3] %vm969_vm2, %v9874_v34  ;;  %979 = vst.msk [vmem:[#allocation2 + $0x58] sm:$0x3] %vm969_vm2, %v9874_v34 }
  0x29   : > { %8365 = vmatprep.mubr.msk.f32.mxu0 %vm373_vm1, %v345_v16  ;;  %8415 = vmatprep.mubr.msk.f32.mxu1 %vm373_vm1, %v345_v16  ;;  %982 = vst.msk [vmem:[#allocation2 + $0x70] sm:$0x3] %vm969_vm2, %v9874_v34  ;;  %985 = vst.msk [vmem:[#allocation2 + $0x88] sm:$0x3] %vm969_vm2, %v9874_v34 }
  0x2a   : > { %988 = vst.msk [vmem:[#allocation2 + $0xa0] sm:$0x3] %vm969_vm2, %v9874_v34  ;;  %991 = vst.msk [vmem:[#allocation2 + $0xb8] sm:$0x3] %vm969_vm2, %v9874_v34 }
  0x2b   : > { %994 = vst.msk [vmem:[#allocation2 + $0xd0] sm:$0x3] %vm969_vm2, %v9874_v34  ;;  %997 = vst.msk [vmem:[#allocation2 + $0xe8] sm:$0x3] %vm969_vm2, %v9874_v34 }
  0x2c   : > { %8366 = vmatmul.mubr.msk.f32.gmra.mrb[12].mxu0 %vm373_vm1, %v346_v17  ;;  %8416 = vmatmul.mubr.msk.f32.gmra.mrb[12].mxu1 %vm373_vm1, %v346_v17  ;;  %1000 = vst.msk [vmem:[#allocation2 + $0x100] sm:$0x3] %vm969_vm2, %v9874_v34  ;;  %1003 = vst.msk [vmem:[#allocation2 + $0x118] sm:$0x3] %vm969_vm2, %v9874_v34 }
  0x2d   : > { %8368 = vmatprep.mubr.msk.f32.mxu0 %vm373_vm1, %v347_v18  ;;  %8418 = vmatprep.mubr.msk.f32.mxu1 %vm373_vm1, %v347_v18  ;;  %1006 = vst.msk [vmem:[#allocation2 + $0x130] sm:$0x3] %vm969_vm2, %v9874_v34  ;;  %1009 = vst.msk [vmem:[#allocation2 + $0x148] sm:$0x3] %vm969_vm2, %v9874_v34 }
  0x2e   : > { %1012 = vst.msk [vmem:[#allocation2 + $0x160] sm:$0x3] %vm969_vm2, %v9874_v34  ;;  %1015 = vst.msk [vmem:[#allocation2 + $0x178] sm:$0x3] %vm969_vm2, %v9874_v34  ;;  %v1090_v38 = vld [vmem:[#allocation2 + $0x9] sm:$0xff] }
  0x2f   : > { %1018 = vst.msk [vmem:[#allocation2 + $0x190] sm:$0x3] %vm969_vm2, %v9874_v34  ;;  %1021 = vst.msk [vmem:[#allocation2 + $0x1a8] sm:$0x3] %vm969_vm2, %v9874_v34 }
  0x30   : > { %8369 = vmatmul.mubr.msk.f32.gmra.mrb[14].mxu0 %vm373_vm1, %v348_v19  ;;  %8419 = vmatmul.mubr.msk.f32.gmra.mrb[14].mxu1 %vm373_vm1, %v348_v19 }
  0x31   : > { %8371 = vmatprep.mubr.msk.f32.mxu0 %vm373_vm1, %v349_v20  ;;  %8421 = vmatprep.mubr.msk.f32.mxu1 %vm373_vm1, %v349_v20 }
  0x34   : > { %8372 = vmatmul.mubr.msk.f32.gmra.mrb[16].mxu0 %vm373_vm1, %v350_v21  ;;  %8422 = vmatmul.mubr.msk.f32.gmra.mrb[16].mxu1 %vm373_vm1, %v350_v21 }
  0x35   : > { %8374 = vmatprep.mubr.msk.f32.mxu0 %vm373_vm1, %v351_v22  ;;  %8424 = vmatprep.mubr.msk.f32.mxu1 %vm373_vm1, %v351_v22 }
  0x38   : > { %8375 = vmatmul.mubr.msk.f32.gmra.mrb[18].mxu0 %vm373_vm1, %v352_v23  ;;  %8425 = vmatmul.mubr.msk.f32.gmra.mrb[18].mxu1 %vm373_vm1, %v352_v23 }
  0x39   : > { %8377 = vmatprep.mubr.msk.f32.mxu0 %vm373_vm1, %v353_v24  ;;  %8427 = vmatprep.mubr.msk.f32.mxu1 %vm373_vm1, %v353_v24 }
  0x3c   : > { %8378 = vmatmul.mubr.msk.f32.gmra.mrb[20].mxu0 %vm373_vm1, %v354_v25  ;;  %8428 = vmatmul.mubr.msk.f32.gmra.mrb[20].mxu1 %vm373_vm1, %v354_v25 }
  0x3d   : > { %8380 = vmatprep.mubr.msk.f32.mxu0 %vm373_vm1, %v355_v26  ;;  %8430 = vmatprep.mubr.msk.f32.mxu1 %vm373_vm1, %v355_v26 }
  0x40   : > { %8381 = vmatmul.mubr.msk.f32.gmra.mrb[22].mxu0 %vm373_vm1, %v356_v27  ;;  %8431 = vmatmul.mubr.msk.f32.gmra.mrb[22].mxu1 %vm373_vm1, %v356_v27 }
  0x41   : > { %8383 = vmatprep.mubr.msk.f32.mxu0 %vm373_vm1, %v357_v28  ;;  %8433 = vmatprep.mubr.msk.f32.mxu1 %vm373_vm1, %v357_v28 }
  0x44   : > { %8384 = vmatmul.mubr.msk.f32.gmra.mrb[24].mxu0 %vm373_vm1, %v358_v29  ;;  %8434 = vmatmul.mubr.msk.f32.gmra.mrb[24].mxu1 %vm373_vm1, %v358_v29 }
  0x45   : > { %8386 = vmatprep.mubr.msk.f32.mxu0 %vm373_vm1, %v359_v30  ;;  %8436 = vmatprep.mubr.msk.f32.mxu1 %vm373_vm1, %v359_v30 }
  0x48   : > { %8387 = vmatmul.mubr.msk.f32.gmra.mrb[26].mxu0 %vm373_vm1, %v360_v31  ;;  %8437 = vmatmul.mubr.msk.f32.gmra.mrb[26].mxu1 %vm373_vm1, %v360_v31 }
  0x49   : > { %8389 = vmatprep.mubr.msk.f32.mxu0 %vm373_vm1, %v361_v32  ;;  %8439 = vmatprep.mubr.msk.f32.mxu1 %vm373_vm1, %v361_v32 }
  0x4c   : > { %8390 = vmatmul.mubr.msk.f32.gmra.mrb[28].mxu0 %vm373_vm1, %v362_v33  ;;  %8440 = vmatmul.mubr.msk.f32.gmra.mrb[28].mxu1 %vm373_vm1, %v362_v33 }
  0x4d   : > { %8392 = vmatprep.mubr.msk.f32.mxu0 %vm373_vm1, %v363_v35  ;;  %8442 = vmatprep.mubr.msk.f32.mxu1 %vm373_vm1, %v363_v35 }
  0x50   : > { %8393 = vmatmul.mubr.msk.f32.gmra.mrb[30].mxu0 %vm373_vm1, %v364_v36  ;;  %8443 = vmatmul.mubr.msk.f32.gmra.mrb[30].mxu1 %vm373_vm1, %v364_v36 }
  0x51   : > { %8447 = vmatprep.mubr.msk.f32.mxu0 %vm373_vm1, %v1089_v37  ;;  %8547 = vmatprep.mubr.msk.f32.mxu1 %vm373_vm1, %v1089_v37 }
  0x54   : > { %8448 = vmatmul.mubr.msk.f32.vlgmr.msra.gmra.mrb[32].mxu0 %vm373_vm1, %v1090_v38  ;;  %8548 = vmatmul.mubr.msk.f32.vlgmr.msra.gmra.mrb[32].mxu1 %vm373_vm1, %v1090_v38 }
  0x55   : > { %8496 = vmatpush3.msk.msra.mxu0 %vm470_vm0, %v1087_v39  ;;  %8596 = vmatpush3.msk.msra.mxu1 %vm470_vm0, %v1088_v40 }
  0x56   : > { %8645 = vmatprep.subr.msk.mxu0 %vm470_vm0, %v10130_v41  ;;  %8695 = vmatprep.subr.msk.mxu1 %vm470_vm0, %v10135_v42 }
  0xe7   : > { %v8349_v45 = vpop.f32.mrb[0].mxu0  ;;  %v8399_v46 = vpop.f32.mrb[0].mxu1 }
  0xe8   : > { %v546_v47 = vadd.f32 %v8349_v45, %v10144_v43  ;;  %v782_v48 = vadd.f32 %v8399_v46, %v10149_v44  ;;  %v540_v49 = vpop.f32.mrb[1].mxu0  ;;  %v776_v50 = vpop.f32.mrb[1].mxu1 }
  0xe9   : > { %v541_v51 = vadd.f32 %v10144_v43, %v540_v49  ;;  %v777_v52 = vadd.f32 %v10149_v44, %v776_v50 }
  0xea   : > { %v936_v53 = vmax.f32 %v546_v47, %v782_v48 }
  0xeb   : > { %v935_v54 = vmax.f32 %v541_v51, %v777_v52  ;;  %v8352_v55 = vpop.f32.mrb[2].mxu0  ;;  %v8402_v56 = vpop.f32.mrb[2].mxu1 }
  0xec   : > { %1024 = vst.msk [vmem:[#allocation2 + $0x21] sm:$0xff] %vm373_vm1, %v936_v53  ;;  %v556_v57 = vadd.f32 %v8352_v55, %v10144_v43  ;;  %v792_v58 = vadd.f32 %v8402_v56, %v10149_v44  ;;  %v550_v59 = vpop.f32.mrb[3].mxu0  ;;  %v786_v60 = vpop.f32.mrb[3].mxu1 }
  0xed   : > { %1023 = vst.msk [vmem:[#allocation2 + $0x19] sm:$0xff] %vm373_vm1, %v935_v54  ;;  %v551_v61 = vadd.f32 %v10144_v43, %v550_v59  ;;  %v787_v62 = vadd.f32 %v10149_v44, %v786_v60 }
  0xee   : > { %v938_v63 = vmax.f32 %v556_v57, %v792_v58 }
  0xef   : > { %v937_v0 = vmax.f32 %v551_v61, %v787_v62  ;;  %v8355_v1 = vpop.f32.mrb[4].mxu0  ;;  %v8405_v2 = vpop.f32.mrb[4].mxu1 }
  0xf0   : > { %1026 = vst.msk [vmem:[#allocation2 + $0x39] sm:$0xff] %vm373_vm1, %v938_v63  ;;  %v566_v3 = vadd.f32 %v8355_v1, %v10144_v43  ;;  %v802_v4 = vadd.f32 %v8405_v2, %v10149_v44  ;;  %v560_v5 = vpop.f32.mrb[5].mxu0  ;;  %v796_v6 = vpop.f32.mrb[5].mxu1 }
  0xf1   : > { %1025 = vst.msk [vmem:[#allocation2 + $0x31] sm:$0xff] %vm373_vm1, %v937_v0  ;;  %v561_v7 = vadd.f32 %v10144_v43, %v560_v5  ;;  %v797_v8 = vadd.f32 %v10149_v44, %v796_v6 }
  0xf2   : > { %v940_v9 = vmax.f32 %v566_v3, %v802_v4 }
  0xf3   : > { %v939_v10 = vmax.f32 %v561_v7, %v797_v8  ;;  %v8358_v11 = vpop.f32.mrb[6].mxu0  ;;  %v8408_v12 = vpop.f32.mrb[6].mxu1  ;;  %v1092_v20 = vld [vmem:[#allocation2 + $0x21] sm:$0xff] }
  0xf4   : > { %1028 = vst.msk [vmem:[#allocation2 + $0x51] sm:$0xff] %vm373_vm1, %v940_v9  ;;  %v576_v13 = vadd.f32 %v8358_v11, %v10144_v43  ;;  %v812_v14 = vadd.f32 %v8408_v12, %v10149_v44  ;;  %v570_v15 = vpop.f32.mrb[7].mxu0  ;;  %v806_v16 = vpop.f32.mrb[7].mxu1  ;;  %v1091_v17 = vld [vmem:[#allocation2 + $0x19] sm:$0xff] }
  0xf5   : > { %1027 = vst.msk [vmem:[#allocation2 + $0x49] sm:$0xff] %vm373_vm1, %v939_v10  ;;  %v571_v18 = vadd.f32 %v10144_v43, %v570_v15  ;;  %v807_v19 = vadd.f32 %v10149_v44, %v806_v16  ;;  %8450 = vmatprep.mubr.msk.f32.mxu0 %vm373_vm1, %v1091_v17  ;;  %8550 = vmatprep.mubr.msk.f32.mxu1 %vm373_vm1, %v1091_v17 }
  0xf6   : > { %v942_v21 = vmax.f32 %v576_v13, %v812_v14  ;;  %8451 = vmatmul.mubr.msk.f32.gmra.mrb[34].mxu0 %vm373_vm1, %v1092_v20  ;;  %8551 = vmatmul.mubr.msk.f32.gmra.mrb[34].mxu1 %vm373_vm1, %v1092_v20 }
  0xf7   : > { %v941_v22 = vmax.f32 %v571_v18, %v807_v19  ;;  %v8361_v23 = vpop.f32.mrb[8].mxu0  ;;  %v8411_v24 = vpop.f32.mrb[8].mxu1  ;;  %v1094_v32 = vld [vmem:[#allocation2 + $0x39] sm:$0xff] }
  0xf8   : > { %1030 = vst.msk [vmem:[#allocation2 + $0x69] sm:$0xff] %vm373_vm1, %v942_v21  ;;  %v586_v25 = vadd.f32 %v8361_v23, %v10144_v43  ;;  %v822_v26 = vadd.f32 %v8411_v24, %v10149_v44  ;;  %v580_v27 = vpop.f32.mrb[9].mxu0  ;;  %v816_v28 = vpop.f32.mrb[9].mxu1  ;;  %v1093_v29 = vld [vmem:[#allocation2 + $0x31] sm:$0xff] }
  0xf9   : > { %1029 = vst.msk [vmem:[#allocation2 + $0x61] sm:$0xff] %vm373_vm1, %v941_v22  ;;  %v581_v30 = vadd.f32 %v10144_v43, %v580_v27  ;;  %v817_v31 = vadd.f32 %v10149_v44, %v816_v28  ;;  %8453 = vmatprep.mubr.msk.f32.mxu0 %vm373_vm1, %v1093_v29  ;;  %8553 = vmatprep.mubr.msk.f32.mxu1 %vm373_vm1, %v1093_v29 }
  0xfa   : > { %v944_v33 = vmax.f32 %v586_v25, %v822_v26  ;;  %8454 = vmatmul.mubr.msk.f32.gmra.mrb[36].mxu0 %vm373_vm1, %v1094_v32  ;;  %8554 = vmatmul.mubr.msk.f32.gmra.mrb[36].mxu1 %vm373_vm1, %v1094_v32 }
  0xfb   : > { %v943_v34 = vmax.f32 %v581_v30, %v817_v31  ;;  %v8364_v35 = vpop.f32.mrb[10].mxu0  ;;  %v8414_v36 = vpop.f32.mrb[10].mxu1  ;;  %v1096_v48 = vld [vmem:[#allocation2 + $0x51] sm:$0xff] }
  0xfc   : > { %1032 = vst.msk [vmem:[#allocation2 + $0x81] sm:$0xff] %vm373_vm1, %v944_v33  ;;  %v596_v37 = vadd.f32 %v8364_v35, %v10144_v43  ;;  %v832_v38 = vadd.f32 %v8414_v36, %v10149_v44  ;;  %v590_v39 = vpop.f32.mrb[11].mxu0  ;;  %v826_v40 = vpop.f32.mrb[11].mxu1  ;;  %v1095_v45 = vld [vmem:[#allocation2 + $0x49] sm:$0xff] }
  0xfd   : > { %1031 = vst.msk [vmem:[#allocation2 + $0x79] sm:$0xff] %vm373_vm1, %v943_v34  ;;  %v591_v46 = vadd.f32 %v10144_v43, %v590_v39  ;;  %v827_v47 = vadd.f32 %v10149_v44, %v826_v40  ;;  %8456 = vmatprep.mubr.msk.f32.mxu0 %vm373_vm1, %v1095_v45  ;;  %8556 = vmatprep.mubr.msk.f32.mxu1 %vm373_vm1, %v1095_v45 }
  0xfe   : > { %v946_v49 = vmax.f32 %v596_v37, %v832_v38  ;;  %8457 = vmatmul.mubr.msk.f32.gmra.mrb[38].mxu0 %vm373_vm1, %v1096_v48  ;;  %8557 = vmatmul.mubr.msk.f32.gmra.mrb[38].mxu1 %vm373_vm1, %v1096_v48 }
  0xff   : > { %v945_v50 = vmax.f32 %v591_v46, %v827_v47  ;;  %v8367_v51 = vpop.f32.mrb[12].mxu0  ;;  %v8417_v52 = vpop.f32.mrb[12].mxu1  ;;  %v10209_v60 = vld [vmem:[#allocation2 + $0x69] sm:$0xff] }
 0x100   : > { %1034 = vst.msk [vmem:[#allocation2 + $0x99] sm:$0xff] %vm373_vm1, %v946_v49  ;;  %v606_v53 = vadd.f32 %v8367_v51, %v10144_v43  ;;  %v842_v54 = vadd.f32 %v8417_v52, %v10149_v44  ;;  %v600_v55 = vpop.f32.mrb[13].mxu0  ;;  %v836_v56 = vpop.f32.mrb[13].mxu1  ;;  %v10200_v57 = vld [vmem:[#allocation2 + $0x61] sm:$0xff] }
 0x101   : > { %1033 = vst.msk [vmem:[#allocation2 + $0x91] sm:$0xff] %vm373_vm1, %v945_v50  ;;  %v601_v58 = vadd.f32 %v10144_v43, %v600_v55  ;;  %v837_v59 = vadd.f32 %v10149_v44, %v836_v56  ;;  %8459 = vmatprep.mubr.msk.f32.mxu0 %vm373_vm1, %v10200_v57  ;;  %8559 = vmatprep.mubr.msk.f32.mxu1 %vm373_vm1, %v10200_v57 }
 0x102   : > { %v948_v61 = vmax.f32 %v606_v53, %v842_v54  ;;  %8460 = vmatmul.mubr.msk.f32.gmra.mrb[40].mxu0 %vm373_vm1, %v10209_v60  ;;  %8560 = vmatmul.mubr.msk.f32.gmra.mrb[40].mxu1 %vm373_vm1, %v10209_v60 }
 0x103   : > { %v947_v62 = vmax.f32 %v601_v58, %v837_v59  ;;  %v8370_v63 = vpop.f32.mrb[14].mxu0  ;;  %v8420_v0 = vpop.f32.mrb[14].mxu1  ;;  %v10227_v8 = vld [vmem:[#allocation2 + $0x81] sm:$0xff] }
 0x104   : > { %1036 = vst.msk [vmem:[#allocation2 + $0xb1] sm:$0xff] %vm373_vm1, %v948_v61  ;;  %v616_v1 = vadd.f32 %v8370_v63, %v10144_v43  ;;  %v852_v2 = vadd.f32 %v8420_v0, %v10149_v44  ;;  %v610_v3 = vpop.f32.mrb[15].mxu0  ;;  %v846_v4 = vpop.f32.mrb[15].mxu1  ;;  %v10218_v5 = vld [vmem:[#allocation2 + $0x79] sm:$0xff] }
 0x105   : > { %1035 = vst.msk [vmem:[#allocation2 + $0xa9] sm:$0xff] %vm373_vm1, %v947_v62  ;;  %v611_v6 = vadd.f32 %v10144_v43, %v610_v3  ;;  %v847_v7 = vadd.f32 %v10149_v44, %v846_v4  ;;  %8462 = vmatprep.mubr.msk.f32.mxu0 %vm373_vm1, %v10218_v5  ;;  %8562 = vmatprep.mubr.msk.f32.mxu1 %vm373_vm1, %v10218_v5 }
 0x106   : > { %v950_v9 = vmax.f32 %v616_v1, %v852_v2  ;;  %8463 = vmatmul.mubr.msk.f32.gmra.mrb[42].mxu0 %vm373_vm1, %v10227_v8  ;;  %8563 = vmatmul.mubr.msk.f32.gmra.mrb[42].mxu1 %vm373_vm1, %v10227_v8 }
 0x107   : > { %v949_v10 = vmax.f32 %v611_v6, %v847_v7  ;;  %v8373_v11 = vpop.f32.mrb[16].mxu0  ;;  %v8423_v12 = vpop.f32.mrb[16].mxu1  ;;  %v10245_v20 = vld [vmem:[#allocation2 + $0x99] sm:$0xff] }
 0x108   : > { %1038 = vst.msk [vmem:[#allocation2 + $0xc9] sm:$0xff] %vm373_vm1, %v950_v9  ;;  %v626_v13 = vadd.f32 %v8373_v11, %v10144_v43  ;;  %v862_v14 = vadd.f32 %v8423_v12, %v10149_v44  ;;  %v620_v15 = vpop.f32.mrb[17].mxu0  ;;  %v856_v16 = vpop.f32.mrb[17].mxu1  ;;  %v10236_v17 = vld [vmem:[#allocation2 + $0x91] sm:$0xff] }
 0x109   : > { %1037 = vst.msk [vmem:[#allocation2 + $0xc1] sm:$0xff] %vm373_vm1, %v949_v10  ;;  %v621_v18 = vadd.f32 %v10144_v43, %v620_v15  ;;  %v857_v19 = vadd.f32 %v10149_v44, %v856_v16  ;;  %8465 = vmatprep.mubr.msk.f32.mxu0 %vm373_vm1, %v10236_v17  ;;  %8565 = vmatprep.mubr.msk.f32.mxu1 %vm373_vm1, %v10236_v17 }
 0x10a   : > { %v952_v21 = vmax.f32 %v626_v13, %v862_v14  ;;  %8466 = vmatmul.mubr.msk.f32.gmra.mrb[44].mxu0 %vm373_vm1, %v10245_v20  ;;  %8566 = vmatmul.mubr.msk.f32.gmra.mrb[44].mxu1 %vm373_vm1, %v10245_v20 }
 0x10b   : > { %v951_v22 = vmax.f32 %v621_v18, %v857_v19  ;;  %v8376_v23 = vpop.f32.mrb[18].mxu0  ;;  %v8426_v24 = vpop.f32.mrb[18].mxu1  ;;  %v10263_v32 = vld [vmem:[#allocation2 + $0xb1] sm:$0xff] }
 0x10c   : > { %1040 = vst.msk [vmem:[#allocation2 + $0xe1] sm:$0xff] %vm373_vm1, %v952_v21  ;;  %v636_v25 = vadd.f32 %v8376_v23, %v10144_v43  ;;  %v872_v26 = vadd.f32 %v8426_v24, %v10149_v44  ;;  %v630_v27 = vpop.f32.mrb[19].mxu0  ;;  %v866_v28 = vpop.f32.mrb[19].mxu1  ;;  %v10254_v29 = vld [vmem:[#allocation2 + $0xa9] sm:$0xff] }
 0x10d   : > { %1039 = vst.msk [vmem:[#allocation2 + $0xd9] sm:$0xff] %vm373_vm1, %v951_v22  ;;  %v631_v30 = vadd.f32 %v10144_v43, %v630_v27  ;;  %v867_v31 = vadd.f32 %v10149_v44, %v866_v28  ;;  %8468 = vmatprep.mubr.msk.f32.mxu0 %vm373_vm1, %v10254_v29  ;;  %8568 = vmatprep.mubr.msk.f32.mxu1 %vm373_vm1, %v10254_v29 }
 0x10e   : > { %v954_v33 = vmax.f32 %v636_v25, %v872_v26  ;;  %8469 = vmatmul.mubr.msk.f32.gmra.mrb[46].mxu0 %vm373_vm1, %v10263_v32  ;;  %8569 = vmatmul.mubr.msk.f32.gmra.mrb[46].mxu1 %vm373_vm1, %v10263_v32 }
 0x10f   : > { %v953_v34 = vmax.f32 %v631_v30, %v867_v31  ;;  %v8379_v35 = vpop.f32.mrb[20].mxu0  ;;  %v8429_v36 = vpop.f32.mrb[20].mxu1  ;;  %v10281_v48 = vld [vmem:[#allocation2 + $0xc9] sm:$0xff] }
 0x110   : > { %1042 = vst.msk [vmem:[#allocation2 + $0xf9] sm:$0xff] %vm373_vm1, %v954_v33  ;;  %v646_v37 = vadd.f32 %v8379_v35, %v10144_v43  ;;  %v882_v38 = vadd.f32 %v8429_v36, %v10149_v44  ;;  %v640_v39 = vpop.f32.mrb[21].mxu0  ;;  %v876_v40 = vpop.f32.mrb[21].mxu1  ;;  %v10272_v45 = vld [vmem:[#allocation2 + $0xc1] sm:$0xff] }
 0x111   : > { %1041 = vst.msk [vmem:[#allocation2 + $0xf1] sm:$0xff] %vm373_vm1, %v953_v34  ;;  %v641_v46 = vadd.f32 %v10144_v43, %v640_v39  ;;  %v877_v47 = vadd.f32 %v10149_v44, %v876_v40  ;;  %8471 = vmatprep.mubr.msk.f32.mxu0 %vm373_vm1, %v10272_v45  ;;  %8571 = vmatprep.mubr.msk.f32.mxu1 %vm373_vm1, %v10272_v45 }
 0x112   : > { %v956_v49 = vmax.f32 %v646_v37, %v882_v38  ;;  %8472 = vmatmul.mubr.msk.f32.gmra.mrb[48].mxu0 %vm373_vm1, %v10281_v48  ;;  %8572 = vmatmul.mubr.msk.f32.gmra.mrb[48].mxu1 %vm373_vm1, %v10281_v48 }
 0x113   : > { %v955_v50 = vmax.f32 %v641_v46, %v877_v47  ;;  %v8382_v51 = vpop.f32.mrb[22].mxu0  ;;  %v8432_v52 = vpop.f32.mrb[22].mxu1  ;;  %v10299_v62 = vld [vmem:[#allocation2 + $0xe1] sm:$0xff] }
 0x114   : > { %1044 = vst.msk [vmem:[#allocation2 + $0x111] sm:$0xff] %vm373_vm1, %v956_v49  ;;  %v656_v53 = vadd.f32 %v8382_v51, %v10144_v43  ;;  %v892_v54 = vadd.f32 %v8432_v52, %v10149_v44  ;;  %v650_v55 = vpop.f32.mrb[23].mxu0  ;;  %v886_v56 = vpop.f32.mrb[23].mxu1  ;;  %v10290_v58 = vld [vmem:[#allocation2 + $0xd9] sm:$0xff] }
 0x115   : > { %1043 = vst.msk [vmem:[#allocation2 + $0x109] sm:$0xff] %vm373_vm1, %v955_v50  ;;  %v651_v59 = vadd.f32 %v10144_v43, %v650_v55  ;;  %v887_v61 = vadd.f32 %v10149_v44, %v886_v56  ;;  %8474 = vmatprep.mubr.msk.f32.mxu0 %vm373_vm1, %v10290_v58  ;;  %8574 = vmatprep.mubr.msk.f32.mxu1 %vm373_vm1, %v10290_v58  ;;  %v1056_v56 = vld [vmem:[#allocation2 + $0x8] sm:$0xff] }
 0x116   : > { %v958_v63 = vmax.f32 %v656_v53, %v892_v54  ;;  %8475 = vmatmul.mubr.msk.f32.gmra.mrb[50].mxu0 %vm373_vm1, %v10299_v62  ;;  %8575 = vmatmul.mubr.msk.f32.gmra.mrb[50].mxu1 %vm373_vm1, %v10299_v62  ;;  %v1055_v54 = vld [vmem:[#allocation2] sm:$0xff] }
 0x117   : > { %v957_v0 = vmax.f32 %v651_v59, %v887_v61  ;;  %v8385_v1 = vpop.f32.mrb[24].mxu0  ;;  %v8435_v2 = vpop.f32.mrb[24].mxu1  ;;  %v10317_v12 = vld [vmem:[#allocation2 + $0xf9] sm:$0xff]  ;;  %v10404_v59 = vld [vmem:[%s11704_s5 + $0xc] sm:$0xf] }
 0x118   : > { %1046 = vst.msk [vmem:[#allocation2 + $0x129] sm:$0xff] %vm373_vm1, %v958_v63  ;;  %v666_v3 = vadd.f32 %v8385_v1, %v10144_v43  ;;  %v902_v4 = vadd.f32 %v8435_v2, %v10149_v44  ;;  %v660_v6 = vpop.f32.mrb[25].mxu0  ;;  %v896_v7 = vpop.f32.mrb[25].mxu1  ;;  %v10308_v9 = vld [vmem:[#allocation2 + $0xf1] sm:$0xff]  ;;  %v10409_v61 = vld [vmem:[%s11705_s6 + $0xc] sm:$0xf] }
 0x119   : > { %1045 = vst.msk [vmem:[#allocation2 + $0x121] sm:$0xff] %vm373_vm1, %v957_v0  ;;  %v661_v10 = vadd.f32 %v10144_v43, %v660_v6  ;;  %v897_v11 = vadd.f32 %v10149_v44, %v896_v7  ;;  %8477 = vmatprep.mubr.msk.f32.mxu0 %vm373_vm1, %v10308_v9  ;;  %8577 = vmatprep.mubr.msk.f32.mxu1 %vm373_vm1, %v10308_v9  ;;  %v10415_v63 = vld [vmem:[#allocation2 + $0x18] sm:$0xff]  ;;  %v10421_v0 = vld [vmem:[#allocation2 + $0x20] sm:$0xff]  ;;  %v10443_v1 = vld [vmem:[#allocation2 + $0x48] sm:$0xff] }
 0x11a   : > { %v960_v13 = vmax.f32 %v666_v3, %v902_v4  ;;  %8478 = vmatmul.mubr.msk.f32.gmra.mrb[52].mxu0 %vm373_vm1, %v10317_v12  ;;  %8578 = vmatmul.mubr.msk.f32.gmra.mrb[52].mxu1 %vm373_vm1, %v10317_v12  ;;  %v10449_v2 = vld [vmem:[#allocation2 + $0x50] sm:$0xff]  ;;  %v10455_v3 = vld [vmem:[#allocation2 + $0x60] sm:$0xff]  ;;  %v10461_v7 = vld [vmem:[#allocation2 + $0x68] sm:$0xff] }
 0x11b   : > { %v959_v14 = vmax.f32 %v661_v10, %v897_v11  ;;  %v8388_v15 = vpop.f32.mrb[26].mxu0  ;;  %v8438_v16 = vpop.f32.mrb[26].mxu1  ;;  %v10335_v26 = vld [vmem:[#allocation2 + $0x111] sm:$0xff] }
 0x11c   : > { %1048 = vst.msk [vmem:[#allocation2 + $0x141] sm:$0xff] %vm373_vm1, %v960_v13  ;;  %v676_v18 = vadd.f32 %v8388_v15, %v10144_v43  ;;  %v912_v19 = vadd.f32 %v8438_v16, %v10149_v44  ;;  %v670_v21 = vpop.f32.mrb[27].mxu0  ;;  %v906_v22 = vpop.f32.mrb[27].mxu1  ;;  %v10326_v23 = vld [vmem:[#allocation2 + $0x109] sm:$0xff]  ;;  %v10469_v15 = vld [vmem:[#allocation2 + $0x78] sm:$0xff] }
 0x11d   : > { %1047 = vst.msk [vmem:[#allocation2 + $0x139] sm:$0xff] %vm373_vm1, %v959_v14  ;;  %v671_v24 = vadd.f32 %v10144_v43, %v670_v21  ;;  %v907_v25 = vadd.f32 %v10149_v44, %v906_v22  ;;  %8480 = vmatprep.mubr.msk.f32.mxu0 %vm373_vm1, %v10326_v23  ;;  %8580 = vmatprep.mubr.msk.f32.mxu1 %vm373_vm1, %v10326_v23  ;;  %v10477_v22 = vld [vmem:[#allocation2 + $0x80] sm:$0xff] }
 0x11e   : > { %v962_v27 = vmax.f32 %v676_v18, %v912_v19  ;;  %8481 = vmatmul.mubr.msk.f32.gmra.mrb[54].mxu0 %vm373_vm1, %v10335_v26  ;;  %8581 = vmatmul.mubr.msk.f32.gmra.mrb[54].mxu1 %vm373_vm1, %v10335_v26 }
 0x11f   : > { %v961_v28 = vmax.f32 %v671_v24, %v907_v25  ;;  %v8391_v30 = vpop.f32.mrb[28].mxu0  ;;  %v8441_v31 = vpop.f32.mrb[28].mxu1  ;;  %v10353_v40 = vld [vmem:[#allocation2 + $0x129] sm:$0xff] }
 0x120   : > { %1050 = vst.msk [vmem:[#allocation2 + $0x159] sm:$0xff] %vm373_vm1, %v962_v27  ;;  %v686_v33 = vadd.f32 %v8391_v30, %v10144_v43  ;;  %v922_v34 = vadd.f32 %v8441_v31, %v10149_v44  ;;  %v680_v35 = vpop.f32.mrb[29].mxu0  ;;  %v916_v36 = vpop.f32.mrb[29].mxu1  ;;  %v10344_v37 = vld [vmem:[#allocation2 + $0x121] sm:$0xff]  ;;  %v10503_v25 = vld [vmem:[#allocation2 + $0xb0] sm:$0xff]  ;;  %v10521_v30 = vld [vmem:[#allocation2 + $0xd8] sm:$0xff] }
 0x121   : > { %1049 = vst.msk [vmem:[#allocation2 + $0x151] sm:$0xff] %vm373_vm1, %v961_v28  ;;  %v681_v38 = vadd.f32 %v10144_v43, %v680_v35  ;;  %v917_v39 = vadd.f32 %v10149_v44, %v916_v36  ;;  %8483 = vmatprep.mubr.msk.f32.mxu0 %vm373_vm1, %v10344_v37  ;;  %8583 = vmatprep.mubr.msk.f32.mxu1 %vm373_vm1, %v10344_v37  ;;  %v10497_v24 = vld [vmem:[#allocation2 + $0xa8] sm:$0xff]  ;;  %v10509_v27 = vld [vmem:[#allocation2 + $0xc0] sm:$0xff]  ;;  %v10551_v36 = vld [vmem:[#allocation2 + $0x110] sm:$0xff] }
 0x122   : > { %v964_v46 = vmax.f32 %v686_v33, %v922_v34  ;;  %8484 = vmatmul.mubr.msk.f32.gmra.mrb[56].mxu0 %vm373_vm1, %v10353_v40  ;;  %8584 = vmatmul.mubr.msk.f32.gmra.mrb[56].mxu1 %vm373_vm1, %v10353_v40  ;;  %v10515_v28 = vld [vmem:[#allocation2 + $0xc8] sm:$0xff]  ;;  %v10527_v31 = vld [vmem:[#allocation2 + $0xe0] sm:$0xff]  ;;  %v10533_v33 = vld [vmem:[#allocation2 + $0xf0] sm:$0xff] }
 0x123   : > { %v963_v47 = vmax.f32 %v681_v38, %v917_v39  ;;  %v10367_v50 = vld [vmem:[#allocation2 + $0x141] sm:$0xff]  ;;  %v8394_v4 = vpop.f32.mrb[30].mxu0  ;;  %v8444_v6 = vpop.f32.mrb[30].mxu1  ;;  %v10539_v34 = vld [vmem:[#allocation2 + $0xf8] sm:$0xff] }
 0x124   : > { %1052 = vst.msk [vmem:[#allocation2 + $0x171] sm:$0xff] %vm373_vm1, %v964_v46  ;;  %v10360_v49 = vld [vmem:[#allocation2 + $0x139] sm:$0xff]  ;;  %v696_v10 = vadd.f32 %v8394_v4, %v10144_v43  ;;  %v932_v11 = vadd.f32 %v8444_v6, %v10149_v44  ;;  %v690_v13 = vpop.f32.mrb[31].mxu0  ;;  %v926_v14 = vpop.f32.mrb[31].mxu1  ;;  %v10545_v35 = vld [vmem:[#allocation2 + $0x108] sm:$0xff] }
 0x125   : > { %1051 = vst.msk [vmem:[#allocation2 + $0x169] sm:$0xff] %vm373_vm1, %v963_v47  ;;  %8486 = vmatprep.mubr.msk.f32.mxu0 %vm373_vm1, %v10360_v49  ;;  %8586 = vmatprep.mubr.msk.f32.mxu1 %vm373_vm1, %v10360_v49  ;;  %v691_v16 = vadd.f32 %v10144_v43, %v690_v13  ;;  %v927_v18 = vadd.f32 %v10149_v44, %v926_v14  ;;  %v10484_v43 = vld [vmem:[#allocation2 + $0x90] sm:$0xff]  ;;  %v10491_v44 = vld [vmem:[#allocation2 + $0x98] sm:$0xff]  ;;  %v10557_v38 = vld [vmem:[#allocation2 + $0x120] sm:$0xff] }
 0x126   : > { %8487 = vmatmul.mubr.msk.f32.gmra.mrb[58].mxu0 %vm373_vm1, %v10367_v50  ;;  %8587 = vmatmul.mubr.msk.f32.gmra.mrb[58].mxu1 %vm373_vm1, %v10367_v50  ;;  %v966_v19 = vmax.f32 %v696_v10, %v932_v11  ;;  %v10563_v39 = vld [vmem:[#allocation2 + $0x128] sm:$0xff]  ;;  %v10569_v46 = vld [vmem:[#allocation2 + $0x138] sm:$0xff]  ;;  %v10575_v47 = vld [vmem:[#allocation2 + $0x140] sm:$0xff] }
 0x127   : > { %v10379_v52 = vld [vmem:[#allocation2 + $0x159] sm:$0xff]  ;;  %v965_v21 = vmax.f32 %v691_v16, %v927_v18  ;;  %v2229_v6 = vld [vmem:[#allocation2 + $0x2] sm:$0xff]  ;;  %v2230_v11 = vld [vmem:[#allocation2 + $0xa] sm:$0xff] }
 0x128   : > { %v10373_v51 = vld [vmem:[#allocation2 + $0x151] sm:$0xff]  ;;  %1054 = vst.msk [vmem:[#allocation2 + $0x189] sm:$0xff] %vm373_vm1, %v966_v19  ;;  %v10623_v16 = vld [vmem:[#allocation2 + $0x1a] sm:$0xff]  ;;  %v10629_v18 = vld [vmem:[#allocation2 + $0x22] sm:$0xff] }
 0x129   : > { %8489 = vmatprep.mubr.msk.f32.mxu0 %vm373_vm1, %v10373_v51  ;;  %8589 = vmatprep.mubr.msk.f32.mxu1 %vm373_vm1, %v10373_v51  ;;  %1053 = vst.msk [vmem:[#allocation2 + $0x181] sm:$0xff] %vm373_vm1, %v965_v21  ;;  %v10612_v13 = vld [vmem:[%s11704_s5 + $0x10] sm:$0xf] }
 0x12a   : > { %8490 = vmatmul.mubr.msk.f32.gmra.mrb[60].mxu0 %vm373_vm1, %v10379_v52  ;;  %8590 = vmatmul.mubr.msk.f32.gmra.mrb[60].mxu1 %vm373_vm1, %v10379_v52  ;;  %v10617_v14 = vld [vmem:[%s11705_s6 + $0x10] sm:$0xf] }
 0x12b   : > { %v10391_v55 = vld [vmem:[#allocation2 + $0x171] sm:$0xff] }
 0x12c   : > { %v10385_v53 = vld [vmem:[#allocation2 + $0x169] sm:$0xff]  ;;  %v10657_v21 = vld [vmem:[#allocation2 + $0x52] sm:$0xff] }
 0x12d   : > { %8492 = vmatprep.mubr.msk.f32.mxu0 %vm373_vm1, %v10385_v53  ;;  %8592 = vmatprep.mubr.msk.f32.mxu1 %vm373_vm1, %v10385_v53  ;;  %v10593_v4 = vld [vmem:[#allocation2 + $0x168] sm:$0xff]  ;;  %v10599_v10 = vld [vmem:[#allocation2 + $0x170] sm:$0xff]  ;;  %11763 = vst [vmem:[#allocation5_spill] sm:$0xff] %v10657_v21 }
 0x12e   : > { %8493 = vmatmul.mubr.msk.f32.gmra.mrb[62].mxu0 %vm373_vm1, %v10391_v55  ;;  %8593 = vmatmul.mubr.msk.f32.gmra.mrb[62].mxu1 %vm373_vm1, %v10391_v55  ;;  %11761 = vst [vmem:[#allocation3_spill] sm:$0xff] %v10599_v10  ;;  %v10651_v19 = vld [vmem:[#allocation2 + $0x4a] sm:$0xff] }
 0x12f   : > { %8497 = vmatprep.mubr.msk.f32.mxu0 %vm373_vm1, %v1055_v54  ;;  %8597 = vmatprep.mubr.msk.f32.mxu1 %vm373_vm1, %v1055_v54  ;;  %v10581_v54 = vld [vmem:[#allocation2 + $0x150] sm:$0xff]  ;;  %11762 = vst [vmem:[#allocation4_spill] sm:$0xff] %v10651_v19 }
 0x132   : > { %8498 = vmatmul.mubr.msk.f32.vlgmr.msra.gmra.mrb[32].mxu0 %vm373_vm1, %v1056_v56  ;;  %8598 = vmatmul.mubr.msk.f32.vlgmr.msra.gmra.mrb[32].mxu1 %vm373_vm1, %v1056_v56  ;;  %v10587_v56 = vld [vmem:[#allocation2 + $0x158] sm:$0xff] }
 0x133   : > { %8646 = vmatpush3.msk.msra.mxu0 %vm470_vm0, %v10130_v41  ;;  %8696 = vmatpush3.msk.msra.mxu1 %vm470_vm0, %v10135_v42  ;;  %v10431_v41 = vld [vmem:[#allocation2 + $0x30] sm:$0xff]  ;;  %v10437_v42 = vld [vmem:[#allocation2 + $0x38] sm:$0xff] }
 0x134   : > { %8500 = vmatprep.mubr.msk.f32.mxu0 %vm373_vm1, %v10415_v63  ;;  %8600 = vmatprep.mubr.msk.f32.mxu1 %vm373_vm1, %v10415_v63 }
 0x135   : > { %8745 = vmatprep.subr.msk.mxu0 %vm470_vm0, %v10404_v59  ;;  %8795 = vmatprep.subr.msk.mxu1 %vm470_vm0, %v10409_v61 }
 0x136   : > { %8501 = vmatmul.mubr.msk.f32.gmra.mrb[34].mxu0 %vm373_vm1, %v10421_v0  ;;  %8601 = vmatmul.mubr.msk.f32.gmra.mrb[34].mxu1 %vm373_vm1, %v10421_v0 }
 0x137   : > { %8503 = vmatprep.mubr.msk.f32.mxu0 %vm373_vm1, %v10431_v41  ;;  %8603 = vmatprep.mubr.msk.f32.mxu1 %vm373_vm1, %v10431_v41 }
 0x13a   : > { %8504 = vmatmul.mubr.msk.f32.gmra.mrb[36].mxu0 %vm373_vm1, %v10437_v42  ;;  %8604 = vmatmul.mubr.msk.f32.gmra.mrb[36].mxu1 %vm373_vm1, %v10437_v42 }
 0x13b   : > { %8506 = vmatprep.mubr.msk.f32.mxu0 %vm373_vm1, %v10443_v1  ;;  %8606 = vmatprep.mubr.msk.f32.mxu1 %vm373_vm1, %v10443_v1 }
 0x13e   : > { %8507 = vmatmul.mubr.msk.f32.gmra.mrb[38].mxu0 %vm373_vm1, %v10449_v2  ;;  %8607 = vmatmul.mubr.msk.f32.gmra.mrb[38].mxu1 %vm373_vm1, %v10449_v2 }
 0x13f   : > { %8509 = vmatprep.mubr.msk.f32.mxu0 %vm373_vm1, %v10455_v3  ;;  %8609 = vmatprep.mubr.msk.f32.mxu1 %vm373_vm1, %v10455_v3 }
 0x142   : > { %8510 = vmatmul.mubr.msk.f32.gmra.mrb[40].mxu0 %vm373_vm1, %v10461_v7  ;;  %8610 = vmatmul.mubr.msk.f32.gmra.mrb[40].mxu1 %vm373_vm1, %v10461_v7 }
 0x143   : > { %8512 = vmatprep.mubr.msk.f32.mxu0 %vm373_vm1, %v10469_v15  ;;  %8612 = vmatprep.mubr.msk.f32.mxu1 %vm373_vm1, %v10469_v15 }
 0x146   : > { %8513 = vmatmul.mubr.msk.f32.gmra.mrb[42].mxu0 %vm373_vm1, %v10477_v22  ;;  %8613 = vmatmul.mubr.msk.f32.gmra.mrb[42].mxu1 %vm373_vm1, %v10477_v22 }
 0x147   : > { %8515 = vmatprep.mubr.msk.f32.mxu0 %vm373_vm1, %v10484_v43  ;;  %8615 = vmatprep.mubr.msk.f32.mxu1 %vm373_vm1, %v10484_v43 }
 0x14a   : > { %8516 = vmatmul.mubr.msk.f32.gmra.mrb[44].mxu0 %vm373_vm1, %v10491_v44  ;;  %8616 = vmatmul.mubr.msk.f32.gmra.mrb[44].mxu1 %vm373_vm1, %v10491_v44 }
 0x14b   : > { %8518 = vmatprep.mubr.msk.f32.mxu0 %vm373_vm1, %v10497_v24  ;;  %8618 = vmatprep.mubr.msk.f32.mxu1 %vm373_vm1, %v10497_v24 }
 0x14e   : > { %8519 = vmatmul.mubr.msk.f32.gmra.mrb[46].mxu0 %vm373_vm1, %v10503_v25  ;;  %8619 = vmatmul.mubr.msk.f32.gmra.mrb[46].mxu1 %vm373_vm1, %v10503_v25 }
 0x14f   : > { %8521 = vmatprep.mubr.msk.f32.mxu0 %vm373_vm1, %v10509_v27  ;;  %8621 = vmatprep.mubr.msk.f32.mxu1 %vm373_vm1, %v10509_v27 }
 0x152   : > { %8522 = vmatmul.mubr.msk.f32.gmra.mrb[48].mxu0 %vm373_vm1, %v10515_v28  ;;  %8622 = vmatmul.mubr.msk.f32.gmra.mrb[48].mxu1 %vm373_vm1, %v10515_v28 }
 0x153   : > { %8524 = vmatprep.mubr.msk.f32.mxu0 %vm373_vm1, %v10521_v30  ;;  %8624 = vmatprep.mubr.msk.f32.mxu1 %vm373_vm1, %v10521_v30 }
 0x156   : > { %8525 = vmatmul.mubr.msk.f32.gmra.mrb[50].mxu0 %vm373_vm1, %v10527_v31  ;;  %8625 = vmatmul.mubr.msk.f32.gmra.mrb[50].mxu1 %vm373_vm1, %v10527_v31 }
 0x157   : > { %8527 = vmatprep.mubr.msk.f32.mxu0 %vm373_vm1, %v10533_v33  ;;  %8627 = vmatprep.mubr.msk.f32.mxu1 %vm373_vm1, %v10533_v33 }
 0x15a   : > { %8528 = vmatmul.mubr.msk.f32.gmra.mrb[52].mxu0 %vm373_vm1, %v10539_v34  ;;  %8628 = vmatmul.mubr.msk.f32.gmra.mrb[52].mxu1 %vm373_vm1, %v10539_v34 }
 0x15b   : > { %8530 = vmatprep.mubr.msk.f32.mxu0 %vm373_vm1, %v10545_v35  ;;  %8630 = vmatprep.mubr.msk.f32.mxu1 %vm373_vm1, %v10545_v35 }
 0x15e   : > { %8531 = vmatmul.mubr.msk.f32.gmra.mrb[54].mxu0 %vm373_vm1, %v10551_v36  ;;  %8631 = vmatmul.mubr.msk.f32.gmra.mrb[54].mxu1 %vm373_vm1, %v10551_v36 }
 0x15f   : > { %8533 = vmatprep.mubr.msk.f32.mxu0 %vm373_vm1, %v10557_v38  ;;  %8633 = vmatprep.mubr.msk.f32.mxu1 %vm373_vm1, %v10557_v38 }
 0x162   : > { %8534 = vmatmul.mubr.msk.f32.gmra.mrb[56].mxu0 %vm373_vm1, %v10563_v39  ;;  %8634 = vmatmul.mubr.msk.f32.gmra.mrb[56].mxu1 %vm373_vm1, %v10563_v39 }
 0x163   : > { %8536 = vmatprep.mubr.msk.f32.mxu0 %vm373_vm1, %v10569_v46  ;;  %8636 = vmatprep.mubr.msk.f32.mxu1 %vm373_vm1, %v10569_v46 }
 0x166   : > { %8537 = vmatmul.mubr.msk.f32.gmra.mrb[58].mxu0 %vm373_vm1, %v10575_v47  ;;  %8637 = vmatmul.mubr.msk.f32.gmra.mrb[58].mxu1 %vm373_vm1, %v10575_v47 }
 0x167   : > { %8539 = vmatprep.mubr.msk.f32.mxu0 %vm373_vm1, %v10581_v54  ;;  %8639 = vmatprep.mubr.msk.f32.mxu1 %vm373_vm1, %v10581_v54 }
 0x16a   : > { %8540 = vmatmul.mubr.msk.f32.gmra.mrb[60].mxu0 %vm373_vm1, %v10587_v56  ;;  %8640 = vmatmul.mubr.msk.f32.gmra.mrb[60].mxu1 %vm373_vm1, %v10587_v56 }
 0x16b   : > { %8542 = vmatprep.mubr.msk.f32.mxu0 %vm373_vm1, %v10593_v4  ;;  %8642 = vmatprep.mubr.msk.f32.mxu1 %vm373_vm1, %v10593_v4 }
 0x16e   : > { %8543 = vmatmul.mubr.msk.f32.gmra.mrb[62].mxu0 %vm373_vm1, %v10599_v10  ;;  %8643 = vmatmul.mubr.msk.f32.gmra.mrb[62].mxu1 %vm373_vm1, %v10599_v10 }
 0x16f   : > { %8647 = vmatprep.mubr.msk.f32.mxu0 %vm373_vm1, %v2229_v6  ;;  %8697 = vmatprep.mubr.msk.f32.mxu1 %vm373_vm1, %v2229_v6  ;;  %v10663_v6 = vld [vmem:[#allocation2 + $0x62] sm:$0xff] }
 0x170   : > { %11764 = vst [vmem:[#allocation6_spill] sm:$0xff] %v10663_v6 }
 0x172   : > { %8648 = vmatmul.mubr.msk.f32.vlgmr.msra.gmra.mrb[32].mxu0 %vm373_vm1, %v2230_v11  ;;  %8698 = vmatmul.mubr.msk.f32.vlgmr.msra.gmra.mrb[32].mxu1 %vm373_vm1, %v2230_v11  ;;  %v10669_v11 = vld [vmem:[#allocation2 + $0x6a] sm:$0xff] }
 0x173   : > { %8746 = vmatpush3.msk.msra.mxu0 %vm470_vm0, %v10404_v59  ;;  %8796 = vmatpush3.msk.msra.mxu1 %vm470_vm0, %v10409_v61  ;;  %v10639_v59 = vld [vmem:[#allocation2 + $0x32] sm:$0xff]  ;;  %v10645_v61 = vld [vmem:[#allocation2 + $0x3a] sm:$0xff]  ;;  %11765 = vst [vmem:[#allocation7_spill] sm:$0xff] %v10669_v11 }
 0x174   : > { %8650 = vmatprep.mubr.msk.f32.mxu0 %vm373_vm1, %v10623_v16  ;;  %8700 = vmatprep.mubr.msk.f32.mxu1 %vm373_vm1, %v10623_v16 }
 0x175   : > { %8845 = vmatprep.subr.msk.mxu0 %vm470_vm0, %v10612_v13  ;;  %8895 = vmatprep.subr.msk.mxu1 %vm470_vm0, %v10617_v14 }
 0x176   : > { %8651 = vmatmul.mubr.msk.f32.gmra.mrb[34].mxu0 %vm373_vm1, %v10629_v18  ;;  %8701 = vmatmul.mubr.msk.f32.gmra.mrb[34].mxu1 %vm373_vm1, %v10629_v18 }
 0x177   : > { %8653 = vmatprep.mubr.msk.f32.mxu0 %vm373_vm1, %v10639_v59  ;;  %8703 = vmatprep.mubr.msk.f32.mxu1 %vm373_vm1, %v10639_v59 }
 0x17a   : > { %8654 = vmatmul.mubr.msk.f32.gmra.mrb[36].mxu0 %vm373_vm1, %v10645_v61  ;;  %8704 = vmatmul.mubr.msk.f32.gmra.mrb[36].mxu1 %vm373_vm1, %v10645_v61 }
 0x17b   : > { %8656 = vmatprep.mubr.msk.f32.mxu0 %vm373_vm1, %v10651_v19  ;;  %8706 = vmatprep.mubr.msk.f32.mxu1 %vm373_vm1, %v10651_v19  ;;  %v10675_v19 = vld [vmem:[#allocation2 + $0x7a] sm:$0xff] }
 0x17c   : > { %11766 = vst [vmem:[#allocation8_spill] sm:$0xff] %v10675_v19 }
 0x17e   : > { %8657 = vmatmul.mubr.msk.f32.gmra.mrb[38].mxu0 %vm373_vm1, %v10657_v21  ;;  %8707 = vmatmul.mubr.msk.f32.gmra.mrb[38].mxu1 %vm373_vm1, %v10657_v21  ;;  %v10681_v21 = vld [vmem:[#allocation2 + $0x82] sm:$0xff] }
 0x17f   : > { %8659 = vmatprep.mubr.msk.f32.mxu0 %vm373_vm1, %v10663_v6  ;;  %8709 = vmatprep.mubr.msk.f32.mxu1 %vm373_vm1, %v10663_v6  ;;  %11767 = vst [vmem:[#allocation9_spill] sm:$0xff] %v10681_v21  ;;  %v10687_v6 = vld [vmem:[#allocation2 + $0x92] sm:$0xff] }
 0x180   : > { %11768 = vst [vmem:[#allocation10_spill] sm:$0xff] %v10687_v6 }
 0x182   : > { %8660 = vmatmul.mubr.msk.f32.gmra.mrb[40].mxu0 %vm373_vm1, %v10669_v11  ;;  %8710 = vmatmul.mubr.msk.f32.gmra.mrb[40].mxu1 %vm373_vm1, %v10669_v11  ;;  %v10693_v11 = vld [vmem:[#allocation2 + $0x9a] sm:$0xff] }
 0x183   : > { %8662 = vmatprep.mubr.msk.f32.mxu0 %vm373_vm1, %v10675_v19  ;;  %8712 = vmatprep.mubr.msk.f32.mxu1 %vm373_vm1, %v10675_v19  ;;  %11769 = vst [vmem:[#allocation11_spill] sm:$0xff] %v10693_v11  ;;  %v10699_v19 = vld [vmem:[#allocation2 + $0xaa] sm:$0xff] }
 0x184   : > { %11770 = vst [vmem:[#allocation12_spill] sm:$0xff] %v10699_v19 }
 0x186   : > { %8663 = vmatmul.mubr.msk.f32.gmra.mrb[42].mxu0 %vm373_vm1, %v10681_v21  ;;  %8713 = vmatmul.mubr.msk.f32.gmra.mrb[42].mxu1 %vm373_vm1, %v10681_v21  ;;  %v10705_v21 = vld [vmem:[#allocation2 + $0xb2] sm:$0xff] }
 0x187   : > { %8665 = vmatprep.mubr.msk.f32.mxu0 %vm373_vm1, %v10687_v6  ;;  %8715 = vmatprep.mubr.msk.f32.mxu1 %vm373_vm1, %v10687_v6  ;;  %11771 = vst [vmem:[#allocation13_spill] sm:$0xff] %v10705_v21  ;;  %v10711_v6 = vld [vmem:[#allocation2 + $0xc2] sm:$0xff] }
 0x188   : > { %11772 = vst [vmem:[#allocation14_spill] sm:$0xff] %v10711_v6 }
 0x18a   : > { %8666 = vmatmul.mubr.msk.f32.gmra.mrb[44].mxu0 %vm373_vm1, %v10693_v11  ;;  %8716 = vmatmul.mubr.msk.f32.gmra.mrb[44].mxu1 %vm373_vm1, %v10693_v11  ;;  %v10717_v11 = vld [vmem:[#allocation2 + $0xca] sm:$0xff] }
 0x18b   : > { %8668 = vmatprep.mubr.msk.f32.mxu0 %vm373_vm1, %v10699_v19  ;;  %8718 = vmatprep.mubr.msk.f32.mxu1 %vm373_vm1, %v10699_v19  ;;  %11773 = vst [vmem:[#allocation15_spill] sm:$0xff] %v10717_v11  ;;  %v10723_v19 = vld [vmem:[#allocation2 + $0xda] sm:$0xff] }
 0x18c   : > { %11774 = vst [vmem:[#allocation16_spill] sm:$0xff] %v10723_v19 }
 0x18e   : > { %8669 = vmatmul.mubr.msk.f32.gmra.mrb[46].mxu0 %vm373_vm1, %v10705_v21  ;;  %8719 = vmatmul.mubr.msk.f32.gmra.mrb[46].mxu1 %vm373_vm1, %v10705_v21  ;;  %v10729_v21 = vld [vmem:[#allocation2 + $0xe2] sm:$0xff] }
 0x18f   : > { %8671 = vmatprep.mubr.msk.f32.mxu0 %vm373_vm1, %v10711_v6  ;;  %8721 = vmatprep.mubr.msk.f32.mxu1 %vm373_vm1, %v10711_v6  ;;  %11775 = vst [vmem:[#allocation17_spill] sm:$0xff] %v10729_v21  ;;  %v10735_v6 = vld [vmem:[#allocation2 + $0xf2] sm:$0xff] }
 0x190   : > { %11776 = vst [vmem:[#allocation18_spill] sm:$0xff] %v10735_v6 }
 0x192   : > { %8672 = vmatmul.mubr.msk.f32.gmra.mrb[48].mxu0 %vm373_vm1, %v10717_v11  ;;  %8722 = vmatmul.mubr.msk.f32.gmra.mrb[48].mxu1 %vm373_vm1, %v10717_v11  ;;  %v10741_v11 = vld [vmem:[#allocation2 + $0xfa] sm:$0xff] }
 0x193   : > { %8674 = vmatprep.mubr.msk.f32.mxu0 %vm373_vm1, %v10723_v19  ;;  %8724 = vmatprep.mubr.msk.f32.mxu1 %vm373_vm1, %v10723_v19  ;;  %11777 = vst [vmem:[#allocation19_spill] sm:$0xff] %v10741_v11  ;;  %v10747_v19 = vld [vmem:[#allocation2 + $0x10a] sm:$0xff] }
 0x194   : > { %11778 = vst [vmem:[#allocation20_spill] sm:$0xff] %v10747_v19 }
 0x196   : > { %8675 = vmatmul.mubr.msk.f32.gmra.mrb[50].mxu0 %vm373_vm1, %v10729_v21  ;;  %8725 = vmatmul.mubr.msk.f32.gmra.mrb[50].mxu1 %vm373_vm1, %v10729_v21  ;;  %v10753_v21 = vld [vmem:[#allocation2 + $0x112] sm:$0xff] }
 0x197   : > { %8677 = vmatprep.mubr.msk.f32.mxu0 %vm373_vm1, %v10735_v6  ;;  %8727 = vmatprep.mubr.msk.f32.mxu1 %vm373_vm1, %v10735_v6  ;;  %11779 = vst [vmem:[#allocation21_spill] sm:$0xff] %v10753_v21  ;;  %v10759_v6 = vld [vmem:[#allocation2 + $0x122] sm:$0xff] }
 0x198   : > { %11780 = vst [vmem:[#allocation22_spill] sm:$0xff] %v10759_v6 }
 0x19a   : > { %8678 = vmatmul.mubr.msk.f32.gmra.mrb[52].mxu0 %vm373_vm1, %v10741_v11  ;;  %8728 = vmatmul.mubr.msk.f32.gmra.mrb[52].mxu1 %vm373_vm1, %v10741_v11  ;;  %v10765_v11 = vld [vmem:[#allocation2 + $0x12a] sm:$0xff] }
 0x19b   : > { %8680 = vmatprep.mubr.msk.f32.mxu0 %vm373_vm1, %v10747_v19  ;;  %8730 = vmatprep.mubr.msk.f32.mxu1 %vm373_vm1, %v10747_v19  ;;  %11781 = vst [vmem:[#allocation23_spill] sm:$0xff] %v10765_v11  ;;  %v10771_v19 = vld [vmem:[#allocation2 + $0x13a] sm:$0xff] }
 0x19c   : > { %11782 = vst [vmem:[#allocation24_spill] sm:$0xff] %v10771_v19 }
 0x19e   : > { %8681 = vmatmul.mubr.msk.f32.gmra.mrb[54].mxu0 %vm373_vm1, %v10753_v21  ;;  %8731 = vmatmul.mubr.msk.f32.gmra.mrb[54].mxu1 %vm373_vm1, %v10753_v21  ;;  %v10777_v21 = vld [vmem:[#allocation2 + $0x142] sm:$0xff] }
 0x19f   : > { %8683 = vmatprep.mubr.msk.f32.mxu0 %vm373_vm1, %v10759_v6  ;;  %8733 = vmatprep.mubr.msk.f32.mxu1 %vm373_vm1, %v10759_v6  ;;  %11783 = vst [vmem:[#allocation25_spill] sm:$0xff] %v10777_v21  ;;  %v10783_v6 = vld [vmem:[#allocation2 + $0x152] sm:$0xff] }
 0x1a2   : > { %8684 = vmatmul.mubr.msk.f32.gmra.mrb[56].mxu0 %vm373_vm1, %v10765_v11  ;;  %8734 = vmatmul.mubr.msk.f32.gmra.mrb[56].mxu1 %vm373_vm1, %v10765_v11  ;;  %v10789_v11 = vld [vmem:[#allocation2 + $0x15a] sm:$0xff] }
 0x1a3   : > { %8686 = vmatprep.mubr.msk.f32.mxu0 %vm373_vm1, %v10771_v19  ;;  %8736 = vmatprep.mubr.msk.f32.mxu1 %vm373_vm1, %v10771_v19  ;;  %v10795_v19 = vld [vmem:[#allocation2 + $0x16a] sm:$0xff] }
 0x1a4   : > { %11784 = vst [vmem:[#allocation26_spill] sm:$0xff] %v10795_v19 }
 0x1a6   : > { %8687 = vmatmul.mubr.msk.f32.gmra.mrb[58].mxu0 %vm373_vm1, %v10777_v21  ;;  %8737 = vmatmul.mubr.msk.f32.gmra.mrb[58].mxu1 %vm373_vm1, %v10777_v21  ;;  %v10801_v21 = vld [vmem:[#allocation2 + $0x172] sm:$0xff] }
 0x1a7   : > { %8689 = vmatprep.mubr.msk.f32.mxu0 %vm373_vm1, %v10783_v6  ;;  %8739 = vmatprep.mubr.msk.f32.mxu1 %vm373_vm1, %v10783_v6  ;;  %11785 = vst [vmem:[#allocation27_spill] sm:$0xff] %v10801_v21 }
 0x1aa   : > { %8690 = vmatmul.mubr.msk.f32.gmra.mrb[60].mxu0 %vm373_vm1, %v10789_v11  ;;  %8740 = vmatmul.mubr.msk.f32.gmra.mrb[60].mxu1 %vm373_vm1, %v10789_v11 }
 0x1ab   : > { %8692 = vmatprep.mubr.msk.f32.mxu0 %vm373_vm1, %v10795_v19  ;;  %8742 = vmatprep.mubr.msk.f32.mxu1 %vm373_vm1, %v10795_v19  ;;  %v10818_v19 = vld [vmem:[%s11704_s5 + $0x14] sm:$0xf] }
 0x1ae   : > { %8693 = vmatmul.mubr.msk.f32.gmra.mrb[62].mxu0 %vm373_vm1, %v10801_v21  ;;  %8743 = vmatmul.mubr.msk.f32.gmra.mrb[62].mxu1 %vm373_vm1, %v10801_v21  ;;  %v10823_v21 = vld [vmem:[%s11705_s6 + $0x14] sm:$0xf] }
 0x1af   : > { %8747 = vmatprep.mubr.msk.f32.mxu0 %vm373_vm1, %v10415_v63  ;;  %8797 = vmatprep.mubr.msk.f32.mxu1 %vm373_vm1, %v10415_v63  ;;  %v10945_v63 = vld [vmem:[#allocation2 + $0x180] sm:$0xff] }
 0x1b0   : > { %11786 = vst [vmem:[#allocation28_spill] sm:$0xff] %v10945_v63 }
 0x1b2   : > { %8748 = vmatmul.mubr.msk.f32.vlgmr.msra.gmra.mrb[32].mxu0 %vm373_vm1, %v10421_v0  ;;  %8798 = vmatmul.mubr.msk.f32.vlgmr.msra.gmra.mrb[32].mxu1 %vm373_vm1, %v10421_v0  ;;  %v10951_v0 = vld [vmem:[#allocation2 + $0x188] sm:$0xff] }
 0x1b3   : > { %8846 = vmatpush3.msk.msra.mxu0 %vm470_vm0, %v10612_v13  ;;  %8896 = vmatpush3.msk.msra.mxu1 %vm470_vm0, %v10617_v14  ;;  %v3533_v13 = vld [vmem:[#allocation2 + $0x19] sm:$0xff]  ;;  %v3534_v14 = vld [vmem:[#allocation2 + $0x21] sm:$0xff] }
 0x1b4   : > { %8750 = vmatprep.mubr.msk.f32.mxu0 %vm373_vm1, %v10431_v41  ;;  %8800 = vmatprep.mubr.msk.f32.mxu1 %vm373_vm1, %v10431_v41 }
 0x1b5   : > { %8945 = vmatprep.subr.msk.mxu0 %vm470_vm0, %v10818_v19  ;;  %8995 = vmatprep.subr.msk.mxu1 %vm470_vm0, %v10823_v21 }
 0x1b6   : > { %8751 = vmatmul.mubr.msk.f32.gmra.mrb[34].mxu0 %vm373_vm1, %v10437_v42  ;;  %8801 = vmatmul.mubr.msk.f32.gmra.mrb[34].mxu1 %vm373_vm1, %v10437_v42 }
 0x1b7   : > { %8753 = vmatprep.mubr.msk.f32.mxu0 %vm373_vm1, %v10443_v1  ;;  %8803 = vmatprep.mubr.msk.f32.mxu1 %vm373_vm1, %v10443_v1 }
 0x1ba   : > { %8754 = vmatmul.mubr.msk.f32.gmra.mrb[36].mxu0 %vm373_vm1, %v10449_v2  ;;  %8804 = vmatmul.mubr.msk.f32.gmra.mrb[36].mxu1 %vm373_vm1, %v10449_v2 }
 0x1bb   : > { %8756 = vmatprep.mubr.msk.f32.mxu0 %vm373_vm1, %v10455_v3  ;;  %8806 = vmatprep.mubr.msk.f32.mxu1 %vm373_vm1, %v10455_v3 }
 0x1be   : > { %8757 = vmatmul.mubr.msk.f32.gmra.mrb[38].mxu0 %vm373_vm1, %v10461_v7  ;;  %8807 = vmatmul.mubr.msk.f32.gmra.mrb[38].mxu1 %vm373_vm1, %v10461_v7 }
 0x1bf   : > { %8759 = vmatprep.mubr.msk.f32.mxu0 %vm373_vm1, %v10469_v15  ;;  %8809 = vmatprep.mubr.msk.f32.mxu1 %vm373_vm1, %v10469_v15 }
 0x1c2   : > { %8760 = vmatmul.mubr.msk.f32.gmra.mrb[40].mxu0 %vm373_vm1, %v10477_v22  ;;  %8810 = vmatmul.mubr.msk.f32.gmra.mrb[40].mxu1 %vm373_vm1, %v10477_v22 }
 0x1c3   : > { %8762 = vmatprep.mubr.msk.f32.mxu0 %vm373_vm1, %v10484_v43  ;;  %8812 = vmatprep.mubr.msk.f32.mxu1 %vm373_vm1, %v10484_v43 }
 0x1c6   : > { %8763 = vmatmul.mubr.msk.f32.gmra.mrb[42].mxu0 %vm373_vm1, %v10491_v44  ;;  %8813 = vmatmul.mubr.msk.f32.gmra.mrb[42].mxu1 %vm373_vm1, %v10491_v44 }
 0x1c7   : > { %8765 = vmatprep.mubr.msk.f32.mxu0 %vm373_vm1, %v10497_v24  ;;  %8815 = vmatprep.mubr.msk.f32.mxu1 %vm373_vm1, %v10497_v24 }
 0x1ca   : > { %8766 = vmatmul.mubr.msk.f32.gmra.mrb[44].mxu0 %vm373_vm1, %v10503_v25  ;;  %8816 = vmatmul.mubr.msk.f32.gmra.mrb[44].mxu1 %vm373_vm1, %v10503_v25 }
 0x1cb   : > { %8768 = vmatprep.mubr.msk.f32.mxu0 %vm373_vm1, %v10509_v27  ;;  %8818 = vmatprep.mubr.msk.f32.mxu1 %vm373_vm1, %v10509_v27 }
 0x1ce   : > { %8769 = vmatmul.mubr.msk.f32.gmra.mrb[46].mxu0 %vm373_vm1, %v10515_v28  ;;  %8819 = vmatmul.mubr.msk.f32.gmra.mrb[46].mxu1 %vm373_vm1, %v10515_v28 }
 0x1cf   : > { %8771 = vmatprep.mubr.msk.f32.mxu0 %vm373_vm1, %v10521_v30  ;;  %8821 = vmatprep.mubr.msk.f32.mxu1 %vm373_vm1, %v10521_v30 }
 0x1d2   : > { %8772 = vmatmul.mubr.msk.f32.gmra.mrb[48].mxu0 %vm373_vm1, %v10527_v31  ;;  %8822 = vmatmul.mubr.msk.f32.gmra.mrb[48].mxu1 %vm373_vm1, %v10527_v31 }
 0x1d3   : > { %8774 = vmatprep.mubr.msk.f32.mxu0 %vm373_vm1, %v10533_v33  ;;  %8824 = vmatprep.mubr.msk.f32.mxu1 %vm373_vm1, %v10533_v33 }
 0x1d6   : > { %8775 = vmatmul.mubr.msk.f32.gmra.mrb[50].mxu0 %vm373_vm1, %v10539_v34  ;;  %8825 = vmatmul.mubr.msk.f32.gmra.mrb[50].mxu1 %vm373_vm1, %v10539_v34 }
 0x1d7   : > { %8777 = vmatprep.mubr.msk.f32.mxu0 %vm373_vm1, %v10545_v35  ;;  %8827 = vmatprep.mubr.msk.f32.mxu1 %vm373_vm1, %v10545_v35 }
 0x1da   : > { %8778 = vmatmul.mubr.msk.f32.gmra.mrb[52].mxu0 %vm373_vm1, %v10551_v36  ;;  %8828 = vmatmul.mubr.msk.f32.gmra.mrb[52].mxu1 %vm373_vm1, %v10551_v36 }
 0x1db   : > { %8780 = vmatprep.mubr.msk.f32.mxu0 %vm373_vm1, %v10557_v38  ;;  %8830 = vmatprep.mubr.msk.f32.mxu1 %vm373_vm1, %v10557_v38 }
 0x1de   : > { %8781 = vmatmul.mubr.msk.f32.gmra.mrb[54].mxu0 %vm373_vm1, %v10563_v39  ;;  %8831 = vmatmul.mubr.msk.f32.gmra.mrb[54].mxu1 %vm373_vm1, %v10563_v39 }
 0x1df   : > { %8783 = vmatprep.mubr.msk.f32.mxu0 %vm373_vm1, %v10569_v46  ;;  %8833 = vmatprep.mubr.msk.f32.mxu1 %vm373_vm1, %v10569_v46 }
 0x1e2   : > { %8784 = vmatmul.mubr.msk.f32.gmra.mrb[56].mxu0 %vm373_vm1, %v10575_v47  ;;  %8834 = vmatmul.mubr.msk.f32.gmra.mrb[56].mxu1 %vm373_vm1, %v10575_v47 }
 0x1e3   : > { %8786 = vmatprep.mubr.msk.f32.mxu0 %vm373_vm1, %v10581_v54  ;;  %8836 = vmatprep.mubr.msk.f32.mxu1 %vm373_vm1, %v10581_v54 }
 0x1e6   : > { %8787 = vmatmul.mubr.msk.f32.gmra.mrb[58].mxu0 %vm373_vm1, %v10587_v56  ;;  %8837 = vmatmul.mubr.msk.f32.gmra.mrb[58].mxu1 %vm373_vm1, %v10587_v56 }
 0x1e7   : > { %8789 = vmatprep.mubr.msk.f32.mxu0 %vm373_vm1, %v10593_v4  ;;  %8839 = vmatprep.mubr.msk.f32.mxu1 %vm373_vm1, %v10593_v4 }
 0x1ea   : > { %8790 = vmatmul.mubr.msk.f32.gmra.mrb[60].mxu0 %vm373_vm1, %v10599_v10  ;;  %8840 = vmatmul.mubr.msk.f32.gmra.mrb[60].mxu1 %vm373_vm1, %v10599_v10  ;;  %v10969_v10 = vld [vmem:[%s11705_s6 + $0x18] sm:$0xf] }
 0x1eb   : > { %8792 = vmatprep.mubr.msk.f32.mxu0 %vm373_vm1, %v10945_v63  ;;  %8842 = vmatprep.mubr.msk.f32.mxu1 %vm373_vm1, %v10945_v63  ;;  %v10964_v63 = vld [vmem:[%s11704_s5 + $0x18] sm:$0xf] }
 0x1ee   : > { %8793 = vmatmul.mubr.msk.f32.gmra.mrb[62].mxu0 %vm373_vm1, %v10951_v0  ;;  %8843 = vmatmul.mubr.msk.f32.gmra.mrb[62].mxu1 %vm373_vm1, %v10951_v0 }
 0x1ef   : > { %8847 = vmatprep.mubr.msk.f32.mxu0 %vm373_vm1, %v3533_v13  ;;  %8897 = vmatprep.mubr.msk.f32.mxu1 %vm373_vm1, %v3533_v13  ;;  %v10975_v13 = vld [vmem:[#allocation2 + $0x31] sm:$0xff] }
 0x1f2   : > { %8848 = vmatmul.mubr.msk.f32.vlgmr.msra.gmra.mrb[32].mxu0 %vm373_vm1, %v3534_v14  ;;  %8898 = vmatmul.mubr.msk.f32.vlgmr.msra.gmra.mrb[32].mxu1 %vm373_vm1, %v3534_v14  ;;  %v10981_v14 = vld [vmem:[#allocation2 + $0x39] sm:$0xff] }
 0x1f3   : > { %8946 = vmatpush3.msk.msra.mxu0 %vm470_vm0, %v10818_v19  ;;  %8996 = vmatpush3.msk.msra.mxu1 %vm470_vm0, %v10823_v21  ;;  %v10991_v19 = vld [vmem:[#allocation2 + $0x49] sm:$0xff]  ;;  %v10997_v21 = vld [vmem:[#allocation2 + $0x51] sm:$0xff] }
 0x1f4   : > { %8850 = vmatprep.mubr.msk.f32.mxu0 %vm373_vm1, %v10975_v13  ;;  %8900 = vmatprep.mubr.msk.f32.mxu1 %vm373_vm1, %v10975_v13 }
 0x1f5   : > { %9045 = vmatprep.subr.msk.mxu0 %vm470_vm0, %v10964_v63  ;;  %9095 = vmatprep.subr.msk.mxu1 %vm470_vm0, %v10969_v10 }
 0x1f6   : > { %8851 = vmatmul.mubr.msk.f32.gmra.mrb[34].mxu0 %vm373_vm1, %v10981_v14  ;;  %8901 = vmatmul.mubr.msk.f32.gmra.mrb[34].mxu1 %vm373_vm1, %v10981_v14 }
 0x1f7   : > { %8853 = vmatprep.mubr.msk.f32.mxu0 %vm373_vm1, %v10991_v19  ;;  %8903 = vmatprep.mubr.msk.f32.mxu1 %vm373_vm1, %v10991_v19 }
 0x1fa   : > { %8854 = vmatmul.mubr.msk.f32.gmra.mrb[36].mxu0 %vm373_vm1, %v10997_v21  ;;  %8904 = vmatmul.mubr.msk.f32.gmra.mrb[36].mxu1 %vm373_vm1, %v10997_v21 }
 0x1fb   : > { %8856 = vmatprep.mubr.msk.f32.mxu0 %vm373_vm1, %v10200_v57  ;;  %8906 = vmatprep.mubr.msk.f32.mxu1 %vm373_vm1, %v10200_v57  ;;  %v11099_v57 = vld [vmem:[#allocation2 + $0x181] sm:$0xff] }
 0x1fe   : > { %8857 = vmatmul.mubr.msk.f32.gmra.mrb[38].mxu0 %vm373_vm1, %v10209_v60  ;;  %8907 = vmatmul.mubr.msk.f32.gmra.mrb[38].mxu1 %vm373_vm1, %v10209_v60  ;;  %v11105_v60 = vld [vmem:[#allocation2 + $0x189] sm:$0xff] }
 0x1ff   : > { %8859 = vmatprep.mubr.msk.f32.mxu0 %vm373_vm1, %v10218_v5  ;;  %8909 = vmatprep.mubr.msk.f32.mxu1 %vm373_vm1, %v10218_v5  ;;  %v11122_v5 = vld [vmem:[%s11704_s5 + $0x1c] sm:$0xf] }
 0x202   : > { %8860 = vmatmul.mubr.msk.f32.gmra.mrb[40].mxu0 %vm373_vm1, %v10227_v8  ;;  %8910 = vmatmul.mubr.msk.f32.gmra.mrb[40].mxu1 %vm373_vm1, %v10227_v8  ;;  %v11127_v8 = vld [vmem:[%s11705_s6 + $0x1c] sm:$0xf] }
 0x203   : > { %8862 = vmatprep.mubr.msk.f32.mxu0 %vm373_vm1, %v10236_v17  ;;  %8912 = vmatprep.mubr.msk.f32.mxu1 %vm373_vm1, %v10236_v17  ;;  %v11787_v17 = vld [vmem:[#allocation4_spill] sm:$0xff] }
 0x206   : > { %8863 = vmatmul.mubr.msk.f32.gmra.mrb[42].mxu0 %vm373_vm1, %v10245_v20  ;;  %8913 = vmatmul.mubr.msk.f32.gmra.mrb[42].mxu1 %vm373_vm1, %v10245_v20  ;;  %v11788_v20 = vld [vmem:[#allocation5_spill] sm:$0xff] }
 0x207   : > { %8865 = vmatprep.mubr.msk.f32.mxu0 %vm373_vm1, %v10254_v29  ;;  %8915 = vmatprep.mubr.msk.f32.mxu1 %vm373_vm1, %v10254_v29  ;;  %v11789_v29 = vld [vmem:[#allocation6_spill] sm:$0xff] }
 0x20a   : > { %8866 = vmatmul.mubr.msk.f32.gmra.mrb[44].mxu0 %vm373_vm1, %v10263_v32  ;;  %8916 = vmatmul.mubr.msk.f32.gmra.mrb[44].mxu1 %vm373_vm1, %v10263_v32  ;;  %v11790_v32 = vld [vmem:[#allocation7_spill] sm:$0xff] }
 0x20b   : > { %8868 = vmatprep.mubr.msk.f32.mxu0 %vm373_vm1, %v10272_v45  ;;  %8918 = vmatprep.mubr.msk.f32.mxu1 %vm373_vm1, %v10272_v45  ;;  %v11791_v45 = vld [vmem:[#allocation8_spill] sm:$0xff] }
 0x20e   : > { %8869 = vmatmul.mubr.msk.f32.gmra.mrb[46].mxu0 %vm373_vm1, %v10281_v48  ;;  %8919 = vmatmul.mubr.msk.f32.gmra.mrb[46].mxu1 %vm373_vm1, %v10281_v48  ;;  %v11792_v48 = vld [vmem:[#allocation9_spill] sm:$0xff] }
 0x20f   : > { %8871 = vmatprep.mubr.msk.f32.mxu0 %vm373_vm1, %v10290_v58  ;;  %8921 = vmatprep.mubr.msk.f32.mxu1 %vm373_vm1, %v10290_v58  ;;  %v11793_v58 = vld [vmem:[#allocation10_spill] sm:$0xff] }
 0x212   : > { %8872 = vmatmul.mubr.msk.f32.gmra.mrb[48].mxu0 %vm373_vm1, %v10299_v62  ;;  %8922 = vmatmul.mubr.msk.f32.gmra.mrb[48].mxu1 %vm373_vm1, %v10299_v62  ;;  %v11794_v62 = vld [vmem:[#allocation11_spill] sm:$0xff] }
 0x213   : > { %8874 = vmatprep.mubr.msk.f32.mxu0 %vm373_vm1, %v10308_v9  ;;  %8924 = vmatprep.mubr.msk.f32.mxu1 %vm373_vm1, %v10308_v9  ;;  %v11795_v9 = vld [vmem:[#allocation12_spill] sm:$0xff] }
 0x216   : > { %8875 = vmatmul.mubr.msk.f32.gmra.mrb[50].mxu0 %vm373_vm1, %v10317_v12  ;;  %8925 = vmatmul.mubr.msk.f32.gmra.mrb[50].mxu1 %vm373_vm1, %v10317_v12  ;;  %v11796_v12 = vld [vmem:[#allocation13_spill] sm:$0xff] }
 0x217   : > { %8877 = vmatprep.mubr.msk.f32.mxu0 %vm373_vm1, %v10326_v23  ;;  %8927 = vmatprep.mubr.msk.f32.mxu1 %vm373_vm1, %v10326_v23  ;;  %v11797_v23 = vld [vmem:[#allocation14_spill] sm:$0xff] }
 0x21a   : > { %8878 = vmatmul.mubr.msk.f32.gmra.mrb[52].mxu0 %vm373_vm1, %v10335_v26  ;;  %8928 = vmatmul.mubr.msk.f32.gmra.mrb[52].mxu1 %vm373_vm1, %v10335_v26  ;;  %v11798_v26 = vld [vmem:[#allocation15_spill] sm:$0xff] }
 0x21b   : > { %8880 = vmatprep.mubr.msk.f32.mxu0 %vm373_vm1, %v10344_v37  ;;  %8930 = vmatprep.mubr.msk.f32.mxu1 %vm373_vm1, %v10344_v37  ;;  %v11799_v37 = vld [vmem:[#allocation16_spill] sm:$0xff] }
 0x21e   : > { %8881 = vmatmul.mubr.msk.f32.gmra.mrb[54].mxu0 %vm373_vm1, %v10353_v40  ;;  %8931 = vmatmul.mubr.msk.f32.gmra.mrb[54].mxu1 %vm373_vm1, %v10353_v40  ;;  %v11800_v40 = vld [vmem:[#allocation17_spill] sm:$0xff] }
 0x21f   : > { %8883 = vmatprep.mubr.msk.f32.mxu0 %vm373_vm1, %v10360_v49  ;;  %8933 = vmatprep.mubr.msk.f32.mxu1 %vm373_vm1, %v10360_v49  ;;  %v11801_v49 = vld [vmem:[#allocation18_spill] sm:$0xff] }
 0x222   : > { %8884 = vmatmul.mubr.msk.f32.gmra.mrb[56].mxu0 %vm373_vm1, %v10367_v50  ;;  %8934 = vmatmul.mubr.msk.f32.gmra.mrb[56].mxu1 %vm373_vm1, %v10367_v50  ;;  %v11802_v50 = vld [vmem:[#allocation19_spill] sm:$0xff] }
 0x223   : > { %8886 = vmatprep.mubr.msk.f32.mxu0 %vm373_vm1, %v10373_v51  ;;  %8936 = vmatprep.mubr.msk.f32.mxu1 %vm373_vm1, %v10373_v51  ;;  %v11803_v51 = vld [vmem:[#allocation20_spill] sm:$0xff] }
 0x226   : > { %8887 = vmatmul.mubr.msk.f32.gmra.mrb[58].mxu0 %vm373_vm1, %v10379_v52  ;;  %8937 = vmatmul.mubr.msk.f32.gmra.mrb[58].mxu1 %vm373_vm1, %v10379_v52  ;;  %v11804_v52 = vld [vmem:[#allocation21_spill] sm:$0xff] }
 0x227   : > { %8889 = vmatprep.mubr.msk.f32.mxu0 %vm373_vm1, %v10385_v53  ;;  %8939 = vmatprep.mubr.msk.f32.mxu1 %vm373_vm1, %v10385_v53  ;;  %v11805_v53 = vld [vmem:[#allocation22_spill] sm:$0xff] }
 0x22a   : > { %8890 = vmatmul.mubr.msk.f32.gmra.mrb[60].mxu0 %vm373_vm1, %v10391_v55  ;;  %8940 = vmatmul.mubr.msk.f32.gmra.mrb[60].mxu1 %vm373_vm1, %v10391_v55  ;;  %v11806_v55 = vld [vmem:[#allocation23_spill] sm:$0xff] }
 0x22b   : > { %8892 = vmatprep.mubr.msk.f32.mxu0 %vm373_vm1, %v11099_v57  ;;  %8942 = vmatprep.mubr.msk.f32.mxu1 %vm373_vm1, %v11099_v57 }
 0x22e   : > { %8893 = vmatmul.mubr.msk.f32.gmra.mrb[62].mxu0 %vm373_vm1, %v11105_v60  ;;  %8943 = vmatmul.mubr.msk.f32.gmra.mrb[62].mxu1 %vm373_vm1, %v11105_v60 }
 0x22f   : > { %8947 = vmatprep.mubr.msk.f32.mxu0 %vm373_vm1, %v10623_v16  ;;  %8997 = vmatprep.mubr.msk.f32.mxu1 %vm373_vm1, %v10623_v16  ;;  %v11808_v16 = vld [vmem:[#allocation25_spill] sm:$0xff] }
 0x232   : > { %8948 = vmatmul.mubr.msk.f32.vlgmr.msra.gmra.mrb[32].mxu0 %vm373_vm1, %v10629_v18  ;;  %8998 = vmatmul.mubr.msk.f32.vlgmr.msra.gmra.mrb[32].mxu1 %vm373_vm1, %v10629_v18  ;;  %v11809_v18 = vld [vmem:[#allocation26_spill] sm:$0xff] }
 0x233   : > { %9046 = vmatpush3.msk.msra.mxu0 %vm470_vm0, %v10964_v63  ;;  %9096 = vmatpush3.msk.msra.mxu1 %vm470_vm0, %v10969_v10  ;;  %v11807_v10 = vld [vmem:[#allocation24_spill] sm:$0xff]  ;;  %v11277_v63 = vld [vmem:[%s11705_s6 + $0x20] sm:$0xf] }
 0x234   : > { %8950 = vmatprep.mubr.msk.f32.mxu0 %vm373_vm1, %v10639_v59  ;;  %9000 = vmatprep.mubr.msk.f32.mxu1 %vm373_vm1, %v10639_v59  ;;  %v11810_v59 = vld [vmem:[#allocation27_spill] sm:$0xff] }
 0x235   : > { %9145 = vmatprep.subr.msk.mxu0 %vm470_vm0, %v11122_v5  ;;  %9195 = vmatprep.subr.msk.mxu1 %vm470_vm0, %v11127_v8 }
 0x236   : > { %8951 = vmatmul.mubr.msk.f32.gmra.mrb[34].mxu0 %vm373_vm1, %v10645_v61  ;;  %9001 = vmatmul.mubr.msk.f32.gmra.mrb[34].mxu1 %vm373_vm1, %v10645_v61  ;;  %v11249_v61 = vld [vmem:[#allocation2 + $0x182] sm:$0xff] }
 0x237   : > { %8953 = vmatprep.mubr.msk.f32.mxu0 %vm373_vm1, %v11787_v17  ;;  %9003 = vmatprep.mubr.msk.f32.mxu1 %vm373_vm1, %v11787_v17  ;;  %v6148_v17 = vld [vmem:[#allocation2 + $0x7a] sm:$0xff] }
 0x23a   : > { %8954 = vmatmul.mubr.msk.f32.gmra.mrb[36].mxu0 %vm373_vm1, %v11788_v20  ;;  %9004 = vmatmul.mubr.msk.f32.gmra.mrb[36].mxu1 %vm373_vm1, %v11788_v20  ;;  %v6149_v20 = vld [vmem:[#allocation2 + $0x82] sm:$0xff] }
 0x23b   : > { %8956 = vmatprep.mubr.msk.f32.mxu0 %vm373_vm1, %v11789_v29  ;;  %9006 = vmatprep.mubr.msk.f32.mxu1 %vm373_vm1, %v11789_v29  ;;  %v6150_v29 = vld [vmem:[#allocation2 + $0x92] sm:$0xff] }
 0x23e   : > { %8957 = vmatmul.mubr.msk.f32.gmra.mrb[38].mxu0 %vm373_vm1, %v11790_v32  ;;  %9007 = vmatmul.mubr.msk.f32.gmra.mrb[38].mxu1 %vm373_vm1, %v11790_v32  ;;  %v6151_v32 = vld [vmem:[#allocation2 + $0x9a] sm:$0xff] }
 0x23f   : > { %8959 = vmatprep.mubr.msk.f32.mxu0 %vm373_vm1, %v11791_v45  ;;  %9009 = vmatprep.mubr.msk.f32.mxu1 %vm373_vm1, %v11791_v45  ;;  %v6152_v45 = vld [vmem:[#allocation2 + $0xaa] sm:$0xff] }
 0x242   : > { %8960 = vmatmul.mubr.msk.f32.gmra.mrb[40].mxu0 %vm373_vm1, %v11792_v48  ;;  %9010 = vmatmul.mubr.msk.f32.gmra.mrb[40].mxu1 %vm373_vm1, %v11792_v48  ;;  %v6153_v48 = vld [vmem:[#allocation2 + $0xb2] sm:$0xff] }
 0x243   : > { %8962 = vmatprep.mubr.msk.f32.mxu0 %vm373_vm1, %v11793_v58  ;;  %9012 = vmatprep.mubr.msk.f32.mxu1 %vm373_vm1, %v11793_v58  ;;  %v6154_v58 = vld [vmem:[#allocation2 + $0xc2] sm:$0xff] }
 0x246   : > { %8963 = vmatmul.mubr.msk.f32.gmra.mrb[42].mxu0 %vm373_vm1, %v11794_v62  ;;  %9013 = vmatmul.mubr.msk.f32.gmra.mrb[42].mxu1 %vm373_vm1, %v11794_v62  ;;  %v6155_v62 = vld [vmem:[#allocation2 + $0xca] sm:$0xff] }
 0x247   : > { %8965 = vmatprep.mubr.msk.f32.mxu0 %vm373_vm1, %v11795_v9  ;;  %9015 = vmatprep.mubr.msk.f32.mxu1 %vm373_vm1, %v11795_v9  ;;  %v6156_v9 = vld [vmem:[#allocation2 + $0xda] sm:$0xff] }
 0x24a   : > { %8966 = vmatmul.mubr.msk.f32.gmra.mrb[44].mxu0 %vm373_vm1, %v11796_v12  ;;  %9016 = vmatmul.mubr.msk.f32.gmra.mrb[44].mxu1 %vm373_vm1, %v11796_v12  ;;  %v6157_v12 = vld [vmem:[#allocation2 + $0xe2] sm:$0xff] }
 0x24b   : > { %8968 = vmatprep.mubr.msk.f32.mxu0 %vm373_vm1, %v11797_v23  ;;  %9018 = vmatprep.mubr.msk.f32.mxu1 %vm373_vm1, %v11797_v23  ;;  %v6158_v23 = vld [vmem:[#allocation2 + $0xf2] sm:$0xff] }
 0x24e   : > { %8969 = vmatmul.mubr.msk.f32.gmra.mrb[46].mxu0 %vm373_vm1, %v11798_v26  ;;  %9019 = vmatmul.mubr.msk.f32.gmra.mrb[46].mxu1 %vm373_vm1, %v11798_v26  ;;  %v6159_v26 = vld [vmem:[#allocation2 + $0xfa] sm:$0xff] }
 0x24f   : > { %8971 = vmatprep.mubr.msk.f32.mxu0 %vm373_vm1, %v11799_v37  ;;  %9021 = vmatprep.mubr.msk.f32.mxu1 %vm373_vm1, %v11799_v37  ;;  %v6160_v37 = vld [vmem:[#allocation2 + $0x10a] sm:$0xff] }
 0x252   : > { %8972 = vmatmul.mubr.msk.f32.gmra.mrb[48].mxu0 %vm373_vm1, %v11800_v40  ;;  %9022 = vmatmul.mubr.msk.f32.gmra.mrb[48].mxu1 %vm373_vm1, %v11800_v40  ;;  %v6161_v40 = vld [vmem:[#allocation2 + $0x112] sm:$0xff] }
 0x253   : > { %8974 = vmatprep.mubr.msk.f32.mxu0 %vm373_vm1, %v11801_v49  ;;  %9024 = vmatprep.mubr.msk.f32.mxu1 %vm373_vm1, %v11801_v49  ;;  %v6162_v49 = vld [vmem:[#allocation2 + $0x122] sm:$0xff] }
 0x256   : > { %8975 = vmatmul.mubr.msk.f32.gmra.mrb[50].mxu0 %vm373_vm1, %v11802_v50  ;;  %9025 = vmatmul.mubr.msk.f32.gmra.mrb[50].mxu1 %vm373_vm1, %v11802_v50  ;;  %v6163_v50 = vld [vmem:[#allocation2 + $0x12a] sm:$0xff] }
 0x257   : > { %8977 = vmatprep.mubr.msk.f32.mxu0 %vm373_vm1, %v11803_v51  ;;  %9027 = vmatprep.mubr.msk.f32.mxu1 %vm373_vm1, %v11803_v51  ;;  %v6164_v51 = vld [vmem:[#allocation2 + $0x13a] sm:$0xff] }
 0x25a   : > { %8978 = vmatmul.mubr.msk.f32.gmra.mrb[52].mxu0 %vm373_vm1, %v11804_v52  ;;  %9028 = vmatmul.mubr.msk.f32.gmra.mrb[52].mxu1 %vm373_vm1, %v11804_v52  ;;  %v6165_v52 = vld [vmem:[#allocation2 + $0x142] sm:$0xff] }
 0x25b   : > { %8980 = vmatprep.mubr.msk.f32.mxu0 %vm373_vm1, %v11805_v53  ;;  %9030 = vmatprep.mubr.msk.f32.mxu1 %vm373_vm1, %v11805_v53  ;;  %v6166_v53 = vld [vmem:[#allocation2 + $0x152] sm:$0xff] }
 0x25e   : > { %8981 = vmatmul.mubr.msk.f32.gmra.mrb[54].mxu0 %vm373_vm1, %v11806_v55  ;;  %9031 = vmatmul.mubr.msk.f32.gmra.mrb[54].mxu1 %vm373_vm1, %v11806_v55  ;;  %v6167_v55 = vld [vmem:[#allocation2 + $0x15a] sm:$0xff] }
 0x25f   : > { %8983 = vmatprep.mubr.msk.f32.mxu0 %vm373_vm1, %v11807_v10  ;;  %9033 = vmatprep.mubr.msk.f32.mxu1 %vm373_vm1, %v11807_v10  ;;  %v6168_v10 = vld [vmem:[#allocation2 + $0x16a] sm:$0xff] }
 0x262   : > { %8984 = vmatmul.mubr.msk.f32.gmra.mrb[56].mxu0 %vm373_vm1, %v11808_v16  ;;  %9034 = vmatmul.mubr.msk.f32.gmra.mrb[56].mxu1 %vm373_vm1, %v11808_v16  ;;  %v6169_v16 = vld [vmem:[#allocation2 + $0x172] sm:$0xff] }
 0x263   : > { %8986 = vmatprep.mubr.msk.f32.mxu0 %vm373_vm1, %v10783_v6  ;;  %9036 = vmatprep.mubr.msk.f32.mxu1 %vm373_vm1, %v10783_v6  ;;  %v11255_v6 = vld [vmem:[#allocation2 + $0x18a] sm:$0xff] }
 0x266   : > { %8987 = vmatmul.mubr.msk.f32.gmra.mrb[58].mxu0 %vm373_vm1, %v10789_v11  ;;  %9037 = vmatmul.mubr.msk.f32.gmra.mrb[58].mxu1 %vm373_vm1, %v10789_v11  ;;  %v11272_v11 = vld [vmem:[%s11704_s5 + $0x20] sm:$0xf] }
 0x267   : > { %8989 = vmatprep.mubr.msk.f32.mxu0 %vm373_vm1, %v11809_v18  ;;  %9039 = vmatprep.mubr.msk.f32.mxu1 %vm373_vm1, %v11809_v18  ;;  %v6172_v18 = vld [vmem:[#allocation2 + $0x19a] sm:$0xff] }
 0x26a   : > { %8990 = vmatmul.mubr.msk.f32.gmra.mrb[60].mxu0 %vm373_vm1, %v11810_v59  ;;  %9040 = vmatmul.mubr.msk.f32.gmra.mrb[60].mxu1 %vm373_vm1, %v11810_v59  ;;  %v6173_v59 = vld [vmem:[#allocation2 + $0x1a2] sm:$0xff] }
 0x26b   : > { %8992 = vmatprep.mubr.msk.f32.mxu0 %vm373_vm1, %v11249_v61  ;;  %9042 = vmatprep.mubr.msk.f32.mxu1 %vm373_vm1, %v11249_v61 }
 0x26e   : > { %8993 = vmatmul.mubr.msk.f32.gmra.mrb[62].mxu0 %vm373_vm1, %v11255_v6  ;;  %9043 = vmatmul.mubr.msk.f32.gmra.mrb[62].mxu1 %vm373_vm1, %v11255_v6 }
 0x26f   : > { %9047 = vmatprep.mubr.msk.f32.mxu0 %vm373_vm1, %v10431_v41  ;;  %9097 = vmatprep.mubr.msk.f32.mxu1 %vm373_vm1, %v10431_v41  ;;  %v11811_v41 = vld [vmem:[#allocation3_spill] sm:$0xff] }
 0x272   : > { %9048 = vmatmul.mubr.msk.f32.vlgmr.msra.gmra.mrb[32].mxu0 %vm373_vm1, %v10437_v42  ;;  %9098 = vmatmul.mubr.msk.f32.vlgmr.msra.gmra.mrb[32].mxu1 %vm373_vm1, %v10437_v42  ;;  %v11812_v42 = vld [vmem:[#allocation28_spill] sm:$0xff] }
 0x273   : > { %9146 = vmatpush3.msk.msra.mxu0 %vm470_vm0, %v11122_v5  ;;  %9196 = vmatpush3.msk.msra.mxu1 %vm470_vm0, %v11127_v8  ;;  %v6146_v5 = vld [vmem:[#allocation2 + $0x62] sm:$0xff]  ;;  %v6147_v8 = vld [vmem:[#allocation2 + $0x6a] sm:$0xff] }
 0x274   : > { %9050 = vmatprep.mubr.msk.f32.mxu0 %vm373_vm1, %v10443_v1  ;;  %9100 = vmatprep.mubr.msk.f32.mxu1 %vm373_vm1, %v10443_v1  ;;  %v4868_v1 = vld [vmem:[#allocation2 + $0x198] sm:$0xff] }
 0x275   : > { %9245 = vmatprep.subr.msk.mxu0 %vm470_vm0, %v11272_v11  ;;  %9295 = vmatprep.subr.msk.mxu1 %vm470_vm0, %v11277_v63 }
 0x276   : > { %9051 = vmatmul.mubr.msk.f32.gmra.mrb[34].mxu0 %vm373_vm1, %v10449_v2  ;;  %9101 = vmatmul.mubr.msk.f32.gmra.mrb[34].mxu1 %vm373_vm1, %v10449_v2  ;;  %v4869_v2 = vld [vmem:[#allocation2 + $0x1a0] sm:$0xff] }
 0x277   : > { %9053 = vmatprep.mubr.msk.f32.mxu0 %vm373_vm1, %v10455_v3  ;;  %9103 = vmatprep.mubr.msk.f32.mxu1 %vm373_vm1, %v10455_v3  ;;  %v5494_v3 = vld [vmem:[#allocation2 + $0x61] sm:$0xff] }
 0x27a   : > { %9054 = vmatmul.mubr.msk.f32.gmra.mrb[36].mxu0 %vm373_vm1, %v10461_v7  ;;  %9104 = vmatmul.mubr.msk.f32.gmra.mrb[36].mxu1 %vm373_vm1, %v10461_v7  ;;  %v5495_v7 = vld [vmem:[#allocation2 + $0x69] sm:$0xff] }
 0x27b   : > { %9056 = vmatprep.mubr.msk.f32.mxu0 %vm373_vm1, %v10469_v15  ;;  %9106 = vmatprep.mubr.msk.f32.mxu1 %vm373_vm1, %v10469_v15  ;;  %v5496_v15 = vld [vmem:[#allocation2 + $0x79] sm:$0xff] }
 0x27e   : > { %9057 = vmatmul.mubr.msk.f32.gmra.mrb[38].mxu0 %vm373_vm1, %v10477_v22  ;;  %9107 = vmatmul.mubr.msk.f32.gmra.mrb[38].mxu1 %vm373_vm1, %v10477_v22  ;;  %v5497_v22 = vld [vmem:[#allocation2 + $0x81] sm:$0xff] }
 0x27f   : > { %9059 = vmatprep.mubr.msk.f32.mxu0 %vm373_vm1, %v10484_v43  ;;  %9109 = vmatprep.mubr.msk.f32.mxu1 %vm373_vm1, %v10484_v43  ;;  %v5498_v43 = vld [vmem:[#allocation2 + $0x91] sm:$0xff] }
 0x282   : > { %9060 = vmatmul.mubr.msk.f32.gmra.mrb[40].mxu0 %vm373_vm1, %v10491_v44  ;;  %9110 = vmatmul.mubr.msk.f32.gmra.mrb[40].mxu1 %vm373_vm1, %v10491_v44  ;;  %v5499_v44 = vld [vmem:[#allocation2 + $0x99] sm:$0xff] }
 0x283   : > { %9062 = vmatprep.mubr.msk.f32.mxu0 %vm373_vm1, %v10497_v24  ;;  %9112 = vmatprep.mubr.msk.f32.mxu1 %vm373_vm1, %v10497_v24  ;;  %v5500_v24 = vld [vmem:[#allocation2 + $0xa9] sm:$0xff] }
 0x286   : > { %9063 = vmatmul.mubr.msk.f32.gmra.mrb[42].mxu0 %vm373_vm1, %v10503_v25  ;;  %9113 = vmatmul.mubr.msk.f32.gmra.mrb[42].mxu1 %vm373_vm1, %v10503_v25  ;;  %v5501_v25 = vld [vmem:[#allocation2 + $0xb1] sm:$0xff] }
 0x287   : > { %9065 = vmatprep.mubr.msk.f32.mxu0 %vm373_vm1, %v10509_v27  ;;  %9115 = vmatprep.mubr.msk.f32.mxu1 %vm373_vm1, %v10509_v27  ;;  %v5502_v27 = vld [vmem:[#allocation2 + $0xc1] sm:$0xff] }
 0x28a   : > { %9066 = vmatmul.mubr.msk.f32.gmra.mrb[44].mxu0 %vm373_vm1, %v10515_v28  ;;  %9116 = vmatmul.mubr.msk.f32.gmra.mrb[44].mxu1 %vm373_vm1, %v10515_v28  ;;  %v5503_v28 = vld [vmem:[#allocation2 + $0xc9] sm:$0xff] }
 0x28b   : > { %9068 = vmatprep.mubr.msk.f32.mxu0 %vm373_vm1, %v10521_v30  ;;  %9118 = vmatprep.mubr.msk.f32.mxu1 %vm373_vm1, %v10521_v30  ;;  %v5504_v30 = vld [vmem:[#allocation2 + $0xd9] sm:$0xff] }
 0x28e   : > { %9069 = vmatmul.mubr.msk.f32.gmra.mrb[46].mxu0 %vm373_vm1, %v10527_v31  ;;  %9119 = vmatmul.mubr.msk.f32.gmra.mrb[46].mxu1 %vm373_vm1, %v10527_v31  ;;  %v5505_v31 = vld [vmem:[#allocation2 + $0xe1] sm:$0xff] }
 0x28f   : > { %9071 = vmatprep.mubr.msk.f32.mxu0 %vm373_vm1, %v10533_v33  ;;  %9121 = vmatprep.mubr.msk.f32.mxu1 %vm373_vm1, %v10533_v33  ;;  %v5506_v33 = vld [vmem:[#allocation2 + $0xf1] sm:$0xff] }
 0x292   : > { %9072 = vmatmul.mubr.msk.f32.gmra.mrb[48].mxu0 %vm373_vm1, %v10539_v34  ;;  %9122 = vmatmul.mubr.msk.f32.gmra.mrb[48].mxu1 %vm373_vm1, %v10539_v34  ;;  %v5507_v34 = vld [vmem:[#allocation2 + $0xf9] sm:$0xff] }
 0x293   : > { %9074 = vmatprep.mubr.msk.f32.mxu0 %vm373_vm1, %v10545_v35  ;;  %9124 = vmatprep.mubr.msk.f32.mxu1 %vm373_vm1, %v10545_v35  ;;  %v5508_v35 = vld [vmem:[#allocation2 + $0x109] sm:$0xff] }
 0x296   : > { %9075 = vmatmul.mubr.msk.f32.gmra.mrb[50].mxu0 %vm373_vm1, %v10551_v36  ;;  %9125 = vmatmul.mubr.msk.f32.gmra.mrb[50].mxu1 %vm373_vm1, %v10551_v36  ;;  %v5509_v36 = vld [vmem:[#allocation2 + $0x111] sm:$0xff] }
 0x297   : > { %9077 = vmatprep.mubr.msk.f32.mxu0 %vm373_vm1, %v10557_v38  ;;  %9127 = vmatprep.mubr.msk.f32.mxu1 %vm373_vm1, %v10557_v38  ;;  %v5510_v38 = vld [vmem:[#allocation2 + $0x121] sm:$0xff] }
 0x29a   : > { %9078 = vmatmul.mubr.msk.f32.gmra.mrb[52].mxu0 %vm373_vm1, %v10563_v39  ;;  %9128 = vmatmul.mubr.msk.f32.gmra.mrb[52].mxu1 %vm373_vm1, %v10563_v39  ;;  %v5511_v39 = vld [vmem:[#allocation2 + $0x129] sm:$0xff] }
 0x29b   : > { %9080 = vmatprep.mubr.msk.f32.mxu0 %vm373_vm1, %v10569_v46  ;;  %9130 = vmatprep.mubr.msk.f32.mxu1 %vm373_vm1, %v10569_v46  ;;  %v5512_v46 = vld [vmem:[#allocation2 + $0x139] sm:$0xff] }
 0x29e   : > { %9081 = vmatmul.mubr.msk.f32.gmra.mrb[54].mxu0 %vm373_vm1, %v10575_v47  ;;  %9131 = vmatmul.mubr.msk.f32.gmra.mrb[54].mxu1 %vm373_vm1, %v10575_v47  ;;  %v5513_v47 = vld [vmem:[#allocation2 + $0x141] sm:$0xff] }
 0x29f   : > { %9083 = vmatprep.mubr.msk.f32.mxu0 %vm373_vm1, %v10581_v54  ;;  %9133 = vmatprep.mubr.msk.f32.mxu1 %vm373_vm1, %v10581_v54  ;;  %v5514_v54 = vld [vmem:[#allocation2 + $0x151] sm:$0xff] }
 0x2a2   : > { %9084 = vmatmul.mubr.msk.f32.gmra.mrb[56].mxu0 %vm373_vm1, %v10587_v56  ;;  %9134 = vmatmul.mubr.msk.f32.gmra.mrb[56].mxu1 %vm373_vm1, %v10587_v56  ;;  %v5515_v56 = vld [vmem:[#allocation2 + $0x159] sm:$0xff] }
 0x2a3   : > { %9086 = vmatprep.mubr.msk.f32.mxu0 %vm373_vm1, %v10593_v4  ;;  %9136 = vmatprep.mubr.msk.f32.mxu1 %vm373_vm1, %v10593_v4  ;;  %v5516_v4 = vld [vmem:[#allocation2 + $0x169] sm:$0xff] }
 0x2a6   : > { %9087 = vmatmul.mubr.msk.f32.gmra.mrb[58].mxu0 %vm373_vm1, %v11811_v41  ;;  %9137 = vmatmul.mubr.msk.f32.gmra.mrb[58].mxu1 %vm373_vm1, %v11811_v41 }
 0x2a7   : > { %9089 = vmatprep.mubr.msk.f32.mxu0 %vm373_vm1, %v11812_v42  ;;  %9139 = vmatprep.mubr.msk.f32.mxu1 %vm373_vm1, %v11812_v42 }
 0x2aa   : > { %9090 = vmatmul.mubr.msk.f32.gmra.mrb[60].mxu0 %vm373_vm1, %v10951_v0  ;;  %9140 = vmatmul.mubr.msk.f32.gmra.mrb[60].mxu1 %vm373_vm1, %v10951_v0  ;;  %v5517_v0 = vld [vmem:[#allocation2 + $0x171] sm:$0xff] }
 0x2ab   : > { %9092 = vmatprep.mubr.msk.f32.mxu0 %vm373_vm1, %v4868_v1  ;;  %9142 = vmatprep.mubr.msk.f32.mxu1 %vm373_vm1, %v4868_v1 }
 0x2ae   : > { %9093 = vmatmul.mubr.msk.f32.gmra.mrb[62].mxu0 %vm373_vm1, %v4869_v2  ;;  %9143 = vmatmul.mubr.msk.f32.gmra.mrb[62].mxu1 %vm373_vm1, %v4869_v2 }
 0x2af   : > { %9147 = vmatprep.mubr.msk.f32.mxu0 %vm373_vm1, %v10975_v13  ;;  %9197 = vmatprep.mubr.msk.f32.mxu1 %vm373_vm1, %v10975_v13  ;;  %v5520_v13 = vld [vmem:[#allocation2 + $0x199] sm:$0xff] }
 0x2b2   : > { %9148 = vmatmul.mubr.msk.f32.vlgmr.msra.gmra.mrb[32].mxu0 %vm373_vm1, %v10981_v14  ;;  %9198 = vmatmul.mubr.msk.f32.vlgmr.msra.gmra.mrb[32].mxu1 %vm373_vm1, %v10981_v14  ;;  %v5521_v14 = vld [vmem:[#allocation2 + $0x1a1] sm:$0xff] }
 0x2b3   : > { %9246 = vmatpush3.msk.msra.mxu0 %vm470_vm0, %v11272_v11  ;;  %9296 = vmatpush3.msk.msra.mxu1 %vm470_vm0, %v11277_v63  ;;  %v11559_v11 = vld [vmem:[%s11707_s8] ss:$0 sm:$0xff] }
 0x2b4   : > { %9150 = vmatprep.mubr.msk.f32.mxu0 %vm373_vm1, %v10991_v19  ;;  %9200 = vmatprep.mubr.msk.f32.mxu1 %vm373_vm1, %v10991_v19  ;;  %v6142_v19 = vld [vmem:[#allocation2 + $0x32] sm:$0xff] }
 0x2b6   : > { %9151 = vmatmul.mubr.msk.f32.gmra.mrb[34].mxu0 %vm373_vm1, %v10997_v21  ;;  %9201 = vmatmul.mubr.msk.f32.gmra.mrb[34].mxu1 %vm373_vm1, %v10997_v21  ;;  %v6143_v21 = vld [vmem:[#allocation2 + $0x3a] sm:$0xff] }
 0x2b7   : > { %9153 = vmatprep.mubr.msk.f32.mxu0 %vm373_vm1, %v5494_v3  ;;  %9203 = vmatprep.mubr.msk.f32.mxu1 %vm373_vm1, %v5494_v3 }
 0x2ba   : > { %9154 = vmatmul.mubr.msk.f32.gmra.mrb[36].mxu0 %vm373_vm1, %v5495_v7  ;;  %9204 = vmatmul.mubr.msk.f32.gmra.mrb[36].mxu1 %vm373_vm1, %v5495_v7 }
 0x2bb   : > { %9156 = vmatprep.mubr.msk.f32.mxu0 %vm373_vm1, %v5496_v15  ;;  %9206 = vmatprep.mubr.msk.f32.mxu1 %vm373_vm1, %v5496_v15 }
 0x2be   : > { %9157 = vmatmul.mubr.msk.f32.gmra.mrb[38].mxu0 %vm373_vm1, %v5497_v22  ;;  %9207 = vmatmul.mubr.msk.f32.gmra.mrb[38].mxu1 %vm373_vm1, %v5497_v22 }
 0x2bf   : > { %9159 = vmatprep.mubr.msk.f32.mxu0 %vm373_vm1, %v5498_v43  ;;  %9209 = vmatprep.mubr.msk.f32.mxu1 %vm373_vm1, %v5498_v43 }
 0x2c2   : > { %9160 = vmatmul.mubr.msk.f32.gmra.mrb[40].mxu0 %vm373_vm1, %v5499_v44  ;;  %9210 = vmatmul.mubr.msk.f32.gmra.mrb[40].mxu1 %vm373_vm1, %v5499_v44 }
 0x2c3   : > { %9162 = vmatprep.mubr.msk.f32.mxu0 %vm373_vm1, %v5500_v24  ;;  %9212 = vmatprep.mubr.msk.f32.mxu1 %vm373_vm1, %v5500_v24 }
 0x2c6   : > { %9163 = vmatmul.mubr.msk.f32.gmra.mrb[42].mxu0 %vm373_vm1, %v5501_v25  ;;  %9213 = vmatmul.mubr.msk.f32.gmra.mrb[42].mxu1 %vm373_vm1, %v5501_v25 }
 0x2c7   : > { %9165 = vmatprep.mubr.msk.f32.mxu0 %vm373_vm1, %v5502_v27  ;;  %9215 = vmatprep.mubr.msk.f32.mxu1 %vm373_vm1, %v5502_v27 }
 0x2ca   : > { %9166 = vmatmul.mubr.msk.f32.gmra.mrb[44].mxu0 %vm373_vm1, %v5503_v28  ;;  %9216 = vmatmul.mubr.msk.f32.gmra.mrb[44].mxu1 %vm373_vm1, %v5503_v28 }
 0x2cb   : > { %9168 = vmatprep.mubr.msk.f32.mxu0 %vm373_vm1, %v5504_v30  ;;  %9218 = vmatprep.mubr.msk.f32.mxu1 %vm373_vm1, %v5504_v30 }
 0x2ce   : > { %9169 = vmatmul.mubr.msk.f32.gmra.mrb[46].mxu0 %vm373_vm1, %v5505_v31  ;;  %9219 = vmatmul.mubr.msk.f32.gmra.mrb[46].mxu1 %vm373_vm1, %v5505_v31 }
 0x2cf   : > { %9171 = vmatprep.mubr.msk.f32.mxu0 %vm373_vm1, %v5506_v33  ;;  %9221 = vmatprep.mubr.msk.f32.mxu1 %vm373_vm1, %v5506_v33 }
 0x2d2   : > { %9172 = vmatmul.mubr.msk.f32.gmra.mrb[48].mxu0 %vm373_vm1, %v5507_v34  ;;  %9222 = vmatmul.mubr.msk.f32.gmra.mrb[48].mxu1 %vm373_vm1, %v5507_v34 }
 0x2d3   : > { %9174 = vmatprep.mubr.msk.f32.mxu0 %vm373_vm1, %v5508_v35  ;;  %9224 = vmatprep.mubr.msk.f32.mxu1 %vm373_vm1, %v5508_v35 }
 0x2d6   : > { %9175 = vmatmul.mubr.msk.f32.gmra.mrb[50].mxu0 %vm373_vm1, %v5509_v36  ;;  %9225 = vmatmul.mubr.msk.f32.gmra.mrb[50].mxu1 %vm373_vm1, %v5509_v36 }
 0x2d7   : > { %9177 = vmatprep.mubr.msk.f32.mxu0 %vm373_vm1, %v5510_v38  ;;  %9227 = vmatprep.mubr.msk.f32.mxu1 %vm373_vm1, %v5510_v38 }
 0x2da   : > { %9178 = vmatmul.mubr.msk.f32.gmra.mrb[52].mxu0 %vm373_vm1, %v5511_v39  ;;  %9228 = vmatmul.mubr.msk.f32.gmra.mrb[52].mxu1 %vm373_vm1, %v5511_v39 }
 0x2db   : > { %9180 = vmatprep.mubr.msk.f32.mxu0 %vm373_vm1, %v5512_v46  ;;  %9230 = vmatprep.mubr.msk.f32.mxu1 %vm373_vm1, %v5512_v46 }
 0x2de   : > { %9181 = vmatmul.mubr.msk.f32.gmra.mrb[54].mxu0 %vm373_vm1, %v5513_v47  ;;  %9231 = vmatmul.mubr.msk.f32.gmra.mrb[54].mxu1 %vm373_vm1, %v5513_v47 }
 0x2df   : > { %9183 = vmatprep.mubr.msk.f32.mxu0 %vm373_vm1, %v5514_v54  ;;  %9233 = vmatprep.mubr.msk.f32.mxu1 %vm373_vm1, %v5514_v54 }
 0x2e2   : > { %9184 = vmatmul.mubr.msk.f32.gmra.mrb[56].mxu0 %vm373_vm1, %v5515_v56  ;;  %9234 = vmatmul.mubr.msk.f32.gmra.mrb[56].mxu1 %vm373_vm1, %v5515_v56 }
 0x2e3   : > { %9186 = vmatprep.mubr.msk.f32.mxu0 %vm373_vm1, %v5516_v4  ;;  %9236 = vmatprep.mubr.msk.f32.mxu1 %vm373_vm1, %v5516_v4 }
 0x2e6   : > { %9187 = vmatmul.mubr.msk.f32.gmra.mrb[58].mxu0 %vm373_vm1, %v5517_v0  ;;  %9237 = vmatmul.mubr.msk.f32.gmra.mrb[58].mxu1 %vm373_vm1, %v5517_v0 }
 0x2e7   : > { %9189 = vmatprep.mubr.msk.f32.mxu0 %vm373_vm1, %v11099_v57  ;;  %9239 = vmatprep.mubr.msk.f32.mxu1 %vm373_vm1, %v11099_v57  ;;  %v6144_v57 = vld [vmem:[#allocation2 + $0x4a] sm:$0xff] }
 0x2ea   : > { %9190 = vmatmul.mubr.msk.f32.gmra.mrb[60].mxu0 %vm373_vm1, %v11105_v60  ;;  %9240 = vmatmul.mubr.msk.f32.gmra.mrb[60].mxu1 %vm373_vm1, %v11105_v60  ;;  %v6145_v60 = vld [vmem:[#allocation2 + $0x52] sm:$0xff] }
 0x2eb   : > { %9192 = vmatprep.mubr.msk.f32.mxu0 %vm373_vm1, %v5520_v13  ;;  %9242 = vmatprep.mubr.msk.f32.mxu1 %vm373_vm1, %v5520_v13 }
 0x2ee   : > { %9193 = vmatmul.mubr.msk.f32.gmra.mrb[62].mxu0 %vm373_vm1, %v5521_v14  ;;  %9243 = vmatmul.mubr.msk.f32.gmra.mrb[62].mxu1 %vm373_vm1, %v5521_v14 }
 0x2ef   : > { %9247 = vmatprep.mubr.msk.f32.mxu0 %vm373_vm1, %v6142_v19  ;;  %9297 = vmatprep.mubr.msk.f32.mxu1 %vm373_vm1, %v6142_v19 }
 0x2f2   : > { %9248 = vmatmul.mubr.msk.f32.vlgmr.msra.gmra.mrb[32].mxu0 %vm373_vm1, %v6143_v21  ;;  %9298 = vmatmul.mubr.msk.f32.vlgmr.msra.gmra.mrb[32].mxu1 %vm373_vm1, %v6143_v21 }
 0x2f3   : > { %9250 = vmatprep.mubr.msk.f32.mxu0 %vm373_vm1, %v6144_v57  ;;  %9300 = vmatprep.mubr.msk.f32.mxu1 %vm373_vm1, %v6144_v57 }
 0x2f6   : > { %9251 = vmatmul.mubr.msk.f32.gmra.mrb[34].mxu0 %vm373_vm1, %v6145_v60  ;;  %9301 = vmatmul.mubr.msk.f32.gmra.mrb[34].mxu1 %vm373_vm1, %v6145_v60 }
 0x2f7   : > { %9253 = vmatprep.mubr.msk.f32.mxu0 %vm373_vm1, %v6146_v5  ;;  %9303 = vmatprep.mubr.msk.f32.mxu1 %vm373_vm1, %v6146_v5 }
 0x2fa   : > { %9254 = vmatmul.mubr.msk.f32.gmra.mrb[36].mxu0 %vm373_vm1, %v6147_v8  ;;  %9304 = vmatmul.mubr.msk.f32.gmra.mrb[36].mxu1 %vm373_vm1, %v6147_v8 }
 0x2fb   : > { %9256 = vmatprep.mubr.msk.f32.mxu0 %vm373_vm1, %v6148_v17  ;;  %9306 = vmatprep.mubr.msk.f32.mxu1 %vm373_vm1, %v6148_v17 }
 0x2fe   : > { %9257 = vmatmul.mubr.msk.f32.gmra.mrb[38].mxu0 %vm373_vm1, %v6149_v20  ;;  %9307 = vmatmul.mubr.msk.f32.gmra.mrb[38].mxu1 %vm373_vm1, %v6149_v20 }
 0x2ff   : > { %9259 = vmatprep.mubr.msk.f32.mxu0 %vm373_vm1, %v6150_v29  ;;  %9309 = vmatprep.mubr.msk.f32.mxu1 %vm373_vm1, %v6150_v29 }
 0x302   : > { %9260 = vmatmul.mubr.msk.f32.gmra.mrb[40].mxu0 %vm373_vm1, %v6151_v32  ;;  %9310 = vmatmul.mubr.msk.f32.gmra.mrb[40].mxu1 %vm373_vm1, %v6151_v32 }
 0x303   : > { %9262 = vmatprep.mubr.msk.f32.mxu0 %vm373_vm1, %v6152_v45  ;;  %9312 = vmatprep.mubr.msk.f32.mxu1 %vm373_vm1, %v6152_v45 }
 0x306   : > { %9263 = vmatmul.mubr.msk.f32.gmra.mrb[42].mxu0 %vm373_vm1, %v6153_v48  ;;  %9313 = vmatmul.mubr.msk.f32.gmra.mrb[42].mxu1 %vm373_vm1, %v6153_v48 }
 0x307   : > { %9265 = vmatprep.mubr.msk.f32.mxu0 %vm373_vm1, %v6154_v58  ;;  %9315 = vmatprep.mubr.msk.f32.mxu1 %vm373_vm1, %v6154_v58 }
 0x30a   : > { %9266 = vmatmul.mubr.msk.f32.gmra.mrb[44].mxu0 %vm373_vm1, %v6155_v62  ;;  %9316 = vmatmul.mubr.msk.f32.gmra.mrb[44].mxu1 %vm373_vm1, %v6155_v62 }
 0x30b   : > { %9268 = vmatprep.mubr.msk.f32.mxu0 %vm373_vm1, %v6156_v9  ;;  %9318 = vmatprep.mubr.msk.f32.mxu1 %vm373_vm1, %v6156_v9 }
 0x30e   : > { %9269 = vmatmul.mubr.msk.f32.gmra.mrb[46].mxu0 %vm373_vm1, %v6157_v12  ;;  %9319 = vmatmul.mubr.msk.f32.gmra.mrb[46].mxu1 %vm373_vm1, %v6157_v12 }
 0x30f   : > { %9271 = vmatprep.mubr.msk.f32.mxu0 %vm373_vm1, %v6158_v23  ;;  %9321 = vmatprep.mubr.msk.f32.mxu1 %vm373_vm1, %v6158_v23 }
 0x312   : > { %9272 = vmatmul.mubr.msk.f32.gmra.mrb[48].mxu0 %vm373_vm1, %v6159_v26  ;;  %9322 = vmatmul.mubr.msk.f32.gmra.mrb[48].mxu1 %vm373_vm1, %v6159_v26 }
 0x313   : > { %9274 = vmatprep.mubr.msk.f32.mxu0 %vm373_vm1, %v6160_v37  ;;  %9324 = vmatprep.mubr.msk.f32.mxu1 %vm373_vm1, %v6160_v37 }
 0x316   : > { %9275 = vmatmul.mubr.msk.f32.gmra.mrb[50].mxu0 %vm373_vm1, %v6161_v40  ;;  %9325 = vmatmul.mubr.msk.f32.gmra.mrb[50].mxu1 %vm373_vm1, %v6161_v40 }
 0x317   : > { %9277 = vmatprep.mubr.msk.f32.mxu0 %vm373_vm1, %v6162_v49  ;;  %9327 = vmatprep.mubr.msk.f32.mxu1 %vm373_vm1, %v6162_v49 }
 0x31a   : > { %9278 = vmatmul.mubr.msk.f32.gmra.mrb[52].mxu0 %vm373_vm1, %v6163_v50  ;;  %9328 = vmatmul.mubr.msk.f32.gmra.mrb[52].mxu1 %vm373_vm1, %v6163_v50 }
 0x31b   : > { %9280 = vmatprep.mubr.msk.f32.mxu0 %vm373_vm1, %v6164_v51  ;;  %9330 = vmatprep.mubr.msk.f32.mxu1 %vm373_vm1, %v6164_v51 }
 0x31e   : > { %9281 = vmatmul.mubr.msk.f32.gmra.mrb[54].mxu0 %vm373_vm1, %v6165_v52  ;;  %9331 = vmatmul.mubr.msk.f32.gmra.mrb[54].mxu1 %vm373_vm1, %v6165_v52 }
 0x31f   : > { %9283 = vmatprep.mubr.msk.f32.mxu0 %vm373_vm1, %v6166_v53  ;;  %9333 = vmatprep.mubr.msk.f32.mxu1 %vm373_vm1, %v6166_v53 }
 0x322   : > { %9284 = vmatmul.mubr.msk.f32.gmra.mrb[56].mxu0 %vm373_vm1, %v6167_v55  ;;  %9334 = vmatmul.mubr.msk.f32.gmra.mrb[56].mxu1 %vm373_vm1, %v6167_v55 }
 0x323   : > { %9286 = vmatprep.mubr.msk.f32.mxu0 %vm373_vm1, %v6168_v10  ;;  %9336 = vmatprep.mubr.msk.f32.mxu1 %vm373_vm1, %v6168_v10 }
 0x326   : > { %9287 = vmatmul.mubr.msk.f32.gmra.mrb[58].mxu0 %vm373_vm1, %v6169_v16  ;;  %9337 = vmatmul.mubr.msk.f32.gmra.mrb[58].mxu1 %vm373_vm1, %v6169_v16 }
 0x327   : > { %9289 = vmatprep.mubr.msk.f32.mxu0 %vm373_vm1, %v11249_v61  ;;  %9339 = vmatprep.mubr.msk.f32.mxu1 %vm373_vm1, %v11249_v61  ;;  %v11554_v61 = vld [vmem:[%s11706_s7] ss:$0 sm:$0xff] }
 0x32a   : > { %9290 = vmatmul.mubr.msk.f32.gmra.mrb[60].mxu0 %vm373_vm1, %v11255_v6  ;;  %9340 = vmatmul.mubr.msk.f32.gmra.mrb[60].mxu1 %vm373_vm1, %v11255_v6 }
 0x32b   : > { %9292 = vmatprep.mubr.msk.f32.mxu0 %vm373_vm1, %v6172_v18  ;;  %9342 = vmatprep.mubr.msk.f32.mxu1 %vm373_vm1, %v6172_v18 }
 0x32e   : > { %9293 = vmatmul.mubr.msk.f32.gmra.mrb[62].mxu0 %vm373_vm1, %v6173_v59  ;;  %9343 = vmatmul.mubr.msk.f32.gmra.mrb[62].mxu1 %vm373_vm1, %v6173_v59 }
 0x3c5   : > { %v9249_v6 = vpop.f32.mrb[32].mxu0  ;;  %v9299_v63 = vpop.f32.mrb[32].mxu1 }
 0x3c6   : > { %v6802_v41 = vadd.f32 %v9249_v6, %v11554_v61  ;;  %v6841_v42 = vadd.f32 %v9299_v63, %v11559_v11  ;;  %v6341_v1 = vpop.f32.mrb[33].mxu0  ;;  %v6603_v2 = vpop.f32.mrb[33].mxu1 }
 0x3c7   : > { %v6801_v3 = vadd.f32 %v11554_v61, %v6341_v1  ;;  %v6840_v7 = vadd.f32 %v11559_v11, %v6603_v2 }
 0x3c8   : > { %v6873_v15 = vmax.f32 %v6802_v41, %v6841_v42 }
 0x3c9   : > { %v6872_v22 = vmax.f32 %v6801_v3, %v6840_v7  ;;  %v9252_v43 = vpop.f32.mrb[34].mxu0  ;;  %v9302_v44 = vpop.f32.mrb[34].mxu1 }
 0x3ca   : > { %6906 = vst.msk [vmem:[%s11568_s29 + $0x8] sm:$0xff] %vm6904_vm3, %v6873_v15  ;;  %v6804_v24 = vadd.f32 %v9252_v43, %v11554_v61  ;;  %v6843_v25 = vadd.f32 %v9302_v44, %v11559_v11  ;;  %v6351_v27 = vpop.f32.mrb[35].mxu0  ;;  %v6613_v28 = vpop.f32.mrb[35].mxu1 }
 0x3cb   : > { %6905 = vst.msk [vmem:[%s11568_s29] sm:$0xff] %vm6904_vm3, %v6872_v22  ;;  %v6803_v30 = vadd.f32 %v11554_v61, %v6351_v27  ;;  %v6842_v31 = vadd.f32 %v11559_v11, %v6613_v28 }
 0x3cc   : > { %v6875_v33 = vmax.f32 %v6804_v24, %v6843_v25 }
 0x3cd   : > { %v6874_v34 = vmax.f32 %v6803_v30, %v6842_v31  ;;  %v9255_v35 = vpop.f32.mrb[36].mxu0  ;;  %v9305_v36 = vpop.f32.mrb[36].mxu1 }
 0x3ce   : > { %6908 = vst.msk [vmem:[%s11568_s29 + $0x18] sm:$0xff] %vm6904_vm3, %v6875_v33  ;;  %v6806_v38 = vadd.f32 %v9255_v35, %v11554_v61  ;;  %v6845_v39 = vadd.f32 %v9305_v36, %v11559_v11  ;;  %v6361_v46 = vpop.f32.mrb[37].mxu0  ;;  %v6623_v47 = vpop.f32.mrb[37].mxu1 }
 0x3cf   : > { %6907 = vst.msk [vmem:[%s11568_s29 + $0x10] sm:$0xff] %vm6904_vm3, %v6874_v34  ;;  %v6805_v54 = vadd.f32 %v11554_v61, %v6361_v46  ;;  %v6844_v56 = vadd.f32 %v11559_v11, %v6623_v47 }
 0x3d0   : > { %v6877_v4 = vmax.f32 %v6806_v38, %v6845_v39 }
 0x3d1   : > { %v6876_v0 = vmax.f32 %v6805_v54, %v6844_v56  ;;  %v9258_v13 = vpop.f32.mrb[38].mxu0  ;;  %v9308_v14 = vpop.f32.mrb[38].mxu1 }
 0x3d2   : > { %6910 = vst.msk [vmem:[%s11568_s29 + $0x28] sm:$0xff] %vm6904_vm3, %v6877_v4  ;;  %v6808_v19 = vadd.f32 %v9258_v13, %v11554_v61  ;;  %v6847_v21 = vadd.f32 %v9308_v14, %v11559_v11  ;;  %v6371_v57 = vpop.f32.mrb[39].mxu0  ;;  %v6633_v60 = vpop.f32.mrb[39].mxu1 }
 0x3d3   : > { %6909 = vst.msk [vmem:[%s11568_s29 + $0x20] sm:$0xff] %vm6904_vm3, %v6876_v0  ;;  %v6807_v5 = vadd.f32 %v11554_v61, %v6371_v57  ;;  %v6846_v8 = vadd.f32 %v11559_v11, %v6633_v60 }
 0x3d4   : > { %v6879_v17 = vmax.f32 %v6808_v19, %v6847_v21 }
 0x3d5   : > { %v6878_v20 = vmax.f32 %v6807_v5, %v6846_v8  ;;  %v9261_v29 = vpop.f32.mrb[40].mxu0  ;;  %v9311_v32 = vpop.f32.mrb[40].mxu1 }
 0x3d6   : > { %6912 = vst.msk [vmem:[%s11568_s29 + $0x38] sm:$0xff] %vm6904_vm3, %v6879_v17  ;;  %v6810_v45 = vadd.f32 %v9261_v29, %v11554_v61  ;;  %v6849_v48 = vadd.f32 %v9311_v32, %v11559_v11  ;;  %v6381_v58 = vpop.f32.mrb[41].mxu0  ;;  %v6643_v62 = vpop.f32.mrb[41].mxu1 }
 0x3d7   : > { %6911 = vst.msk [vmem:[%s11568_s29 + $0x30] sm:$0xff] %vm6904_vm3, %v6878_v20  ;;  %v6809_v9 = vadd.f32 %v11554_v61, %v6381_v58  ;;  %v6848_v12 = vadd.f32 %v11559_v11, %v6643_v62 }
 0x3d8   : > { %v6881_v23 = vmax.f32 %v6810_v45, %v6849_v48 }
 0x3d9   : > { %v6880_v26 = vmax.f32 %v6809_v9, %v6848_v12  ;;  %v9264_v37 = vpop.f32.mrb[42].mxu0  ;;  %v9314_v40 = vpop.f32.mrb[42].mxu1 }
 0x3da   : > { %6914 = vst.msk [vmem:[%s11568_s29 + $0x48] sm:$0xff] %vm6904_vm3, %v6881_v23  ;;  %v6812_v49 = vadd.f32 %v9264_v37, %v11554_v61  ;;  %v6851_v50 = vadd.f32 %v9314_v40, %v11559_v11  ;;  %v6391_v51 = vpop.f32.mrb[43].mxu0  ;;  %v6653_v52 = vpop.f32.mrb[43].mxu1 }
 0x3db   : > { %6913 = vst.msk [vmem:[%s11568_s29 + $0x40] sm:$0xff] %vm6904_vm3, %v6880_v26  ;;  %v6811_v53 = vadd.f32 %v11554_v61, %v6391_v51  ;;  %v6850_v55 = vadd.f32 %v11559_v11, %v6653_v52 }
 0x3dc   : > { %v6883_v10 = vmax.f32 %v6812_v49, %v6851_v50 }
 0x3dd   : > { %v6882_v16 = vmax.f32 %v6811_v53, %v6850_v55  ;;  %v9267_v18 = vpop.f32.mrb[44].mxu0  ;;  %v9317_v59 = vpop.f32.mrb[44].mxu1 }
 0x3de   : > { %6916 = vst.msk [vmem:[%s11568_s29 + $0x58] sm:$0xff] %vm6904_vm3, %v6883_v10  ;;  %v6814_v6 = vadd.f32 %v9267_v18, %v11554_v61  ;;  %v6853_v63 = vadd.f32 %v9317_v59, %v11559_v11  ;;  %v6401_v41 = vpop.f32.mrb[45].mxu0  ;;  %v6663_v42 = vpop.f32.mrb[45].mxu1 }
 0x3df   : > { %6915 = vst.msk [vmem:[%s11568_s29 + $0x50] sm:$0xff] %vm6904_vm3, %v6882_v16  ;;  %v6813_v1 = vadd.f32 %v11554_v61, %v6401_v41  ;;  %v6852_v2 = vadd.f32 %v11559_v11, %v6663_v42 }
 0x3e0   : > { %v6885_v3 = vmax.f32 %v6814_v6, %v6853_v63 }
 0x3e1   : > { %v6884_v7 = vmax.f32 %v6813_v1, %v6852_v2  ;;  %v9270_v15 = vpop.f32.mrb[46].mxu0  ;;  %v9320_v22 = vpop.f32.mrb[46].mxu1 }
 0x3e2   : > { %6918 = vst.msk [vmem:[%s11568_s29 + $0x68] sm:$0xff] %vm6904_vm3, %v6885_v3  ;;  %v6816_v43 = vadd.f32 %v9270_v15, %v11554_v61  ;;  %v6855_v44 = vadd.f32 %v9320_v22, %v11559_v11  ;;  %v6411_v24 = vpop.f32.mrb[47].mxu0  ;;  %v6673_v25 = vpop.f32.mrb[47].mxu1 }
 0x3e3   : > { %6917 = vst.msk [vmem:[%s11568_s29 + $0x60] sm:$0xff] %vm6904_vm3, %v6884_v7  ;;  %v6815_v27 = vadd.f32 %v11554_v61, %v6411_v24  ;;  %v6854_v28 = vadd.f32 %v11559_v11, %v6673_v25 }
 0x3e4   : > { %v6887_v30 = vmax.f32 %v6816_v43, %v6855_v44 }
 0x3e5   : > { %v6886_v31 = vmax.f32 %v6815_v27, %v6854_v28  ;;  %v9273_v33 = vpop.f32.mrb[48].mxu0  ;;  %v9323_v34 = vpop.f32.mrb[48].mxu1 }
 0x3e6   : > { %6920 = vst.msk [vmem:[%s11568_s29 + $0x78] sm:$0xff] %vm6904_vm3, %v6887_v30  ;;  %v6818_v35 = vadd.f32 %v9273_v33, %v11554_v61  ;;  %v6857_v36 = vadd.f32 %v9323_v34, %v11559_v11  ;;  %v6421_v38 = vpop.f32.mrb[49].mxu0  ;;  %v6683_v39 = vpop.f32.mrb[49].mxu1 }
 0x3e7   : > { %6919 = vst.msk [vmem:[%s11568_s29 + $0x70] sm:$0xff] %vm6904_vm3, %v6886_v31  ;;  %v6817_v46 = vadd.f32 %v11554_v61, %v6421_v38  ;;  %v6856_v47 = vadd.f32 %v11559_v11, %v6683_v39 }
 0x3e8   : > { %v6889_v54 = vmax.f32 %v6818_v35, %v6857_v36 }
 0x3e9   : > { %v6888_v56 = vmax.f32 %v6817_v46, %v6856_v47  ;;  %v9276_v4 = vpop.f32.mrb[50].mxu0  ;;  %v9326_v0 = vpop.f32.mrb[50].mxu1 }
 0x3ea   : > { %6922 = vst.msk [vmem:[%s11568_s29 + $0x88] sm:$0xff] %vm6904_vm3, %v6889_v54  ;;  %v6820_v13 = vadd.f32 %v9276_v4, %v11554_v61  ;;  %v6859_v14 = vadd.f32 %v9326_v0, %v11559_v11  ;;  %v6431_v19 = vpop.f32.mrb[51].mxu0  ;;  %v6693_v21 = vpop.f32.mrb[51].mxu1 }
 0x3eb   : > { %6921 = vst.msk [vmem:[%s11568_s29 + $0x80] sm:$0xff] %vm6904_vm3, %v6888_v56  ;;  %v6819_v57 = vadd.f32 %v11554_v61, %v6431_v19  ;;  %v6858_v60 = vadd.f32 %v11559_v11, %v6693_v21 }
 0x3ec   : > { %v6891_v5 = vmax.f32 %v6820_v13, %v6859_v14 }
 0x3ed   : > { %v6890_v8 = vmax.f32 %v6819_v57, %v6858_v60  ;;  %v9279_v17 = vpop.f32.mrb[52].mxu0  ;;  %v9329_v20 = vpop.f32.mrb[52].mxu1 }
 0x3ee   : > { %6924 = vst.msk [vmem:[%s11568_s29 + $0x98] sm:$0xff] %vm6904_vm3, %v6891_v5  ;;  %v6822_v29 = vadd.f32 %v9279_v17, %v11554_v61  ;;  %v6861_v32 = vadd.f32 %v9329_v20, %v11559_v11  ;;  %v6441_v45 = vpop.f32.mrb[53].mxu0  ;;  %v6703_v48 = vpop.f32.mrb[53].mxu1 }
 0x3ef   : > { %6923 = vst.msk [vmem:[%s11568_s29 + $0x90] sm:$0xff] %vm6904_vm3, %v6890_v8  ;;  %v6821_v58 = vadd.f32 %v11554_v61, %v6441_v45  ;;  %v6860_v62 = vadd.f32 %v11559_v11, %v6703_v48 }
 0x3f0   : > { %v6893_v9 = vmax.f32 %v6822_v29, %v6861_v32 }
 0x3f1   : > { %v6892_v12 = vmax.f32 %v6821_v58, %v6860_v62  ;;  %v9282_v23 = vpop.f32.mrb[54].mxu0  ;;  %v9332_v26 = vpop.f32.mrb[54].mxu1 }
 0x3f2   : > { %6926 = vst.msk [vmem:[%s11568_s29 + $0xa8] sm:$0xff] %vm6904_vm3, %v6893_v9  ;;  %v6824_v37 = vadd.f32 %v9282_v23, %v11554_v61  ;;  %v6863_v40 = vadd.f32 %v9332_v26, %v11559_v11  ;;  %v6451_v49 = vpop.f32.mrb[55].mxu0  ;;  %v6713_v50 = vpop.f32.mrb[55].mxu1 }
 0x3f3   : > { %6925 = vst.msk [vmem:[%s11568_s29 + $0xa0] sm:$0xff] %vm6904_vm3, %v6892_v12  ;;  %v6823_v51 = vadd.f32 %v11554_v61, %v6451_v49  ;;  %v6862_v52 = vadd.f32 %v11559_v11, %v6713_v50 }
 0x3f4   : > { %v6895_v53 = vmax.f32 %v6824_v37, %v6863_v40 }
 0x3f5   : > { %v6894_v55 = vmax.f32 %v6823_v51, %v6862_v52  ;;  %v9285_v10 = vpop.f32.mrb[56].mxu0  ;;  %v9335_v16 = vpop.f32.mrb[56].mxu1 }
 0x3f6   : > { %6928 = vst.msk [vmem:[%s11568_s29 + $0xb8] sm:$0xff] %vm6904_vm3, %v6895_v53  ;;  %v6826_v18 = vadd.f32 %v9285_v10, %v11554_v61  ;;  %v6865_v59 = vadd.f32 %v9335_v16, %v11559_v11  ;;  %v6461_v6 = vpop.f32.mrb[57].mxu0  ;;  %v6723_v63 = vpop.f32.mrb[57].mxu1 }
 0x3f7   : > { %6927 = vst.msk [vmem:[%s11568_s29 + $0xb0] sm:$0xff] %vm6904_vm3, %v6894_v55  ;;  %v6825_v41 = vadd.f32 %v11554_v61, %v6461_v6  ;;  %v6864_v42 = vadd.f32 %v11559_v11, %v6723_v63 }
 0x3f8   : > { %v6897_v1 = vmax.f32 %v6826_v18, %v6865_v59 }
 0x3f9   : > { %v6896_v2 = vmax.f32 %v6825_v41, %v6864_v42  ;;  %v9288_v3 = vpop.f32.mrb[58].mxu0  ;;  %v9338_v7 = vpop.f32.mrb[58].mxu1 }
 0x3fa   : > { %6930 = vst.msk [vmem:[%s11568_s29 + $0xc8] sm:$0xff] %vm6904_vm3, %v6897_v1  ;;  %v6828_v15 = vadd.f32 %v9288_v3, %v11554_v61  ;;  %v6867_v22 = vadd.f32 %v9338_v7, %v11559_v11  ;;  %v6471_v43 = vpop.f32.mrb[59].mxu0  ;;  %v6733_v44 = vpop.f32.mrb[59].mxu1 }
 0x3fb   : > { %6929 = vst.msk [vmem:[%s11568_s29 + $0xc0] sm:$0xff] %vm6904_vm3, %v6896_v2  ;;  %v6827_v24 = vadd.f32 %v11554_v61, %v6471_v43  ;;  %v6866_v25 = vadd.f32 %v11559_v11, %v6733_v44 }
 0x3fc   : > { %v6899_v27 = vmax.f32 %v6828_v15, %v6867_v22 }
 0x3fd   : > { %v6898_v28 = vmax.f32 %v6827_v24, %v6866_v25  ;;  %v9291_v30 = vpop.f32.mrb[60].mxu0  ;;  %v9341_v31 = vpop.f32.mrb[60].mxu1 }
 0x3fe   : > { %6932 = vst.msk [vmem:[%s11568_s29 + $0xd8] sm:$0xff] %vm6904_vm3, %v6899_v27  ;;  %v6830_v33 = vadd.f32 %v9291_v30, %v11554_v61  ;;  %v6869_v34 = vadd.f32 %v9341_v31, %v11559_v11  ;;  %v6481_v35 = vpop.f32.mrb[61].mxu0  ;;  %v6743_v36 = vpop.f32.mrb[61].mxu1 }
 0x3ff   : > { %6931 = vst.msk [vmem:[%s11568_s29 + $0xd0] sm:$0xff] %vm6904_vm3, %v6898_v28  ;;  %v6829_v38 = vadd.f32 %v11554_v61, %v6481_v35  ;;  %v6868_v39 = vadd.f32 %v11559_v11, %v6743_v36 }
 0x400   : > { %v6901_v46 = vmax.f32 %v6830_v33, %v6869_v34 }
 0x401   : > { %v6900_v47 = vmax.f32 %v6829_v38, %v6868_v39  ;;  %v9294_v54 = vpop.f32.mrb[62].mxu0  ;;  %v9344_v56 = vpop.f32.mrb[62].mxu1 }
 0x402   : > { %6934 = vst.msk [vmem:[%s11568_s29 + $0xe8] sm:$0xff] %vm6904_vm3, %v6901_v46  ;;  %v6832_v4 = vadd.f32 %v9294_v54, %v11554_v61  ;;  %v6871_v0 = vadd.f32 %v9344_v56, %v11559_v11  ;;  %v6491_v13 = vpop.f32.mrb[63].mxu0  ;;  %v6753_v14 = vpop.f32.mrb[63].mxu1 }
 0x403   : > { %6933 = vst.msk [vmem:[%s11568_s29 + $0xe0] sm:$0xff] %vm6904_vm3, %v6900_v47  ;;  %v6831_v19 = vadd.f32 %v11554_v61, %v6491_v13  ;;  %v6870_v21 = vadd.f32 %v11559_v11, %v6753_v14 }
 0x404   : > { %v6903_v57 = vmax.f32 %v6832_v4, %v6871_v0 }
 0x405   : > { %v6902_v60 = vmax.f32 %v6831_v19, %v6870_v21 }
 0x406   : > { %6936 = vst.msk [vmem:[%s11568_s29 + $0xf8] sm:$0xff] %vm6904_vm3, %v6903_v57 }
 0x407   : > { %6935 = vst.msk [vmem:[%s11568_s29 + $0xf0] sm:$0xff] %vm6904_vm3, %v6902_v60 }
 0x408 PF: > { %s19_s30 = sadd.s32 1, %s9872_s30  }
 0x409   : > { %p16_p4 = scmp.ge.s32.totalorder %s19_s30, 4  }
 0x40b   :  { %18 = sbr.rel (!%p16_p4) target bundleno = 1 (0x1), region = 104 }

</bundles_post_ra>
